<compile_context>
chip_gen: v7x
topology: tpu7x:2x2x1
jax: 0.10.0
libtpu: 0.0.40
codegen_flags: <defaults>
</compile_context>

<pallas_src>
import functools
import math
from types import SimpleNamespace

import jax
import jax.numpy as jnp
import numpy as np
from jax import lax
from jax.experimental import pallas as pl
from jax.experimental.pallas import tpu as pltpu


# Large-but-finite mask value (avoids inf-inf -> NaN in the online softmax).
_MASK_VALUE = -0.7 * float(np.finfo(np.float32).max)

# Replicates the reference table faithfully: window_size==32 uses a 64-wide mask
# in the PyTorch source (sliding_window_mask_32 tests `q - kv < 64`).
_W_SIZE_TO_EFFECTIVE = {32: 64, 64: 64, 128: 128, 256: 256, 512: 512, 1024: 1024}

_COMPUTE_DTYPE = jnp.bfloat16   # MXU operand dtype


# ---------------- Pallas kernel ----------------
def _swa_fwd_kernel(q_ref, k_ref, v_ref, o_ref,
                    q_scr, m_scr, l_scr, acc_scr,
                    *, sm_scale, window, block_q, block_k, kv_steps, r):
    iq = pl.program_id(1)   # query tile
    j = pl.program_id(2)    # kv step inside the window band (innermost, "arbitrary")

    @pl.when(j == 0)
    def _init():
        # Fold the softmax scale into q once per q tile and cast to bf16 for the MXU.
        q_scr[...] = (q_ref[0].astype(jnp.float32) * sm_scale).astype(q_scr.dtype)
        m_scr[...] = jnp.full_like(m_scr, _MASK_VALUE)
        l_scr[...] = jnp.zeros_like(l_scr)
        acc_scr[...] = jnp.zeros_like(acc_scr)

    # kv tile visited at this step (the BlockSpec index_map clamps it to >= 0;
    # here we skip the compute entirely for those clamped out-of-band steps).
    kv_block = iq * r + (r - kv_steps) + j

    @pl.when(kv_block >= 0)
    def _compute():
        k = k_ref[0]   # (bk, D)  bf16
        v = v_ref[0]   # (bk, Dv) bf16

        # scores = (q * scale) @ k^T by contracting the head dim directly
        # (no explicit transpose -> no XLU pass / transposed VMEM copy).
        s = lax.dot_general(q_scr[...], k, (((1,), (1,)), ((), ())),
                            preferred_element_type=jnp.float32)

        def accumulate(s_eff):
            m_prev = m_scr[...]                                   # (bq, 128) lane-replicated
            m_cur = jnp.max(s_eff, axis=-1, keepdims=True)        # (bq, 1)
            m_new = jnp.maximum(m_prev, m_cur)                    # (bq, 128)
            alpha = jnp.exp(m_prev - m_new)                       # (bq, 128)
            p = jnp.exp(s_eff - m_new)                            # (bq, bk=128)
            l_scr[...] = alpha * l_scr[...] + jnp.sum(p, axis=-1, keepdims=True)
            pv = jnp.dot(p.astype(v.dtype), v,
                         preferred_element_type=jnp.float32)      # (bq, Dv)
            if acc_scr.shape[-1] == alpha.shape[-1]:
                acc_scr[...] = alpha * acc_scr[...] + pv
            else:
                acc_scr[...] = alpha[:, :1] * acc_scr[...] + pv
            m_scr[...] = m_new

        q_start = iq * block_q
        kv_start = kv_block * block_k
        # Tile is fully inside the band (every (q, kv) pair valid) -> skip masking.
        fully_inside = jnp.logical_and(
            q_start - kv_start >= block_k - 1,                    # causal for all pairs
            (q_start + block_q - 1) - kv_start < window)          # window for all pairs

        @pl.when(fully_inside)
        def _interior():
            accumulate(s)

        @pl.when(jnp.logical_not(fully_inside))
        def _edge():
            # Single iota difference + one unsigned compare encodes
            # (q >= kv) & (q - kv < window).
            rel = (lax.broadcasted_iota(jnp.int32, (block_q, block_k), 0)
                   - lax.broadcasted_iota(jnp.int32, (block_q, block_k), 1))
            diff = rel + (q_start - kv_start)
            in_window = diff.astype(jnp.uint32) < jnp.uint32(window)
            # Note: no second where on p — fully-masked rows' bogus contributions
            # are wiped exactly (alpha == 0) at that row's first valid block.
            accumulate(jnp.where(in_window, s, _MASK_VALUE))

    @pl.when(j == kv_steps - 1)
    def _finalize():
        inv_l = pl.reciprocal(l_scr[...], approx=True)            # EUP slot, ~free
        if acc_scr.shape[-1] == inv_l.shape[-1]:
            out = acc_scr[...] * inv_l
        else:
            out = acc_scr[...] * inv_l[:, :1]
        o_ref[0] = out.astype(o_ref.dtype)


# ---------------- pallas_call wrapper ----------------
def sliding_window_attention(q, k, v, *, window, block_q=512, block_k=128):
    """q, k: (BH, L, D); v: (BH, L, Dv). Returns (BH, L, Dv) in q.dtype."""
    BH, L, D = q.shape
    Dv = v.shape[-1]
    assert L % 128 == 0, "sequence length must be a multiple of 128"
    block_k = min(block_k, 128)

    # Largest q tile <= block_q that divides L and is a multiple of block_k.
    bq = min(block_q, L)
    while bq > block_k and L % bq != 0:
        bq //= 2
    assert L % bq == 0 and bq % block_k == 0

    r = bq // block_k
    n_q_blocks = L // bq
    n_kv_blocks = L // block_k
    # kv tiles that can intersect one q tile's causal window band.
    kv_steps = min(r + pl.cdiv(window - 1, block_k), n_kv_blocks)

    sm_scale = 1.0 / math.sqrt(D)   # flex_attention default scale

    # Cast K/V once: halves the amplified kv HBM stream and guarantees the
    # bf16 MXU path for both matmuls (f32 accumulation in the kernel).
    k = k.astype(_COMPUTE_DTYPE)
    v = v.astype(_COMPUTE_DTYPE)

    kernel = functools.partial(
        _swa_fwd_kernel, sm_scale=sm_scale, window=window,
        block_q=bq, block_k=block_k, kv_steps=kv_steps, r=r)

    q_map = lambda b, i, j: (b, i, 0)
    kv_map = lambda b, i, j: (b, jnp.maximum(i * r + (r - kv_steps) + j, 0), 0)

    kv_tile_bytes = block_k * (D + Dv) * k.dtype.itemsize
    cost = pl.CostEstimate(
        flops=int(2 * BH * n_q_blocks * kv_steps * bq * block_k * (D + Dv)),
        transcendentals=int(BH * n_q_blocks * kv_steps * bq * block_k),
        bytes_accessed=int(
            BH * n_q_blocks * kv_steps * kv_tile_bytes          # kv re-read amplification
            + q.size * q.dtype.itemsize
            + BH * L * Dv * q.dtype.itemsize),
    )

    return pl.pallas_call(
        kernel,
        out_shape=jax.ShapeDtypeStruct((BH, L, Dv), q.dtype),
        grid_spec=pltpu.PrefetchScalarGridSpec(
            num_scalar_prefetch=0,
            grid=(BH, n_q_blocks, kv_steps),
            in_specs=[
                pl.BlockSpec((1, bq, D), q_map),
                pl.BlockSpec((1, block_k, D), kv_map),
                pl.BlockSpec((1, block_k, Dv), kv_map),
            ],
            out_specs=pl.BlockSpec((1, bq, Dv), q_map),
            scratch_shapes=[
                pltpu.VMEM((bq, D), _COMPUTE_DTYPE),      # scaled bf16 q tile
                pltpu.VMEM((bq, 128), jnp.float32),       # running max (lane-dense)
                pltpu.VMEM((bq, 128), jnp.float32),       # running denominator
                pltpu.VMEM((bq, Dv), jnp.float32),        # output accumulator
            ],
        ),
        compiler_params=pltpu.CompilerParams(
            dimension_semantics=("parallel", "parallel", "arbitrary"),
        ),
        cost_estimate=cost,
    )(q, k, v)


# ---------------- module-equivalent wrapper ----------------
class SlidingWindowAttention:
    def __init__(self, config):
        self.window_size = config.window_size
        self.n_heads = config.num_attention_heads
        self.effective_window = _W_SIZE_TO_EFFECTIVE[self.window_size]

    def __call__(self, queries, keys, values, attn_mask=None, dropout_p=0.0,
                 causal=False):
        # TODO(synk): attn_mask / dropout_p / causal are accepted but unused --
        # the PyTorch reference forward never passes them to flex_attention.
        batch_shape = queries.shape[:-2]
        L = queries.shape[-2]
        D = queries.shape[-1]
        Dv = values.shape[-1]

        q = queries.reshape(-1, L, D)
        k = keys.reshape(-1, L, D)
        v = values.reshape(-1, L, Dv)

        out = sliding_window_attention(q, k, v, window=self.effective_window)
        return out.reshape(*batch_shape, L, Dv)


# ---------------- pure-JAX reference (mirrors flex_attention + block mask) ----------------
def _reference(queries, keys, values, *, n_heads, window_size):
    W = _W_SIZE_TO_EFFECTIVE[window_size]
    batch_shape = queries.shape[:-2]
    B, L, D = queries.shape[0], queries.shape[-2], queries.shape[-1]
    q = queries.reshape(B, n_heads, L, D).astype(jnp.float32)
    k = keys.reshape(B, n_heads, L, D).astype(jnp.float32)
    v = values.reshape(B, n_heads, L, D).astype(jnp.float32)
    s = jnp.einsum("bhqd,bhkd->bhqk", q, k) / math.sqrt(D)
    qi = jnp.arange(L)[:, None]
    ki = jnp.arange(L)[None, :]
    mask = (qi >= ki) & (qi - ki < W)
    s = jnp.where(mask, s, -jnp.inf)
    p = jax.nn.softmax(s, axis=-1)
    o = jnp.einsum("bhqk,bhkd->bhqd", p, v)
    return o.reshape(*batch_shape, L, D).astype(queries.dtype)


if __name__ == "__main__":
    root = jax.random.PRNGKey(0)
    k1q, k1k, k1v, k2q, k2k, k2v = jax.random.split(root, 6)

    # --- Check 1: module path (window 64; exercises band edges & clamped steps) ---
    config = SimpleNamespace(window_size=64, num_attention_heads=4)
    module = SlidingWindowAttention(config)
    B, H, L, D = 2, 4, 256, 128   # B*H even for 2-TC chips; lane-dense head dim
    queries = jax.random.normal(k1q, (B, H, L, D), dtype=jnp.float32)
    keys_ = jax.random.normal(k1k, (B, H, L, D), dtype=jnp.float32)
    values = jax.random.normal(k1v, (B, H, L, D), dtype=jnp.float32)

    out = jax.block_until_ready(
        module(queries, keys_, values, attn_mask=None, dropout_p=0.0, causal=False))
    ref = _reference(queries, keys_, values, n_heads=H,
                     window_size=config.window_size)
    assert out.shape == ref.shape, (out.shape, ref.shape)
    err1 = float(jnp.max(jnp.abs(out - ref)))
    assert jnp.allclose(out, ref, rtol=2e-2, atol=2e-2), \
        f"check1 mismatch vs reference (max abs err {err1})"

    # --- Check 2: interior fast path + skipped negative band steps (window 256) ---
    BH2, L2, D2, W2 = 2, 512, 128, 256
    q2 = jax.random.normal(k2q, (BH2, L2, D2), dtype=jnp.float32)
    k2 = jax.random.normal(k2k, (BH2, L2, D2), dtype=jnp.float32)
    v2 = jax.random.normal(k2v, (BH2, L2, D2), dtype=jnp.float32)
    out2 = jax.block_until_ready(
        sliding_window_attention(q2, k2, v2, window=W2, block_q=128))
    ref2 = _reference(q2, k2, v2, n_heads=1, window_size=W2)
    err2 = float(jnp.max(jnp.abs(out2 - ref2)))
    assert jnp.allclose(out2, ref2, rtol=2e-2, atol=2e-2), \
        f"check2 mismatch vs reference (max abs err {err2})"

    print("KERNEL_OK")
</pallas_src>

<mosaic_0001>
module attributes {stable_mosaic.version = 11 : i64} {
  func.func @_swa_fwd_kernel(%arg0: i32, %arg1: i32, %arg2: i32, %arg3: memref<1x256x128xf32, #tpu.memory_space<vmem>>, %arg4: memref<1x128x128xbf16, #tpu.memory_space<vmem>>, %arg5: memref<1x128x128xbf16, #tpu.memory_space<vmem>>, %arg6: memref<1x256x128xf32, #tpu.memory_space<vmem>>, %arg7: memref<256x128xbf16, #tpu.memory_space<vmem>>, %arg8: memref<256x128xf32, #tpu.memory_space<vmem>>, %arg9: memref<256x128xf32, #tpu.memory_space<vmem>>, %arg10: memref<256x128xf32, #tpu.memory_space<vmem>>) attributes {dimension_semantics = [#tpu.dimension_semantics<parallel>, #tpu.dimension_semantics<parallel>, #tpu.dimension_semantics<arbitrary>], iteration_bounds = array<i64: 8, 1, 2>, scalar_prefetch = 0 : i64, scratch_operands = 4 : i64, tpu.core_type = #tpu.core_type<tc>, window_params = [{transform_indices = @transform_0, window_bounds = array<i64: 1, 256, 128>}, {transform_indices = @transform_1, window_bounds = array<i64: 1, 128, 128>}, {transform_indices = @transform_2, window_bounds = array<i64: 1, 128, 128>}, {transform_indices = @transform_3, window_bounds = array<i64: 1, 256, 128>}]} {
    %c0_i32 = arith.constant 0 : i32
    %0 = arith.cmpi eq, %arg2, %c0_i32 : i32
    %1 = arith.extui %0 : i1 to i32
    %c0_i32_0 = arith.constant 0 : i32
    %2 = arith.cmpi ne, %1, %c0_i32_0 : i32
    scf.if %2 {
      %c0 = arith.constant 0 : index
      %c0_5 = arith.constant 0 : index
      %c0_6 = arith.constant 0 : index
      %12 = vector.load %arg3[%c0, %c0_5, %c0_6] : memref<1x256x128xf32, #tpu.memory_space<vmem>>, vector<1x256x128xf32>
      %13 = vector.shape_cast %12 : vector<1x256x128xf32> to vector<256x128xf32>
      %cst = arith.constant 0.0883883461 : f32
      %14 = vector.broadcast %cst : f32 to vector<256x128xf32>
      %15 = arith.mulf %13, %14 : vector<256x128xf32>
      %16 = arith.truncf %15 : vector<256x128xf32> to vector<256x128xbf16>
      %c0_7 = arith.constant 0 : index
      %c0_8 = arith.constant 0 : index
      %17 = vector.load %arg7[%c0_7, %c0_8] : memref<256x128xbf16, #tpu.memory_space<vmem>>, vector<256x128xbf16>
      tpu.vector_store %arg7[%c0_7, %c0_8], %16 {strides = array<i32>} : memref<256x128xbf16, #tpu.memory_space<vmem>>, vector<256x128xbf16>,
      %cst_9 = arith.constant -2.38197633E+38 : f32
      %18 = vector.broadcast %cst_9 : f32 to vector<256x128xf32>
      %c0_10 = arith.constant 0 : index
      %c0_11 = arith.constant 0 : index
      %19 = vector.load %arg8[%c0_10, %c0_11] : memref<256x128xf32, #tpu.memory_space<vmem>>, vector<256x128xf32>
      tpu.vector_store %arg8[%c0_10, %c0_11], %18 {strides = array<i32>} : memref<256x128xf32, #tpu.memory_space<vmem>>, vector<256x128xf32>,
      %cst_12 = arith.constant 0.000000e+00 : f32
      %20 = vector.broadcast %cst_12 : f32 to vector<256x128xf32>
      %c0_13 = arith.constant 0 : index
      %c0_14 = arith.constant 0 : index
      %21 = vector.load %arg9[%c0_13, %c0_14] : memref<256x128xf32, #tpu.memory_space<vmem>>, vector<256x128xf32>
      tpu.vector_store %arg9[%c0_13, %c0_14], %20 {strides = array<i32>} : memref<256x128xf32, #tpu.memory_space<vmem>>, vector<256x128xf32>,
      %cst_15 = arith.constant 0.000000e+00 : f32
      %22 = vector.broadcast %cst_15 : f32 to vector<256x128xf32>
      %c0_16 = arith.constant 0 : index
      %c0_17 = arith.constant 0 : index
      %23 = vector.load %arg10[%c0_16, %c0_17] : memref<256x128xf32, #tpu.memory_space<vmem>>, vector<256x128xf32>
      tpu.vector_store %arg10[%c0_16, %c0_17], %22 {strides = array<i32>} : memref<256x128xf32, #tpu.memory_space<vmem>>, vector<256x128xf32>,
    } else {
    }
    %c2_i32 = arith.constant 2 : i32
    %3 = arith.muli %arg1, %c2_i32 : i32
    %c0_i32_1 = arith.constant 0 : i32
    %4 = arith.addi %3, %c0_i32_1 : i32
    %5 = arith.addi %4, %arg2 : i32
    %c0_i32_2 = arith.constant 0 : i32
    %6 = arith.cmpi sge, %5, %c0_i32_2 : i32
    %7 = arith.extui %6 : i1 to i32
    %c0_i32_3 = arith.constant 0 : i32
    %8 = arith.cmpi ne, %7, %c0_i32_3 : i32
    scf.if %8 {
      %c0 = arith.constant 0 : index
      %c0_5 = arith.constant 0 : index
      %c0_6 = arith.constant 0 : index
      %12 = vector.load %arg4[%c0, %c0_5, %c0_6] : memref<1x128x128xbf16, #tpu.memory_space<vmem>>, vector<1x128x128xbf16>
      %13 = vector.shape_cast %12 : vector<1x128x128xbf16> to vector<128x128xbf16>
      %c0_7 = arith.constant 0 : index
      %c0_8 = arith.constant 0 : index
      %c0_9 = arith.constant 0 : index
      %14 = vector.load %arg5[%c0_7, %c0_8, %c0_9] : memref<1x128x128xbf16, #tpu.memory_space<vmem>>, vector<1x128x128xbf16>
      %15 = vector.shape_cast %14 : vector<1x128x128xbf16> to vector<128x128xbf16>
      %c0_10 = arith.constant 0 : index
      %c0_11 = arith.constant 0 : index
      %16 = vector.load %arg7[%c0_10, %c0_11] : memref<256x128xbf16, #tpu.memory_space<vmem>>, vector<256x128xbf16>
      %cst = arith.constant dense<0.000000e+00> : vector<256x128xf32>
      %17 = tpu.matmul %16, %13, %cst {dimension_numbers = #tpu.dot_dimension_numbers<[1], [1], [0], [0], [0, 0, 1, 0], [], []>} : vector<256x128xbf16>, vector<128x128xbf16>, vector<256x128xf32> -> vector<256x128xf32>
      %c256_i32 = arith.constant 256 : i32
      %18 = arith.muli %arg1, %c256_i32 : i32
      %c128_i32 = arith.constant 128 : i32
      %19 = arith.muli %5, %c128_i32 : i32
      %20 = arith.subi %18, %19 : i32
      %c127_i32 = arith.constant 127 : i32
      %21 = arith.cmpi sge, %20, %c127_i32 : i32
      %c256_i32_12 = arith.constant 256 : i32
      %22 = arith.addi %18, %c256_i32_12 : i32
      %c1_i32_13 = arith.constant 1 : i32
      %23 = arith.subi %22, %c1_i32_13 : i32
      %24 = arith.subi %23, %19 : i32
      %c64_i32 = arith.constant 64 : i32
      %25 = arith.cmpi slt, %24, %c64_i32 : i32
      %26 = arith.andi %21, %25 : i1
      %27 = arith.extui %26 : i1 to i32
      %c0_i32_14 = arith.constant 0 : i32
      %28 = arith.cmpi ne, %27, %c0_i32_14 : i32
      scf.if %28 {
        %c0_16 = arith.constant 0 : index
        %c0_17 = arith.constant 0 : index
        %32 = vector.load %arg8[%c0_16, %c0_17] : memref<256x128xf32, #tpu.memory_space<vmem>>, vector<256x128xf32>
        %cst_18 = arith.constant dense<0xFF800000> : vector<256xf32>
        %33 = vector.multi_reduction <maximumf>, %17, %cst_18 [1] : vector<256x128xf32> to vector<256xf32>
        %34 = vector.shape_cast %33 : vector<256xf32> to vector<256x1xf32>
        %35 = vector.broadcast %34 : vector<256x1xf32> to vector<256x128xf32>
        %36 = arith.maximumf %32, %35 : vector<256x128xf32>
        %37 = arith.subf %32, %36 : vector<256x128xf32>
        %38 = math.exp %37 : vector<256x128xf32>
        %39 = arith.subf %17, %36 : vector<256x128xf32>
        %40 = math.exp %39 : vector<256x128xf32>
        %c0_19 = arith.constant 0 : index
        %c0_20 = arith.constant 0 : index
        %41 = vector.load %arg9[%c0_19, %c0_20] : memref<256x128xf32, #tpu.memory_space<vmem>>, vector<256x128xf32>
        %42 = arith.mulf %38, %41 : vector<256x128xf32>
        %cst_21 = arith.constant dense<0.000000e+00> : vector<256xf32>
        %43 = vector.multi_reduction <add>, %40, %cst_21 [1] : vector<256x128xf32> to vector<256xf32>
        %44 = vector.shape_cast %43 : vector<256xf32> to vector<256x1xf32>
        %45 = vector.broadcast %44 : vector<256x1xf32> to vector<256x128xf32>
        %46 = arith.addf %42, %45 : vector<256x128xf32>
        %c0_22 = arith.constant 0 : index
        %c0_23 = arith.constant 0 : index
        %47 = vector.load %arg9[%c0_22, %c0_23] : memref<256x128xf32, #tpu.memory_space<vmem>>, vector<256x128xf32>
        tpu.vector_store %arg9[%c0_22, %c0_23], %46 {strides = array<i32>} : memref<256x128xf32, #tpu.memory_space<vmem>>, vector<256x128xf32>,
        %48 = arith.truncf %40 : vector<256x128xf32> to vector<256x128xbf16>
        %cst_24 = arith.constant dense<0.000000e+00> : vector<256x128xf32>
        %49 = tpu.matmul %48, %15, %cst_24 {dimension_numbers = #tpu.dot_dimension_numbers<[1], [0], [0], [1], [0, 0, 1, 1], [], []>} : vector<256x128xbf16>, vector<128x128xbf16>, vector<256x128xf32> -> vector<256x128xf32>
        %c0_25 = arith.constant 0 : index
        %c0_26 = arith.constant 0 : index
        %50 = vector.load %arg10[%c0_25, %c0_26] : memref<256x128xf32, #tpu.memory_space<vmem>>, vector<256x128xf32>
        %51 = arith.mulf %38, %50 : vector<256x128xf32>
        %52 = arith.addf %51, %49 : vector<256x128xf32>
        %c0_27 = arith.constant 0 : index
        %c0_28 = arith.constant 0 : index
        %53 = vector.load %arg10[%c0_27, %c0_28] : memref<256x128xf32, #tpu.memory_space<vmem>>, vector<256x128xf32>
        tpu.vector_store %arg10[%c0_27, %c0_28], %52 {strides = array<i32>} : memref<256x128xf32, #tpu.memory_space<vmem>>, vector<256x128xf32>,
        %c0_29 = arith.constant 0 : index
        %c0_30 = arith.constant 0 : index
        %54 = vector.load %arg8[%c0_29, %c0_30] : memref<256x128xf32, #tpu.memory_space<vmem>>, vector<256x128xf32>
        tpu.vector_store %arg8[%c0_29, %c0_30], %36 {strides = array<i32>} : memref<256x128xf32, #tpu.memory_space<vmem>>, vector<256x128xf32>,
      } else {
      }
      %true = arith.constant true
      %29 = arith.xori %26, %true : i1
      %30 = arith.extui %29 : i1 to i32
      %c0_i32_15 = arith.constant 0 : i32
      %31 = arith.cmpi ne, %30, %c0_i32_15 : i32
      scf.if %31 {
        %32 = tpu.iota {dimensions = array<i32: 0>} : vector<256x128xi32>
        %33 = tpu.iota {dimensions = array<i32: 1>} : vector<256x128xi32>
        %34 = arith.subi %32, %33 : vector<256x128xi32>
        %35 = arith.subi %18, %19 : i32
        %36 = vector.broadcast %35 : i32 to vector<256x128xi32>
        %37 = arith.addi %34, %36 : vector<256x128xi32>
        %c64_i32_16 = arith.constant 64 : i32
        %38 = vector.broadcast %c64_i32_16 : i32 to vector<256x128xi32>
        %39 = arith.cmpi ult, %37, %38 : vector<256x128xi32>
        %cst_17 = arith.constant -2.38197633E+38 : f32
        %40 = vector.broadcast %cst_17 : f32 to vector<256x128xf32>
        %41 = arith.select %39, %17, %40 : vector<256x128xi1>, vector<256x128xf32>
        %c0_18 = arith.constant 0 : index
        %c0_19 = arith.constant 0 : index
        %42 = vector.load %arg8[%c0_18, %c0_19] : memref<256x128xf32, #tpu.memory_space<vmem>>, vector<256x128xf32>
        %cst_20 = arith.constant dense<0xFF800000> : vector<256xf32>
        %43 = vector.multi_reduction <maximumf>, %41, %cst_20 [1] : vector<256x128xf32> to vector<256xf32>
        %44 = vector.shape_cast %43 : vector<256xf32> to vector<256x1xf32>
        %45 = vector.broadcast %44 : vector<256x1xf32> to vector<256x128xf32>
        %46 = arith.maximumf %42, %45 : vector<256x128xf32>
        %47 = arith.subf %42, %46 : vector<256x128xf32>
        %48 = math.exp %47 : vector<256x128xf32>
        %49 = arith.subf %41, %46 : vector<256x128xf32>
        %50 = math.exp %49 : vector<256x128xf32>
        %c0_21 = arith.constant 0 : index
        %c0_22 = arith.constant 0 : index
        %51 = vector.load %arg9[%c0_21, %c0_22] : memref<256x128xf32, #tpu.memory_space<vmem>>, vector<256x128xf32>
        %52 = arith.mulf %48, %51 : vector<256x128xf32>
        %cst_23 = arith.constant dense<0.000000e+00> : vector<256xf32>
        %53 = vector.multi_reduction <add>, %50, %cst_23 [1] : vector<256x128xf32> to vector<256xf32>
        %54 = vector.shape_cast %53 : vector<256xf32> to vector<256x1xf32>
        %55 = vector.broadcast %54 : vector<256x1xf32> to vector<256x128xf32>
        %56 = arith.addf %52, %55 : vector<256x128xf32>
        %c0_24 = arith.constant 0 : index
        %c0_25 = arith.constant 0 : index
        %57 = vector.load %arg9[%c0_24, %c0_25] : memref<256x128xf32, #tpu.memory_space<vmem>>, vector<256x128xf32>
        tpu.vector_store %arg9[%c0_24, %c0_25], %56 {strides = array<i32>} : memref<256x128xf32, #tpu.memory_space<vmem>>, vector<256x128xf32>,
        %58 = arith.truncf %50 : vector<256x128xf32> to vector<256x128xbf16>
        %cst_26 = arith.constant dense<0.000000e+00> : vector<256x128xf32>
        %59 = tpu.matmul %58, %15, %cst_26 {dimension_numbers = #tpu.dot_dimension_numbers<[1], [0], [0], [1], [0, 0, 1, 1], [], []>} : vector<256x128xbf16>, vector<128x128xbf16>, vector<256x128xf32> -> vector<256x128xf32>
        %c0_27 = arith.constant 0 : index
        %c0_28 = arith.constant 0 : index
        %60 = vector.load %arg10[%c0_27, %c0_28] : memref<256x128xf32, #tpu.memory_space<vmem>>, vector<256x128xf32>
        %61 = arith.mulf %48, %60 : vector<256x128xf32>
        %62 = arith.addf %61, %59 : vector<256x128xf32>
        %c0_29 = arith.constant 0 : index
        %c0_30 = arith.constant 0 : index
        %63 = vector.load %arg10[%c0_29, %c0_30] : memref<256x128xf32, #tpu.memory_space<vmem>>, vector<256x128xf32>
        tpu.vector_store %arg10[%c0_29, %c0_30], %62 {strides = array<i32>} : memref<256x128xf32, #tpu.memory_space<vmem>>, vector<256x128xf32>,
        %c0_31 = arith.constant 0 : index
        %c0_32 = arith.constant 0 : index
        %64 = vector.load %arg8[%c0_31, %c0_32] : memref<256x128xf32, #tpu.memory_space<vmem>>, vector<256x128xf32>
        tpu.vector_store %arg8[%c0_31, %c0_32], %46 {strides = array<i32>} : memref<256x128xf32, #tpu.memory_space<vmem>>, vector<256x128xf32>,
      } else {
      }
    } else {
    }
    %c1_i32 = arith.constant 1 : i32
    %9 = arith.cmpi eq, %arg2, %c1_i32 : i32
    %10 = arith.extui %9 : i1 to i32
    %c0_i32_4 = arith.constant 0 : i32
    %11 = arith.cmpi ne, %10, %c0_i32_4 : i32
    scf.if %11 {
      %c0 = arith.constant 0 : index
      %c0_5 = arith.constant 0 : index
      %12 = vector.load %arg9[%c0, %c0_5] : memref<256x128xf32, #tpu.memory_space<vmem>>, vector<256x128xf32>
      %13 = tpu.reciprocal %12 {approx = true} : vector<256x128xf32> -> vector<256x128xf32>
      %c0_6 = arith.constant 0 : index
      %c0_7 = arith.constant 0 : index
      %14 = vector.load %arg10[%c0_6, %c0_7] : memref<256x128xf32, #tpu.memory_space<vmem>>, vector<256x128xf32>
      %15 = arith.mulf %14, %13 : vector<256x128xf32>
      %c0_8 = arith.constant 0 : index
      %c0_9 = arith.constant 0 : index
      %c0_10 = arith.constant 0 : index
      %16 = vector.load %arg6[%c0_8, %c0_9, %c0_10] : memref<1x256x128xf32, #tpu.memory_space<vmem>>, vector<1x256x128xf32>
      %17 = vector.shape_cast %16 : vector<1x256x128xf32> to vector<256x128xf32>
      %18 = vector.shape_cast %15 : vector<256x128xf32> to vector<1x256x128xf32>
      tpu.vector_store %arg6[%c0_8, %c0_9, %c0_10], %18 {strides = array<i32>} : memref<1x256x128xf32, #tpu.memory_space<vmem>>, vector<1x256x128xf32>,
    } else {
    }
    return
  }
  func.func @transform_0(%arg0: i32, %arg1: i32, %arg2: i32) -> (i32, i32, i32) {
    %c0_i32 = arith.constant 0 : i32
    %c0_i32_0 = arith.constant 0 : i32
    return %arg0, %arg1, %c0_i32 : i32, i32, i32
  }
  func.func @transform_1(%arg0: i32, %arg1: i32, %arg2: i32) -> (i32, i32, i32) {
    %c2_i32 = arith.constant 2 : i32
    %0 = arith.muli %arg1, %c2_i32 : i32
    %c0_i32 = arith.constant 0 : i32
    %1 = arith.addi %0, %c0_i32 : i32
    %2 = arith.addi %1, %arg2 : i32
    %c0_i32_0 = arith.constant 0 : i32
    %3 = arith.maxsi %2, %c0_i32_0 : i32
    %c0_i32_1 = arith.constant 0 : i32
    %c0_i32_2 = arith.constant 0 : i32
    return %arg0, %3, %c0_i32_1 : i32, i32, i32
  }
  func.func @transform_2(%arg0: i32, %arg1: i32, %arg2: i32) -> (i32, i32, i32) {
    %c2_i32 = arith.constant 2 : i32
    %0 = arith.muli %arg1, %c2_i32 : i32
    %c0_i32 = arith.constant 0 : i32
    %1 = arith.addi %0, %c0_i32 : i32
    %2 = arith.addi %1, %arg2 : i32
    %c0_i32_0 = arith.constant 0 : i32
    %3 = arith.maxsi %2, %c0_i32_0 : i32
    %c0_i32_1 = arith.constant 0 : i32
    %c0_i32_2 = arith.constant 0 : i32
    return %arg0, %3, %c0_i32_1 : i32, i32, i32
  }
  func.func @transform_3(%arg0: i32, %arg1: i32, %arg2: i32) -> (i32, i32, i32) {
    %c0_i32 = arith.constant 0 : i32
    %c0_i32_0 = arith.constant 0 : i32
    return %arg0, %arg1, %c0_i32 : i32, i32, i32
  }
}

</mosaic_0001>

<bundles_post_ra>
// kernel: tpu_custom_call.1
= control target key start
LH: loop header
LB: loop body
LE: loop exit
PB: predicated region body
PF: predicated region fallthrough
CT: control target
= control target key end

     0   :  { %s6211_s0 = inlined_call_operand.hbm [shape: f32[8,256,128], index: 0, kind: input, shape index: {}]   ;;  %s6212_s1 = inlined_call_operand.hbm [shape: bf16[8,256,128], index: 1, kind: input, shape index: {}]   ;;  %s6213_s2 = inlined_call_operand.hbm [shape: bf16[8,256,128], index: 2, kind: input, shape index: {}]   ;;  %s6214_s3 = inlined_call_operand.hbm [shape: f32[8,256,128], index: 3, kind: output, shape index: {}]  }
   0x1   :  { %6331 = sst [smem:[#allocation125_spill]] %s6211_s0 }
   0x2   :  { %6332 = sst [smem:[#allocation126_spill]] %s6212_s1 }
   0x3   :  { %8 = vsyncpa [#allocation7], 0 }
   0x4   :  { %10 = vsyncpa [#allocation7 + $0x1], 0 }
   0x5   :  { %11 = vsyncpa [#allocation10], 0 }
   0x6   :  { %13 = vsyncpa [#allocation10 + $0x1], 0 }
   0x7   :  { %14 = vsyncpa [#allocation8], 0 }
   0x8   :  { %16 = vsyncpa [#allocation8 + $0x1], 0  ;;  %s4106_s12 = smov 0   ;;  %s4108_s13 = smov 0  }
   0x9   :  { %s4110_s14 = smov 0   ;;  %s4112_s15 = smov 0  }
   0xa   :  { %s4114_s16 = smov 0   ;;  %s4116_s17 = smov 0  }
   0xb   :  { %s4118_s18 = smov 0   ;;  %s4120_s19 = smov 0  }
   0xc   :  { %s4122_s20 = smov 0   ;;  %s4124_s21 = smov 0  }
   0xd   :  { %s4126_s22 = smov 0  }
   0xe LB: > { %6333 = sst [smem:[#allocation16_spill]] %s4052_s17  ;;  %s4162_s23 = sadd.s32 4294967295, %s4072_s22   ;;  %s4072_s22 = sphi %s4126_s22, %s22_s22   ;;  %s4068_s21 = sphi %s4124_s21, %s6644_s21   ;;  %s4064_s20 = sphi %s4122_s20, %s6637_s20   ;;  %s4060_s19 = sphi %s4120_s19, %s6636_s19   ;;  %s4056_s18 = sphi %s4118_s18, %s6635_s18   ;;  %s4052_s17 = sphi %s4116_s17, %s6634_s17   ;;  %s4048_s16 = sphi %s4114_s16, %s6643_s16   ;;  %s4044_s15 = sphi %s4112_s15, %s6642_s15   ;;  %s4040_s14 = sphi %s4110_s14, %s6641_s14   ;;  %s4036_s13 = sphi %s4108_s13, %s6640_s13   ;;  %s4032_s12 = sphi %s4106_s12, %s6639_s12  }
   0xf   : > { %6334 = sst [smem:[#allocation17_spill]] %s4064_s20  ;;  %s34_s24 = sadd.s32 1, %s4064_s20 }
  0x10   : > { %6335 = sst [smem:[#allocation18_spill]] %s4068_s21  ;;  %p35_p0 = scmp.ge.s32.totalorder %s34_s24, 2 }
  0x11   : > { %s41_s25 = sadd.s32 1, %s4068_s21  ;;  %p6220_p1 = scmp.eq.s32.totalorder %s4072_s22, 0 }
  0x12   : > { %p6219_p2 = scmp.eq.s32.totalorder %s4162_s23, 0  ;;  %s6646_s24 = smov (%p35_p0, %s34_s24), 0 }
  0x13   : > { %6336 = sst [smem:[#allocation19_spill]] %s6646_s24  ;;  %s6648_s25 = smov (!%p35_p0, %s41_s25), %s4068_s21 }
  0x14   : > { %p75_p3 = scmp.gt.s32.totalorder %s4064_s20, 0  ;;  %p79_p4 = scmp.gt.s32.totalorder %s6646_s24, 0 }
  0x15   : > { %p43_p5 = scmp.ge.s32.totalorder %s6648_s25, 8  ;;  %s86_s26 = sadd.s32 1, %s4040_s14 }
  0x16   : > { %s76_s27 = scalar_select %p75_p3, %s4064_s20, 0 }
  0x17   : > { %s6650_s25 = smov (%p43_p5, %s6648_s25), 0  ;;  %p93_p6 = scmp.ne.s32.totalorder %s4040_s14, %s4036_s13 }
  0x18   : > { %6337 = sst [smem:[#allocation20_spill]] %s6650_s25  ;;  %s4180_s29 = ssub.s32 %s4068_s21, %s6650_s25 }
  0x19   : > { %s80_s28 = scalar_select %p79_p4, %s6646_s24, 0 }
  0x1a   : > { %p4188_p8 = por %p93_p6, %p6220_p1  ;;  %p99_p10 = scmp.ne.s32.totalorder %s4036_s13, %s4032_s12 }
  0x1b   : > { %s82_s30 = ssub.s32 %s76_s27, %s80_s28  ;;  %p6218_p11 = scmp.lt.s32.totalorder %s4072_s22, 16 }
  0x1c   : > { %s83_s4 = sor.u32 %s82_s30, %s4180_s29  ;;  %p4200_p12 = por %p99_p10, %p6219_p2 }
  0x1d   : > { %p84_p9 = scmp.eq.s32.totalorder %s83_s4, 0  ;;  %s210_s8 = sand.u32 1, %s4072_s22  }
  0x1e   : > { %s6340_s7 = scalar_select %p4200_p12, 1, 0 }
  0x1f   : > { %s4196_s6 = scalar_select %p84_p9, %s4040_s14, %s86_s26  }
  0x20   : > { %s212_s9 = sand.u32 1, %s4040_s14   ;;  %s3097_s11 = sshll.u32 %s76_s27, 4 }
  0x21   : > { %6339 = sst [smem:[#allocation21_spill]] %s4196_s6  ;;  %s4206_s10 = sshll.u32 %s212_s9, 6 }
  0x22   : > { %s3098_s28 = sshll.u32 %s4068_s21, 5  ;;  %s214_s12 = scalar_lea.vmem [#allocation9], %s4206_s10 }
  0x23   : > { %s4209_s30 = sadd.s32 %s3098_s28, %s3097_s11  ;;  %s227_s4 = sshll.u32 %s214_s12, 4  ;;  %s4213_s4 = int_to_ptr.vmem [resolvable:$true] %s227_s4 }
  0x24   : > { %s3099_s26 = sshll.u32 %s4209_s30, 6  ;;  %s6341_s1 = sld [smem:[#allocation126_spill]] }
  0x25   : > { %p4226_p13 = pnand %p6218_p11, %p4188_p8  ;;  %s4230_s9 = scalar_lea.sflag [#allocation10], %s210_s8 }
  0x27   : > { %p6221_p3 = pneg %p4226_p13 }
  0x2a   : > { %s4220_s20 = scalar_lea.hbm %s6341_s1, %s3099_s26  ;;  %s3861_s5 = scalar_lea.hbm %s6341_s1, 16384 }
  0x2b   : > { %s3856_s11 = scalar_lea.hbm %s4220_s20, 1024  ;;  %p3862_p6 = scmp.lt.u32.totalorder %s4220_s20, %s6341_s1 }
  0x2c   : > { %p3857_p0 = scmp.ne.s32.totalorder %s4220_s20, %s3856_s11  ;;  %p3863_p8 = scmp.lt.u32.totalorder %s3861_s5, %s3856_s11 }
  0x2d   : > { %p3865_p10 = scmp.lt.u32.totalorder %s3856_s11, %s4220_s20 }
  0x2e   : > { %p3859_p4 = pnand %p6221_p3, %p3857_p0  ;;  %p3864_p9 = por %p3863_p8, %p3862_p6 }
  0x30   : > { %p3860_p5 = pneg %p3859_p4  ;;  %p3866_p11 = por %p3865_p10, %p3864_p9 }
  0x32   : > { %p3867_p2 = pnand %p3866_p11, %p3860_p5 }
  0x34   : > { %3870 = shalt.err (!%p3867_p2)
}
  0x35   : > { %s3871_s8 = scalar_lea.vmem %s4213_s4, 1024  ;;  %s4074_s24 = smov [#allocation9]  }
  0x36   : > { %p3872_p0 = scmp.ne.s32.totalorder %s4213_s4, %s3871_s8  ;;  %s3876_s25 = sshll.u32 %s4074_s24, 4  ;;  %s3877_s25 = int_to_ptr.vmem [resolvable:$false] %s3876_s25 }
  0x37   : > { %s3878_s28 = scalar_lea.vmem %s3877_s25, 2048  ;;  %p3879_p7 = scmp.lt.s32.totalorder %s4213_s4, %s3877_s25 }
  0x38   : > { %p3874_p4 = pnand %p3872_p0, %p6221_p3  ;;  %p3880_p6 = scmp.lt.s32.totalorder %s3878_s28, %s3871_s8 }
  0x3a   : > { %p3875_p1 = pneg %p3874_p4  ;;  %p3881_p8 = por %p3880_p6, %p3879_p7 }
  0x3c   : > { %p3882_p9 = pnand %p3881_p8, %p3875_p1 }
  0x3e   : > { %3885 = shalt.err (!%p3882_p9)
}
  0x3f   : > { %s6222_s11 = smov 64   ;;  %s6223_s5 = smov 4  }
  0x40   : > { %3422 = dma.hbm_to_vmem [thread:$0]  (!%p4226_p13), %s4220_s20, 1024, %s4213_s4, %s4230_s9, %s6222_s11, %s6222_s11, %s6223_s5  }
  0x41   : > { %s4266_s24 = scalar_lea.hbm %s6213_s2, %s3099_s26  ;;  %s241_s25 = scalar_lea.vmem [#allocation11], %s4206_s10 }
  0x42   : > { %s254_s28 = sshll.u32 %s241_s25, 4  ;;  %p3104_p1 = scmp.ge.s32.totalorder %s4072_s22, 1  ;;  %s4269_s28 = int_to_ptr.vmem [resolvable:$true] %s254_s28 }
  0x43   : > { %p262_p2 = scmp.lt.s32.totalorder %s4072_s22, 17  ;;  %s3090_s20 = sadd.s32 4294967294, %s4072_s22  }
  0x44   : > { %s50_s30 = sadd.s32 1, %s4052_s17  ;;  %p6344_p11 = scmp.eq.s32.totalorder %s4180_s29, 0 }
  0x45   : > { %p4273_p7 = pnand %p3104_p1, %p262_p2  ;;  %p57_p5 = scmp.ne.s32.totalorder %s4052_s17, %s4048_s16 }
  0x46   : > { %s4282_s4 = scalar_select %p6344_p11, %s4052_s17, %s50_s30  }
  0x47   : > { %s6343_s1 = scalar_select %p4273_p7, 1, 0 }
  0x48   : > { %6345 = sst [smem:[#allocation22_spill]] %s4282_s4  ;;  %p63_p10 = scmp.ne.s32.totalorder %s4048_s16, %s4044_s15 }
  0x49   : > { %p161_p0 = scmp.eq.s32.totalorder %s4162_s23, 15  ;;  %p167_p4 = scmp.eq.s32.totalorder %s3090_s20, 15 }
  0x4a   : > { %p6346_p6 = scmp.eq.s32.totalorder %s4072_s22, 0  ;;  %p6347_p9 = scmp.eq.s32.totalorder %s4162_s23, 0 }
  0x4b   : > { %p4297_p1 = por %p161_p0, %p57_p5  ;;  %p4301_p2 = por %p167_p4, %p63_p10 }
  0x4c   : > { %p59_p8 = por %p6346_p6, %p57_p5  ;;  %p4293_p3 = por %p6347_p9, %p63_p10 }
  0x4d   : > { %s6349_s26 = scalar_select %p4297_p1, 1, 0 }
  0x4e   : > { %s6348_s10 = scalar_select %p4293_p3, 1, 0 }
  0x4f   : > { %s6350_s29 = scalar_select %p4301_p2, 1, 0 }
  0x50   : > { %s187_s12 = sand.u32 1, %s4052_s17   ;;  %s3142_s8 = sshll.u32 %s4068_s21, 12 }
  0x51   : > { %s3093_s25 = sshll.u32 %s187_s12, 8  ;;  %s6351_s0 = sld [smem:[#allocation125_spill]] }
  0x52   : > { %s191_s5 = scalar_lea.vmem [#allocation6], %s3093_s25  ;;  %p6352_p11 = scmp.lt.s32.totalorder %s4072_s22, 16 }
  0x53   : > { %s200_s4 = sshll.u32 %s191_s5, 4  ;;  %s4320_s21 = scalar_lea.sflag [#allocation7], %s187_s12  ;;  %s4318_s4 = int_to_ptr.vmem [resolvable:$true] %s200_s4 }
  0x54   : > { %p4314_p5 = pnand %p6352_p11, %p59_p8 }
  0x56   : > { %p3888_p0 = pneg %p4314_p5 }
  0x57   : > { %s4310_s11 = scalar_lea.hbm %s6351_s0, %s3142_s8  ;;  %s3891_s25 = scalar_lea.hbm %s6351_s0, 32768 }
  0x58   : > { %s3886_s30 = scalar_lea.hbm %s4310_s11, 4096  ;;  %p3892_p8 = scmp.lt.u32.totalorder %s4310_s11, %s6351_s0 }
  0x59   : > { %p3887_p10 = scmp.ne.s32.totalorder %s4310_s11, %s3886_s30  ;;  %p3893_p9 = scmp.lt.u32.totalorder %s3891_s25, %s3886_s30 }
  0x5a   : > { %p3895_p2 = scmp.lt.u32.totalorder %s3886_s30, %s4310_s11 }
  0x5b   : > { %p3889_p4 = pnand %p3888_p0, %p3887_p10  ;;  %p3894_p11 = por %p3893_p9, %p3892_p8 }
  0x5d   : > { %p3890_p6 = pneg %p3889_p4  ;;  %p3896_p1 = por %p3895_p2, %p3894_p11 }
  0x5f   : > { %p3897_p12 = pnand %p3896_p1, %p3890_p6 }
  0x61   : > { %3900 = shalt.err (!%p3897_p12)
}
  0x62   : > { %s3901_s12 = scalar_lea.vmem %s4318_s4, 4096  ;;  %s4077_s5 = smov [#allocation6]  }
  0x63   : > { %p3902_p10 = scmp.ne.s32.totalorder %s4318_s4, %s3901_s12  ;;  %s3906_s8 = sshll.u32 %s4077_s5, 4  ;;  %s3907_s8 = int_to_ptr.vmem [resolvable:$false] %s3906_s8 }
  0x64   : > { %s3908_s17 = scalar_lea.vmem %s3907_s8, 8192  ;;  %p3909_p7 = scmp.lt.s32.totalorder %s4318_s4, %s3907_s8 }
  0x65   : > { %p3904_p4 = pnand %p3902_p10, %p3888_p0  ;;  %p3910_p8 = scmp.lt.s32.totalorder %s3908_s17, %s3901_s12 }
  0x67   : > { %p3905_p3 = pneg %p3904_p4  ;;  %p3911_p9 = por %p3910_p8, %p3909_p7 }
  0x69   : > { %p3912_p2 = pnand %p3911_p9, %p3905_p3 }
  0x6b   : > { %3915 = shalt.err (!%p3912_p2)
}
  0x6c   : > { %s4078_s30 = smov 128   ;;  %s4079_s25 = smov 8  }
  0x6d   : > { %3419 = dma.hbm_to_vmem [thread:$0]  (!%p4314_p5), %s4310_s11, 4096, %s4318_s4, %s4320_s21, %s4078_s30, %s4078_s30, %s4079_s25  }
  0x6e   : > { %s3916_s20 = scalar_lea.hbm %s4266_s24, 1024  ;;  %p6354_p1 = pneg %p4226_p13 }
  0x6f   : > { %p3917_p12 = scmp.ne.s32.totalorder %s4266_s24, %s3916_s20  ;;  %s3921_s8 = scalar_lea.hbm %s6213_s2, 16384 }
  0x70   : > { %p3922_p0 = scmp.lt.u32.totalorder %s4266_s24, %s6213_s2  ;;  %p3923_p6 = scmp.lt.u32.totalorder %s3921_s8, %s3916_s20 }
  0x71   : > { %p3919_p7 = pnand %p3917_p12, %p6354_p1  ;;  %p3925_p10 = scmp.lt.u32.totalorder %s3916_s20, %s4266_s24 }
  0x72   : > { %p3924_p11 = por %p3923_p6, %p3922_p0 }
  0x73   : > { %p3920_p3 = pneg %p3919_p7 }
  0x74   : > { %p3926_p4 = por %p3925_p10, %p3924_p11 }
  0x76   : > { %p3927_p8 = pnand %p3926_p4, %p3920_p3 }
  0x78   : > { %3930 = shalt.err (!%p3927_p8)
}
  0x79   : > { %s3931_s21 = scalar_lea.vmem %s4269_s28, 1024  ;;  %p6355_p9 = pmov %p6354_p1 }
  0x7a   : > { %p3932_p5 = scmp.ne.s32.totalorder %s4269_s28, %s3931_s21  ;;  %s4080_s6 = smov [#allocation11]  }
  0x7b   : > { %s3936_s11 = sshll.u32 %s4080_s6, 4  ;;  %s3937_s11 = int_to_ptr.vmem [resolvable:$false] %s3936_s11 }
  0x7c   : > { %p3934_p2 = pnand %p3932_p5, %p6355_p9  ;;  %s3938_s0 = scalar_lea.vmem %s3937_s11, 2048 }
  0x7d   : > { %p3939_p1 = scmp.lt.s32.totalorder %s4269_s28, %s3937_s11  ;;  %p3940_p7 = scmp.lt.s32.totalorder %s3938_s0, %s3931_s21 }
  0x7e   : > { %p3935_p12 = pneg %p3934_p2 }
  0x7f   : > { %p3941_p0 = por %p3940_p7, %p3939_p1 }
  0x81   : > { %p3942_p6 = pnand %p3941_p0, %p3935_p12 }
  0x83   : > { %3945 = shalt.err (!%p3942_p6)
}
  0x84   : > { %s6356_s4 = smov 4   ;;  %s6357_s30 = smov 64  }
  0x85   : > { %3425 = dma.hbm_to_vmem [thread:$0]  (!%p4226_p13), %s4266_s24, 1024, %s4269_s28, %s4230_s9, %s6357_s30, %s6357_s30, %s6356_s4  }
  0x86   : > { %p6358_p3 = scmp.ne.s32.totalorder %s6343_s1, 0 }
  0x87   : > { %s4378_s25 = sand.u32 (!%p6358_p3), 1, %s4048_s16   ;;  %p6359_p11 = scmp.ne.s32.totalorder (!%p6358_p3), %s6348_s10, 0 }
  0x88   : > { %266 = sbr.rel (%p6358_p3) target bundleno = 1502 (0x5de), region = 32  ;;  %s3105_s20 = sshll.u32 (!%p6358_p3), %s4378_s25, 8 }
  0x89   : > { %s269_s12 = scalar_lea.sflag (!%p6358_p3), [#allocation7], %s4378_s25  ;;  %s4382_s5 = scalar_lea.vmem (!%p6358_p3), [#allocation6], %s3105_s20 }
  0x8f   : > { %4019 = dma.done.wait (%p6359_p11), %s269_s12, 4096  }
  0x90   : > { %4021 = vsyncadd (%p6359_p11), %s269_s12, 4294963200  ;;  %s277_s1 = sand.u32 1, %s4162_s23   ;;  %s279_s27 = sand.u32 1, %s4036_s13  }
  0x91   : > { %s3106_s9 = sshll.u32 %s279_s27, 6  ;;  %s278_s24 = scalar_lea.sflag [#allocation10], %s277_s1 }
  0x92   : > { %s4390_s28 = scalar_lea.vmem [#allocation9], %s3106_s9  ;;  %p6360_p13 = scmp.ne.s32.totalorder %s6340_s7, 0 }
  0x94   : > { %4023 = dma.done.wait (%p6360_p13), %s278_s24, 2048  }
  0x95   : > { %4025 = vsyncadd (%p6360_p13), %s278_s24, 4294965248  ;;  %s4396_s8 = scalar_lea.vmem [#allocation11], %s3106_s9  ;;  %s4398_s17 = scalar_lea.vmem [#allocation12], %s3105_s20 }
  0x96   : > { %p3109_p10 = scmp.ne.s32.totalorder %s4056_s18, 0 }
  0x97   : > { %v340_v0 = vld [vmem:[%s4382_s5] sm:$0xff] (!%p3109_p10)  ;;  %v341_v1 = vld [vmem:[%s4382_s5 + $0x8] sm:$0xff] (!%p3109_p10)  ;;  %v4404_v2 = vld [vmem:[%s4382_s5 + $0x10] sm:$0xff] (!%p3109_p10)  ;;  %v4081_v7 = vmov (!%p3109_p10), -2.3819763e+38   ;;  %v4082_v8 = vmov (!%p3109_p10), 0.0  }
  0x98   : > { %339 = sbr.rel (%p3109_p10) target bundleno = 209 (0xd1), region = 48  ;;  %v4406_v3 = vmul.f32 (!%p3109_p10), 0.088388346, %v340_v0  ;;  %v4408_v4 = vmul.f32 (!%p3109_p10), 0.088388346, %v341_v1  ;;  %v4411_v5 = vld [vmem:[%s4382_s5 + $0x18] sm:$0xff] (!%p3109_p10) }
  0x99   : > { %v4414_v6 = vld [vmem:[%s4382_s5 + $0x20] sm:$0xff] (!%p3109_p10)  ;;  %436 = vst [vmem:[#allocation3] sm:$0xff] (!%p3109_p10), %v4081_v7  ;;  %437 = vst [vmem:[#allocation3 + $0x8] sm:$0xff] (!%p3109_p10), %v4081_v7  ;;  %v374_v9 = vmul.f32 (!%p3109_p10), 0.088388346, %v4404_v2  ;;  %v345_v11 = vld [vmem:[%s4382_s5 + $0x28] sm:$0xff] (!%p3109_p10) }
  0x9a   : > { %438 = vst [vmem:[#allocation3 + $0x10] sm:$0xff] (!%p3109_p10), %v4081_v7  ;;  %439 = vst [vmem:[#allocation3 + $0x18] sm:$0xff] (!%p3109_p10), %v4081_v7  ;;  %v375_v10 = vmul.f32 (!%p3109_p10), 0.088388346, %v4411_v5  ;;  %v346_v12 = vld [vmem:[%s4382_s5 + $0x30] sm:$0xff] (!%p3109_p10)  ;;  %v404_v13 = vpack.c.bf16 (!%p3109_p10), %v4408_v4, %v4406_v3  ;;  %v347_v16 = vld [vmem:[%s4382_s5 + $0x38] sm:$0xff] (!%p3109_p10) }
  0x9b   : > { %440 = vst [vmem:[#allocation3 + $0x20] sm:$0xff] (!%p3109_p10), %v4081_v7  ;;  %441 = vst [vmem:[#allocation3 + $0x28] sm:$0xff] (!%p3109_p10), %v4081_v7  ;;  %v376_v14 = vmul.f32 (!%p3109_p10), 0.088388346, %v4414_v6  ;;  %v377_v15 = vmul.f32 (!%p3109_p10), 0.088388346, %v345_v11 }
  0x9c   : > { %442 = vst [vmem:[#allocation3 + $0x30] sm:$0xff] (!%p3109_p10), %v4081_v7  ;;  %443 = vst [vmem:[#allocation3 + $0x38] sm:$0xff] (!%p3109_p10), %v4081_v7  ;;  %v348_v17 = vld [vmem:[%s4382_s5 + $0x40] sm:$0xff] (!%p3109_p10)  ;;  %v405_v18 = vpack.c.bf16 (!%p3109_p10), %v375_v10, %v374_v9  ;;  %v378_v19 = vmul.f32 (!%p3109_p10), 0.088388346, %v346_v12  ;;  %v349_v21 = vld [vmem:[%s4382_s5 + $0x48] sm:$0xff] (!%p3109_p10) }
  0x9d   : > { %444 = vst [vmem:[#allocation3 + $0x40] sm:$0xff] (!%p3109_p10), %v4081_v7  ;;  %445 = vst [vmem:[#allocation3 + $0x48] sm:$0xff] (!%p3109_p10), %v4081_v7  ;;  %v379_v20 = vmul.f32 (!%p3109_p10), 0.088388346, %v347_v16  ;;  %v350_v22 = vld [vmem:[%s4382_s5 + $0x50] sm:$0xff] (!%p3109_p10)  ;;  %v406_v23 = vpack.c.bf16 (!%p3109_p10), %v377_v15, %v376_v14  ;;  %v351_v26 = vld [vmem:[%s4382_s5 + $0x58] sm:$0xff] (!%p3109_p10) }
  0x9e   : > { %446 = vst [vmem:[#allocation3 + $0x50] sm:$0xff] (!%p3109_p10), %v4081_v7  ;;  %447 = vst [vmem:[#allocation3 + $0x58] sm:$0xff] (!%p3109_p10), %v4081_v7  ;;  %v380_v24 = vmul.f32 (!%p3109_p10), 0.088388346, %v348_v17  ;;  %v381_v25 = vmul.f32 (!%p3109_p10), 0.088388346, %v349_v21 }
  0x9f   : > { %448 = vst [vmem:[#allocation3 + $0x60] sm:$0xff] %v4081_v7  ;;  %449 = vst [vmem:[#allocation3 + $0x68] sm:$0xff] %v4081_v7  ;;  %v352_v27 = vld [vmem:[%s4382_s5 + $0x60] sm:$0xff]  ;;  %v407_v28 = vpack.c.bf16 %v379_v20, %v378_v19  ;;  %v382_v29 = vmul.f32 0.088388346, %v350_v22  ;;  %v353_v31 = vld [vmem:[%s4382_s5 + $0x68] sm:$0xff] }
  0xa0   : > { %450 = vst [vmem:[#allocation3 + $0x70] sm:$0xff] %v4081_v7  ;;  %451 = vst [vmem:[#allocation3 + $0x78] sm:$0xff] %v4081_v7  ;;  %v383_v30 = vmul.f32 0.088388346, %v351_v26  ;;  %v354_v32 = vld [vmem:[%s4382_s5 + $0x70] sm:$0xff]  ;;  %v408_v33 = vpack.c.bf16 %v381_v25, %v380_v24  ;;  %v355_v36 = vld [vmem:[%s4382_s5 + $0x78] sm:$0xff] }
  0xa1   : > { %452 = vst [vmem:[#allocation3 + $0x80] sm:$0xff] %v4081_v7  ;;  %453 = vst [vmem:[#allocation3 + $0x88] sm:$0xff] %v4081_v7  ;;  %v384_v34 = vmul.f32 0.088388346, %v352_v27  ;;  %v385_v35 = vmul.f32 0.088388346, %v353_v31 }
  0xa2   : > { %454 = vst [vmem:[#allocation3 + $0x90] sm:$0xff] %v4081_v7  ;;  %455 = vst [vmem:[#allocation3 + $0x98] sm:$0xff] %v4081_v7  ;;  %v356_v37 = vld [vmem:[%s4382_s5 + $0x80] sm:$0xff]  ;;  %v409_v38 = vpack.c.bf16 %v383_v30, %v382_v29  ;;  %v386_v39 = vmul.f32 0.088388346, %v354_v32  ;;  %v357_v41 = vld [vmem:[%s4382_s5 + $0x88] sm:$0xff] }
  0xa3   : > { %456 = vst [vmem:[#allocation3 + $0xa0] sm:$0xff] %v4081_v7  ;;  %457 = vst [vmem:[#allocation3 + $0xa8] sm:$0xff] %v4081_v7  ;;  %v387_v40 = vmul.f32 0.088388346, %v355_v36  ;;  %v358_v42 = vld [vmem:[%s4382_s5 + $0x90] sm:$0xff]  ;;  %v410_v43 = vpack.c.bf16 %v385_v35, %v384_v34  ;;  %v359_v46 = vld [vmem:[%s4382_s5 + $0x98] sm:$0xff] }
  0xa4   : > { %458 = vst [vmem:[#allocation3 + $0xb0] sm:$0xff] %v4081_v7  ;;  %459 = vst [vmem:[#allocation3 + $0xb8] sm:$0xff] %v4081_v7  ;;  %v388_v44 = vmul.f32 0.088388346, %v356_v37  ;;  %v389_v45 = vmul.f32 0.088388346, %v357_v41 }
  0xa5   : > { %460 = vst [vmem:[#allocation3 + $0xc0] sm:$0xff] %v4081_v7  ;;  %461 = vst [vmem:[#allocation3 + $0xc8] sm:$0xff] %v4081_v7  ;;  %v360_v47 = vld [vmem:[%s4382_s5 + $0xa0] sm:$0xff]  ;;  %v411_v48 = vpack.c.bf16 %v387_v40, %v386_v39  ;;  %v390_v49 = vmul.f32 0.088388346, %v358_v42  ;;  %v361_v51 = vld [vmem:[%s4382_s5 + $0xa8] sm:$0xff] }
  0xa6   : > { %462 = vst [vmem:[#allocation3 + $0xd0] sm:$0xff] %v4081_v7  ;;  %463 = vst [vmem:[#allocation3 + $0xd8] sm:$0xff] %v4081_v7  ;;  %v391_v50 = vmul.f32 0.088388346, %v359_v46  ;;  %v362_v52 = vld [vmem:[%s4382_s5 + $0xb0] sm:$0xff]  ;;  %v412_v53 = vpack.c.bf16 %v389_v45, %v388_v44  ;;  %v363_v56 = vld [vmem:[%s4382_s5 + $0xb8] sm:$0xff] }
  0xa7   : > { %464 = vst [vmem:[#allocation3 + $0xe0] sm:$0xff] %v4081_v7  ;;  %465 = vst [vmem:[#allocation3 + $0xe8] sm:$0xff] %v4081_v7  ;;  %v392_v54 = vmul.f32 0.088388346, %v360_v47  ;;  %v393_v55 = vmul.f32 0.088388346, %v361_v51 }
  0xa8   : > { %466 = vst [vmem:[#allocation3 + $0xf0] sm:$0xff] %v4081_v7  ;;  %467 = vst [vmem:[#allocation3 + $0xf8] sm:$0xff] %v4081_v7  ;;  %v364_v57 = vld [vmem:[%s4382_s5 + $0xc0] sm:$0xff]  ;;  %v413_v58 = vpack.c.bf16 %v391_v50, %v390_v49  ;;  %v394_v59 = vmul.f32 0.088388346, %v362_v52  ;;  %v365_v61 = vld [vmem:[%s4382_s5 + $0xc8] sm:$0xff] }
  0xa9   : > { %468 = vst [vmem:[#allocation4] sm:$0xff] %v4082_v8  ;;  %469 = vst [vmem:[#allocation4 + $0x8] sm:$0xff] %v4082_v8  ;;  %v395_v60 = vmul.f32 0.088388346, %v363_v56  ;;  %v366_v62 = vld [vmem:[%s4382_s5 + $0xd0] sm:$0xff]  ;;  %v414_v63 = vpack.c.bf16 %v393_v55, %v392_v54  ;;  %v367_v2 = vld [vmem:[%s4382_s5 + $0xd8] sm:$0xff] }
  0xaa   : > { %470 = vst [vmem:[#allocation4 + $0x10] sm:$0xff] %v4082_v8  ;;  %471 = vst [vmem:[#allocation4 + $0x18] sm:$0xff] %v4082_v8  ;;  %v396_v0 = vmul.f32 0.088388346, %v364_v57  ;;  %v397_v1 = vmul.f32 0.088388346, %v365_v61 }
  0xab   : > { %472 = vst [vmem:[#allocation4 + $0x20] sm:$0xff] %v4082_v8  ;;  %473 = vst [vmem:[#allocation4 + $0x28] sm:$0xff] %v4082_v8  ;;  %v368_v3 = vld [vmem:[%s4382_s5 + $0xe0] sm:$0xff]  ;;  %v415_v4 = vpack.c.bf16 %v395_v60, %v394_v59  ;;  %v398_v5 = vmul.f32 0.088388346, %v366_v62  ;;  %v369_v7 = vld [vmem:[%s4382_s5 + $0xe8] sm:$0xff] }
  0xac   : > { %474 = vst [vmem:[#allocation4 + $0x30] sm:$0xff] %v4082_v8  ;;  %475 = vst [vmem:[#allocation4 + $0x38] sm:$0xff] %v4082_v8  ;;  %v399_v6 = vmul.f32 0.088388346, %v367_v2  ;;  %v416_v9 = vpack.c.bf16 %v397_v1, %v396_v0  ;;  %v400_v10 = vmul.f32 0.088388346, %v368_v3 }
  0xad   : > { %476 = vst [vmem:[#allocation4 + $0x40] sm:$0xff] %v4082_v8  ;;  %477 = vst [vmem:[#allocation4 + $0x48] sm:$0xff] %v4082_v8  ;;  %v401_v11 = vmul.f32 0.088388346, %v369_v7  ;;  %v371_v12 = vld [vmem:[%s4382_s5 + $0xf8] sm:$0xff] }
  0xae   : > { %478 = vst [vmem:[#allocation4 + $0x50] sm:$0xff] %v4082_v8  ;;  %479 = vst [vmem:[#allocation4 + $0x58] sm:$0xff] %v4082_v8  ;;  %v403_v15 = vmul.f32 0.088388346, %v371_v12 }
  0xaf   : > { %480 = vst [vmem:[#allocation4 + $0x60] sm:$0xff] %v4082_v8  ;;  %481 = vst [vmem:[#allocation4 + $0x68] sm:$0xff] %v4082_v8  ;;  %v418_v16 = vpack.c.bf16 %v401_v11, %v400_v10 }
  0xb0   : > { %482 = vst [vmem:[#allocation4 + $0x70] sm:$0xff] %v4082_v8  ;;  %483 = vst [vmem:[#allocation4 + $0x78] sm:$0xff] %v4082_v8 }
  0xb1   : > { %484 = vst [vmem:[#allocation4 + $0x80] sm:$0xff] %v4082_v8  ;;  %485 = vst [vmem:[#allocation4 + $0x88] sm:$0xff] %v4082_v8 }
  0xb2   : > { %486 = vst [vmem:[#allocation4 + $0x90] sm:$0xff] %v4082_v8  ;;  %487 = vst [vmem:[#allocation4 + $0x98] sm:$0xff] %v4082_v8 }
  0xb3   : > { %488 = vst [vmem:[#allocation4 + $0xa0] sm:$0xff] %v4082_v8  ;;  %489 = vst [vmem:[#allocation4 + $0xa8] sm:$0xff] %v4082_v8 }
  0xb4   : > { %490 = vst [vmem:[#allocation4 + $0xb0] sm:$0xff] %v4082_v8  ;;  %491 = vst [vmem:[#allocation4 + $0xb8] sm:$0xff] %v4082_v8 }
  0xb5   : > { %492 = vst [vmem:[#allocation4 + $0xc0] sm:$0xff] %v4082_v8  ;;  %493 = vst [vmem:[#allocation4 + $0xc8] sm:$0xff] %v4082_v8 }
  0xb6   : > { %494 = vst [vmem:[#allocation4 + $0xd0] sm:$0xff] %v4082_v8  ;;  %495 = vst [vmem:[#allocation4 + $0xd8] sm:$0xff] %v4082_v8 }
  0xb7   : > { %496 = vst [vmem:[#allocation4 + $0xe0] sm:$0xff] %v4082_v8  ;;  %497 = vst [vmem:[#allocation4 + $0xe8] sm:$0xff] %v4082_v8 }
  0xb8   : > { %498 = vst [vmem:[#allocation4 + $0xf0] sm:$0xff] %v4082_v8  ;;  %499 = vst [vmem:[#allocation4 + $0xf8] sm:$0xff] %v4082_v8 }
  0xb9   : > { %500 = vst [vmem:[#allocation5] sm:$0xff] %v4082_v8  ;;  %501 = vst [vmem:[#allocation5 + $0x8] sm:$0xff] %v4082_v8 }
  0xba   : > { %502 = vst [vmem:[#allocation5 + $0x10] sm:$0xff] %v4082_v8  ;;  %503 = vst [vmem:[#allocation5 + $0x18] sm:$0xff] %v4082_v8 }
  0xbb   : > { %504 = vst [vmem:[#allocation5 + $0x20] sm:$0xff] %v4082_v8  ;;  %505 = vst [vmem:[#allocation5 + $0x28] sm:$0xff] %v4082_v8 }
  0xbc   : > { %506 = vst [vmem:[#allocation5 + $0x30] sm:$0xff] %v4082_v8  ;;  %507 = vst [vmem:[#allocation5 + $0x38] sm:$0xff] %v4082_v8 }
  0xbd   : > { %508 = vst [vmem:[#allocation5 + $0x40] sm:$0xff] %v4082_v8  ;;  %509 = vst [vmem:[#allocation5 + $0x48] sm:$0xff] %v4082_v8 }
  0xbe   : > { %510 = vst [vmem:[#allocation5 + $0x50] sm:$0xff] %v4082_v8  ;;  %511 = vst [vmem:[#allocation5 + $0x58] sm:$0xff] %v4082_v8 }
  0xbf   : > { %512 = vst [vmem:[#allocation5 + $0x60] sm:$0xff] %v4082_v8  ;;  %513 = vst [vmem:[#allocation5 + $0x68] sm:$0xff] %v4082_v8 }
  0xc0   : > { %514 = vst [vmem:[#allocation5 + $0x70] sm:$0xff] %v4082_v8  ;;  %515 = vst [vmem:[#allocation5 + $0x78] sm:$0xff] %v4082_v8 }
  0xc1   : > { %516 = vst [vmem:[#allocation5 + $0x80] sm:$0xff] %v4082_v8  ;;  %517 = vst [vmem:[#allocation5 + $0x88] sm:$0xff] %v4082_v8 }
  0xc2   : > { %518 = vst [vmem:[#allocation5 + $0x90] sm:$0xff] %v4082_v8  ;;  %519 = vst [vmem:[#allocation5 + $0x98] sm:$0xff] %v4082_v8 }
  0xc3   : > { %520 = vst [vmem:[#allocation5 + $0xa0] sm:$0xff] %v4082_v8  ;;  %521 = vst [vmem:[#allocation5 + $0xa8] sm:$0xff] %v4082_v8 }
  0xc4   : > { %522 = vst [vmem:[#allocation5 + $0xb0] sm:$0xff] %v4082_v8  ;;  %523 = vst [vmem:[#allocation5 + $0xb8] sm:$0xff] %v4082_v8 }
  0xc5   : > { %524 = vst [vmem:[#allocation5 + $0xc0] sm:$0xff] %v4082_v8  ;;  %525 = vst [vmem:[#allocation5 + $0xc8] sm:$0xff] %v4082_v8 }
  0xc6   : > { %526 = vst [vmem:[#allocation5 + $0xd0] sm:$0xff] %v4082_v8  ;;  %527 = vst [vmem:[#allocation5 + $0xd8] sm:$0xff] %v4082_v8 }
  0xc7   : > { %528 = vst [vmem:[#allocation5 + $0xe0] sm:$0xff] %v4082_v8  ;;  %529 = vst [vmem:[#allocation5 + $0xe8] sm:$0xff] %v4082_v8 }
  0xc8   : > { %530 = vst [vmem:[#allocation5 + $0xf0] sm:$0xff] %v4082_v8  ;;  %531 = vst [vmem:[#allocation5 + $0xf8] sm:$0xff] %v4082_v8  ;;  %v370_v8 = vld [vmem:[%s4382_s5 + $0xf0] sm:$0xff] }
  0xc9   : > { %420 = vst [vmem:[#allocation2] sm:$0xff] %v404_v13  ;;  %421 = vst [vmem:[#allocation2 + $0x8] sm:$0xff] %v405_v18  ;;  %v417_v13 = vpack.c.bf16 %v399_v6, %v398_v5  ;;  %v402_v14 = vmul.f32 0.088388346, %v370_v8 }
  0xca   : > { %422 = vst [vmem:[#allocation2 + $0x10] sm:$0xff] %v406_v23  ;;  %423 = vst [vmem:[#allocation2 + $0x18] sm:$0xff] %v407_v28 }
  0xcb   : > { %424 = vst [vmem:[#allocation2 + $0x20] sm:$0xff] %v408_v33  ;;  %425 = vst [vmem:[#allocation2 + $0x28] sm:$0xff] %v409_v38  ;;  %v419_v17 = vpack.c.bf16 %v403_v15, %v402_v14 }
  0xcc   : > { %426 = vst [vmem:[#allocation2 + $0x30] sm:$0xff] %v410_v43  ;;  %427 = vst [vmem:[#allocation2 + $0x38] sm:$0xff] %v411_v48 }
  0xcd   : > { %428 = vst [vmem:[#allocation2 + $0x40] sm:$0xff] %v412_v53  ;;  %429 = vst [vmem:[#allocation2 + $0x48] sm:$0xff] %v413_v58 }
  0xce   : > { %430 = vst [vmem:[#allocation2 + $0x50] sm:$0xff] %v414_v63  ;;  %431 = vst [vmem:[#allocation2 + $0x58] sm:$0xff] %v415_v4 }
  0xcf   : > { %432 = vst [vmem:[#allocation2 + $0x60] sm:$0xff] %v416_v9  ;;  %433 = vst [vmem:[#allocation2 + $0x68] sm:$0xff] %v417_v13 }
  0xd0   : > { %434 = vst [vmem:[#allocation2 + $0x70] sm:$0xff] %v418_v16  ;;  %435 = vst [vmem:[#allocation2 + $0x78] sm:$0xff] %v419_v17 }
  0xd1 PF: > { %p3110_p4 = scmp.lt.s32.totalorder %s4056_s18, 0 }
  0xd3   : > { %537 = sbr.rel (%p3110_p4) target bundleno = 1429 (0x595), region = 52 }
  0xda   : > { %v4514_v18 = vld [vmem:[%s4396_s8] sm:$0xf]  ;;  %v4517_v19 = vld [vmem:[%s4396_s8 + $0x4] sm:$0xf]  ;;  %v4520_v20 = vld [vmem:[%s4396_s8 + $0x8] sm:$0xf] }
  0xdb   : > { %6361 = vst [vmem:[#allocation23_spill] sm:$0xff] %v4514_v18  ;;  %6362 = vst [vmem:[#allocation24_spill] sm:$0xff] %v4517_v19  ;;  %v4523_v21 = vld [vmem:[%s4396_s8 + $0xc] sm:$0xf]  ;;  %v4526_v22 = vld [vmem:[%s4396_s8 + $0x10] sm:$0xf] }
  0xdc   : > { %6363 = vst [vmem:[#allocation25_spill] sm:$0xff] %v4520_v20  ;;  %6364 = vst [vmem:[#allocation26_spill] sm:$0xff] %v4523_v21  ;;  %v4529_v23 = vld [vmem:[%s4396_s8 + $0x14] sm:$0xf]  ;;  %v4532_v24 = vld [vmem:[%s4396_s8 + $0x18] sm:$0xf] }
  0xdd   : > { %6365 = vst [vmem:[#allocation27_spill] sm:$0xff] %v4526_v22  ;;  %6366 = vst [vmem:[#allocation28_spill] sm:$0xff] %v4529_v23  ;;  %v4535_v25 = vld [vmem:[%s4396_s8 + $0x1c] sm:$0xf]  ;;  %v4538_v26 = vld [vmem:[%s4396_s8 + $0x20] sm:$0xf] }
  0xde   : > { %6367 = vst [vmem:[#allocation29_spill] sm:$0xff] %v4532_v24  ;;  %6368 = vst [vmem:[#allocation30_spill] sm:$0xff] %v4535_v25  ;;  %v4541_v27 = vld [vmem:[%s4396_s8 + $0x24] sm:$0xf]  ;;  %v4544_v28 = vld [vmem:[%s4396_s8 + $0x28] sm:$0xf] }
  0xdf   : > { %6369 = vst [vmem:[#allocation31_spill] sm:$0xff] %v4538_v26  ;;  %6370 = vst [vmem:[#allocation32_spill] sm:$0xff] %v4541_v27  ;;  %v4547_v29 = vld [vmem:[%s4396_s8 + $0x2c] sm:$0xf]  ;;  %v4550_v30 = vld [vmem:[%s4396_s8 + $0x30] sm:$0xf] }
  0xe0   : > { %6371 = vst [vmem:[#allocation33_spill] sm:$0xff] %v4544_v28  ;;  %6372 = vst [vmem:[#allocation34_spill] sm:$0xff] %v4547_v29  ;;  %v4553_v31 = vld [vmem:[%s4396_s8 + $0x34] sm:$0xf]  ;;  %v4556_v32 = vld [vmem:[%s4396_s8 + $0x38] sm:$0xf] }
  0xe1   : > { %6373 = vst [vmem:[#allocation35_spill] sm:$0xff] %v4550_v30  ;;  %6374 = vst [vmem:[#allocation36_spill] sm:$0xff] %v4553_v31  ;;  %v4559_v33 = vld [vmem:[%s4396_s8 + $0x3c] sm:$0xf]  ;;  %v3528_v34 = vld [vmem:[%s4390_s28] sm:$0xff]   ;;  %s3119_s23 = sshll.u32 %s4056_s18, 7 }
  0xe2   : > { %6375 = vst [vmem:[#allocation37_spill] sm:$0xff] %v4556_v32  ;;  %6376 = vst [vmem:[#allocation38_spill] sm:$0xff] %v4559_v33  ;;  %v3529_v35 = vld [vmem:[%s4390_s28 + $0x8] sm:$0xff]   ;;  %3216 = vmatprep.subr.bf16.mxu0 %v3528_v34  ;;  %3360 = vmatprep.subr.bf16.mxu1 %v3528_v34  ;;  %v570_v36 = vld [vmem:[#allocation2] sm:$0xff]  ;;  %s4570_s7 = ssub.s32 0, %s3119_s23  ;;  %s800_s10 = ssub.s32 255, %s3119_s23 }
  0xe3   : > { %3217 = vmatpush3.bf16.xpose.msra.mxu0 %v3528_v34  ;;  %3368 = vmatpush3.bf16.xpose.msra.mxu1 %v3528_v34  ;;  %v578_v37 = vld [vmem:[#allocation2 + $0x40] sm:$0xff]  ;;  %v3530_v38 = vld [vmem:[%s4390_s28 + $0x10] sm:$0xff]   ;;  %v3531_v39 = vld [vmem:[%s4390_s28 + $0x18] sm:$0xff]   ;;  %p798_p8 = scmp.ge.s32.totalorder %s4570_s7, 127  ;;  %p801_p5 = scmp.lt.s32.totalorder %s800_s10, 64 }
  0xe4   : > { %3218 = vmatprep.subr.bf16.mxu0 %v3529_v35  ;;  %3361 = vmatprep.subr.bf16.mxu1 %v3529_v35  ;;  %v3532_v40 = vld [vmem:[%s4390_s28 + $0x20] sm:$0xff]   ;;  %v3533_v41 = vld [vmem:[%s4390_s28 + $0x28] sm:$0xff]   ;;  %v3534_v42 = vld [vmem:[%s4390_s28 + $0x30] sm:$0xff]  }
  0xe5   : > { %3232 = vmatprep.mubr.bf16.mxu0 %v570_v36  ;;  %3248 = vmatprep.mubr.bf16.mxu1 %v578_v37  ;;  %v3535_v43 = vld [vmem:[%s4390_s28 + $0x38] sm:$0xff]   ;;  %v571_v44 = vld [vmem:[#allocation2 + $0x8] sm:$0xff]  ;;  %v572_v46 = vld [vmem:[#allocation2 + $0x10] sm:$0xff]  ;;  %p4573_p9 = pnand %p801_p5, %p798_p8 }
  0xe6   : > { %v579_v45 = vld [vmem:[#allocation2 + $0x48] sm:$0xff]  ;;  %v580_v47 = vld [vmem:[#allocation2 + $0x50] sm:$0xff]  ;;  %v573_v48 = vld [vmem:[#allocation2 + $0x18] sm:$0xff] }
  0xe7   : > { %v581_v49 = vld [vmem:[#allocation2 + $0x58] sm:$0xff]  ;;  %v574_v50 = vld [vmem:[#allocation2 + $0x20] sm:$0xff]  ;;  %v575_v52 = vld [vmem:[#allocation2 + $0x28] sm:$0xff] }
  0xe8   : > { %v582_v51 = vld [vmem:[#allocation2 + $0x60] sm:$0xff]  ;;  %v583_v53 = vld [vmem:[#allocation2 + $0x68] sm:$0xff]  ;;  %v576_v54 = vld [vmem:[#allocation2 + $0x30] sm:$0xff] }
  0xe9   : > { %v584_v55 = vld [vmem:[#allocation2 + $0x70] sm:$0xff]  ;;  %v577_v56 = vld [vmem:[#allocation2 + $0x38] sm:$0xff] }
  0xea   : > { %v585_v57 = vld [vmem:[#allocation2 + $0x78] sm:$0xff] }
  0xeb   : > { %3219 = vmatpush3.bf16.xpose.msra.mxu0 %v3529_v35  ;;  %3369 = vmatpush3.bf16.xpose.msra.mxu1 %v3529_v35 }
  0xec   : > { %3220 = vmatprep.subr.bf16.mxu0 %v3530_v38  ;;  %3362 = vmatprep.subr.bf16.mxu1 %v3530_v38 }
  0xf3   : > { %3221 = vmatpush3.bf16.xpose.msra.mxu0 %v3530_v38  ;;  %3370 = vmatpush3.bf16.xpose.msra.mxu1 %v3530_v38 }
  0xf4   : > { %3222 = vmatprep.subr.bf16.mxu0 %v3531_v39  ;;  %3363 = vmatprep.subr.bf16.mxu1 %v3531_v39 }
  0xfb   : > { %3223 = vmatpush3.bf16.xpose.msra.mxu0 %v3531_v39  ;;  %3371 = vmatpush3.bf16.xpose.msra.mxu1 %v3531_v39 }
  0xfc   : > { %3224 = vmatprep.subr.bf16.mxu0 %v3532_v40  ;;  %3364 = vmatprep.subr.bf16.mxu1 %v3532_v40 }
 0x103   : > { %3225 = vmatpush3.bf16.xpose.msra.mxu0 %v3532_v40  ;;  %3372 = vmatpush3.bf16.xpose.msra.mxu1 %v3532_v40 }
 0x104   : > { %3226 = vmatprep.subr.bf16.mxu0 %v3533_v41  ;;  %3365 = vmatprep.subr.bf16.mxu1 %v3533_v41 }
 0x10b   : > { %3227 = vmatpush3.bf16.xpose.msra.mxu0 %v3533_v41  ;;  %3373 = vmatpush3.bf16.xpose.msra.mxu1 %v3533_v41 }
 0x10c   : > { %3228 = vmatprep.subr.bf16.mxu0 %v3534_v42  ;;  %3366 = vmatprep.subr.bf16.mxu1 %v3534_v42 }
 0x113   : > { %3229 = vmatpush3.bf16.xpose.msra.mxu0 %v3534_v42  ;;  %3374 = vmatpush3.bf16.xpose.msra.mxu1 %v3534_v42 }
 0x114   : > { %3230 = vmatprep.subr.bf16.mxu0 %v3535_v43  ;;  %3367 = vmatprep.subr.bf16.mxu1 %v3535_v43 }
 0x11b   : > { %3231 = vmatpush3.bf16.xpose.msra.mxu0 %v3535_v43  ;;  %3375 = vmatpush3.bf16.xpose.msra.mxu1 %v3535_v43 }
 0x122   : > { %3233 = vmatmul.mubr.bf16.vlgmr.msra.gmra.mrb[0].mxu0 %v571_v44  ;;  %3249 = vmatmul.mubr.bf16.vlgmr.msra.gmra.mrb[0].mxu1 %v579_v45 }
 0x123   : > { %3236 = vmatprep.mubr.bf16.mxu0 %v572_v46  ;;  %3252 = vmatprep.mubr.bf16.mxu1 %v580_v47 }
 0x12a   : > { %3237 = vmatmul.mubr.bf16.gmra.mrb[4].mxu0 %v573_v48  ;;  %3253 = vmatmul.mubr.bf16.gmra.mrb[4].mxu1 %v581_v49 }
 0x12b   : > { %3240 = vmatprep.mubr.bf16.mxu0 %v574_v50  ;;  %3256 = vmatprep.mubr.bf16.mxu1 %v582_v51 }
 0x132   : > { %3241 = vmatmul.mubr.bf16.gmra.mrb[8].mxu0 %v575_v52  ;;  %3257 = vmatmul.mubr.bf16.gmra.mrb[8].mxu1 %v583_v53 }
 0x133   : > { %3244 = vmatprep.mubr.bf16.mxu0 %v576_v54  ;;  %3260 = vmatprep.mubr.bf16.mxu1 %v584_v55 }
 0x13a   : > { %3245 = vmatmul.mubr.bf16.gmra.mrb[12].mxu0 %v577_v56  ;;  %3261 = vmatmul.mubr.bf16.gmra.mrb[12].mxu1 %v585_v57 }
 0x1f5   : > { %v4577_v58 = vpop.f32.mrb[0].mxu0  ;;  %v4579_v59 = vpop.f32.mrb[0].mxu1 }
 0x1f6   : > { %6378 = vst [vmem:[#allocation39_spill] sm:$0xff] %v4577_v58  ;;  %6379 = vst [vmem:[#allocation40_spill] sm:$0xff] %v4579_v59  ;;  %v4581_v60 = vpop.f32.mrb[1].mxu0  ;;  %v4583_v61 = vpop.f32.mrb[1].mxu1 }
 0x1f7   : > { %6380 = vst [vmem:[#allocation41_spill] sm:$0xff] %v4581_v60  ;;  %6381 = vst [vmem:[#allocation42_spill] sm:$0xff] %v4583_v61  ;;  %v4585_v62 = vpop.f32.mrb[2].mxu0  ;;  %v4587_v63 = vpop.f32.mrb[2].mxu1 }
 0x1f8   : > { %6382 = vst [vmem:[#allocation43_spill] sm:$0xff] %v4585_v62  ;;  %6383 = vst [vmem:[#allocation44_spill] sm:$0xff] %v4587_v63  ;;  %v4589_v0 = vpop.f32.mrb[3].mxu0  ;;  %v4591_v1 = vpop.f32.mrb[3].mxu1 }
 0x1f9   : > { %6384 = vst [vmem:[#allocation45_spill] sm:$0xff] %v4589_v0  ;;  %6385 = vst [vmem:[#allocation46_spill] sm:$0xff] %v4591_v1 }
 0x1fd   : > { %v4593_v2 = vpop.f32.mrb[4].mxu0  ;;  %v4595_v3 = vpop.f32.mrb[4].mxu1 }
 0x1fe   : > { %6386 = vst [vmem:[#allocation47_spill] sm:$0xff] %v4593_v2  ;;  %6387 = vst [vmem:[#allocation48_spill] sm:$0xff] %v4595_v3  ;;  %v4597_v4 = vpop.f32.mrb[5].mxu0  ;;  %v4599_v5 = vpop.f32.mrb[5].mxu1 }
 0x1ff   : > { %6388 = vst [vmem:[#allocation49_spill] sm:$0xff] %v4597_v4  ;;  %6389 = vst [vmem:[#allocation50_spill] sm:$0xff] %v4599_v5  ;;  %v4601_v6 = vpop.f32.mrb[6].mxu0  ;;  %v4603_v7 = vpop.f32.mrb[6].mxu1 }
 0x200   : > { %6390 = vst [vmem:[#allocation51_spill] sm:$0xff] %v4601_v6  ;;  %6391 = vst [vmem:[#allocation52_spill] sm:$0xff] %v4603_v7  ;;  %v4605_v8 = vpop.f32.mrb[7].mxu0  ;;  %v4607_v9 = vpop.f32.mrb[7].mxu1 }
 0x201   : > { %6392 = vst [vmem:[#allocation53_spill] sm:$0xff] %v4605_v8  ;;  %6393 = vst [vmem:[#allocation54_spill] sm:$0xff] %v4607_v9 }
 0x205   : > { %v4609_v10 = vpop.f32.mrb[8].mxu0  ;;  %v4611_v11 = vpop.f32.mrb[8].mxu1 }
 0x206   : > { %6394 = vst [vmem:[#allocation55_spill] sm:$0xff] %v4609_v10  ;;  %6395 = vst [vmem:[#allocation56_spill] sm:$0xff] %v4611_v11  ;;  %v4613_v12 = vpop.f32.mrb[9].mxu0  ;;  %v4615_v13 = vpop.f32.mrb[9].mxu1 }
 0x207   : > { %6396 = vst [vmem:[#allocation57_spill] sm:$0xff] %v4613_v12  ;;  %6397 = vst [vmem:[#allocation58_spill] sm:$0xff] %v4615_v13  ;;  %v4617_v14 = vpop.f32.mrb[10].mxu0  ;;  %v4619_v15 = vpop.f32.mrb[10].mxu1 }
 0x208   : > { %6398 = vst [vmem:[#allocation59_spill] sm:$0xff] %v4617_v14  ;;  %6399 = vst [vmem:[#allocation60_spill] sm:$0xff] %v4619_v15  ;;  %v4621_v16 = vpop.f32.mrb[11].mxu0  ;;  %v4623_v17 = vpop.f32.mrb[11].mxu1 }
 0x209   : > { %6400 = vst [vmem:[#allocation61_spill] sm:$0xff] %v4621_v16  ;;  %6401 = vst [vmem:[#allocation62_spill] sm:$0xff] %v4623_v17 }
 0x20b   : > { %805 = sbr.rel (%p4573_p9) target bundleno = 970 (0x3ca), region = 56 }
 0x20d   : > { %v4625_v34 = vpop.f32.mrb[12].mxu0  ;;  %v4627_v35 = vpop.f32.mrb[12].mxu1 }
 0x20e   : > { %6402 = vst [vmem:[#allocation63_spill] sm:$0xff] %v4625_v34  ;;  %6403 = vst [vmem:[#allocation64_spill] sm:$0xff] %v4627_v35  ;;  %v4629_v36 = vpop.f32.mrb[13].mxu0  ;;  %v4631_v37 = vpop.f32.mrb[13].mxu1 }
 0x20f   : > { %6404 = vst [vmem:[#allocation65_spill] sm:$0xff] %v4629_v36  ;;  %6405 = vst [vmem:[#allocation66_spill] sm:$0xff] %v4631_v37  ;;  %v4633_v38 = vpop.f32.mrb[14].mxu0  ;;  %v4635_v39 = vpop.f32.mrb[14].mxu1 }
 0x210   : > { %6406 = vst [vmem:[#allocation67_spill] sm:$0xff] %v4633_v38  ;;  %6407 = vst [vmem:[#allocation68_spill] sm:$0xff] %v4635_v39  ;;  %v4637_v40 = vpop.f32.mrb[15].mxu0  ;;  %v4639_v41 = vpop.f32.mrb[15].mxu1 }
 0x211   : > { %6408 = vst [vmem:[#allocation69_spill] sm:$0xff] %v4637_v40  ;;  %6409 = vst [vmem:[#allocation70_spill] sm:$0xff] %v4639_v41 }
 0x212   : > { %870 = vmax.xlane.f32.xlu1 %v4583_v61  ;;  %838 = vmax.xlane.f32.xlu0 %v4581_v60  ;;  %v3120_v42 = vcombine.low %v4514_v18, %v4517_v19  ;;  %v3121_v43 = vcombine.low %v4520_v20, %v4523_v21  ;;  %v3122_v44 = vcombine.low %v4526_v22, %v4529_v23  ;;  %v4691_v50 = vld [vmem:[#allocation3 + $0x80] sm:$0xff]  ;;  %v4701_v56 = vld [vmem:[#allocation3 + $0x88] sm:$0xff] }
 0x213   : > { %v3123_v45 = vcombine.low %v4532_v24, %v4535_v25  ;;  %v3124_v46 = vcombine.low %v4538_v26, %v4541_v27  ;;  %v3125_v47 = vcombine.low %v4544_v28, %v4547_v29  ;;  %v3126_v48 = vcombine.low %v4550_v30, %v4553_v31  ;;  %v4693_v51 = vld [vmem:[#allocation3] sm:$0xff]  ;;  %v4741_v29 = vld [vmem:[#allocation3 + $0x98] sm:$0xff] }
 0x214   : > { %3264 = vmatprep.subr.bf16.mxu0 %v3120_v42  ;;  %3376 = vmatprep.subr.bf16.mxu1 %v3120_v42  ;;  %v3127_v49 = vcombine.low %v4556_v32, %v4559_v33  ;;  %v4728_v33 = vld [vmem:[#allocation3 + $0x10] sm:$0xff]  ;;  %6411 = vst [vmem:[#allocation72_spill] sm:$0xff] %v4741_v29  ;;  %v4768_v22 = vld [vmem:[#allocation3 + $0x20] sm:$0xff] }
 0x215   : > { %3265 = vmatpush3.bf16.msra.mxu0 %v3120_v42  ;;  %3384 = vmatpush3.bf16.msra.mxu1 %v3120_v42 }
 0x216   : > { %872 = vmax.xlane.f32.xlu1 %v4591_v1  ;;  %840 = vmax.xlane.f32.xlu0 %v4589_v0 }
 0x217   : > { %3266 = vmatprep.subr.bf16.mxu0 %v3121_v43  ;;  %3377 = vmatprep.subr.bf16.mxu1 %v3121_v43 }
 0x219   : > { %3267 = vmatpush3.bf16.msra.mxu0 %v3121_v43  ;;  %3385 = vmatpush3.bf16.msra.mxu1 %v3121_v43 }
 0x21a   : > { %844 = vmax.xlane.f32.xlu1 %v4585_v62  ;;  %842 = vmax.xlane.f32.xlu0 %v4577_v58 }
 0x21b   : > { %3268 = vmatprep.subr.bf16.mxu0 %v3122_v44  ;;  %3378 = vmatprep.subr.bf16.mxu1 %v3122_v44 }
 0x21d   : > { %3269 = vmatpush3.bf16.msra.mxu0 %v3122_v44  ;;  %3386 = vmatpush3.bf16.msra.mxu1 %v3122_v44 }
 0x21e   : > { %876 = vmax.xlane.f32.xlu1 %v4587_v63  ;;  %874 = vmax.xlane.f32.xlu0 %v4579_v59 }
 0x21f   : > { %3270 = vmatprep.subr.bf16.mxu0 %v3123_v45  ;;  %3379 = vmatprep.subr.bf16.mxu1 %v3123_v45 }
 0x221   : > { %3271 = vmatpush3.bf16.msra.mxu0 %v3123_v45  ;;  %3387 = vmatpush3.bf16.msra.mxu1 %v3123_v45  ;;  %v4713_v45 = vld [vmem:[#allocation3 + $0x8] sm:$0xff] }
 0x222   : > { %848 = vmax.xlane.f32.xlu1 %v4605_v8  ;;  %846 = vmax.xlane.f32.xlu0 %v4597_v4 }
 0x223   : > { %3272 = vmatprep.subr.bf16.mxu0 %v3124_v46  ;;  %3380 = vmatprep.subr.bf16.mxu1 %v3124_v46 }
 0x225   : > { %3273 = vmatpush3.bf16.msra.mxu0 %v3124_v46  ;;  %3388 = vmatpush3.bf16.msra.mxu1 %v3124_v46 }
 0x226   : > { %880 = vmax.xlane.f32.xlu1 %v4607_v9  ;;  %878 = vmax.xlane.f32.xlu0 %v4599_v5 }
 0x227   : > { %3274 = vmatprep.subr.bf16.mxu0 %v3125_v47  ;;  %3381 = vmatprep.subr.bf16.mxu1 %v3125_v47 }
 0x229   : > { %3275 = vmatpush3.bf16.msra.mxu0 %v3125_v47  ;;  %3389 = vmatpush3.bf16.msra.mxu1 %v3125_v47 }
 0x22a   : > { %852 = vmax.xlane.f32.xlu1 %v4601_v6  ;;  %850 = vmax.xlane.f32.xlu0 %v4593_v2 }
 0x22b   : > { %3276 = vmatprep.subr.bf16.mxu0 %v3126_v48  ;;  %3382 = vmatprep.subr.bf16.mxu1 %v3126_v48 }
 0x22d   : > { %3277 = vmatpush3.bf16.msra.mxu0 %v3126_v48  ;;  %3390 = vmatpush3.bf16.msra.mxu1 %v3126_v48 }
 0x22e   : > { %884 = vmax.xlane.f32.xlu1 %v4603_v7  ;;  %882 = vmax.xlane.f32.xlu0 %v4595_v3 }
 0x22f   : > { %3278 = vmatprep.subr.bf16.mxu0 %v3127_v49  ;;  %3383 = vmatprep.subr.bf16.mxu1 %v3127_v49 }
 0x231   : > { %3279 = vmatpush3.bf16.msra.mxu0 %v3127_v49  ;;  %3391 = vmatpush3.bf16.msra.mxu1 %v3127_v49 }
 0x232   : > { %856 = vmax.xlane.f32.xlu1 %v4621_v16  ;;  %854 = vmax.xlane.f32.xlu0 %v4613_v12 }
 0x236   : > { %888 = vmax.xlane.f32.xlu1 %v4623_v17  ;;  %886 = vmax.xlane.f32.xlu0 %v4615_v13 }
 0x23a   : > { %860 = vmax.xlane.f32.xlu1 %v4617_v14  ;;  %858 = vmax.xlane.f32.xlu0 %v4609_v10 }
 0x23e   : > { %892 = vmax.xlane.f32.xlu1 %v4619_v15  ;;  %890 = vmax.xlane.f32.xlu0 %v4611_v11 }
 0x242   : > { %864 = vmax.xlane.f32.xlu1 %v4637_v40  ;;  %862 = vmax.xlane.f32.xlu0 %v4629_v36 }
 0x246   : > { %896 = vmax.xlane.f32.xlu1 %v4639_v41  ;;  %894 = vmax.xlane.f32.xlu0 %v4631_v37 }
 0x24a   : > { %868 = vmax.xlane.f32.xlu1 %v4633_v38  ;;  %866 = vmax.xlane.f32.xlu0 %v4625_v34 }
 0x24e   : > { %900 = vmax.xlane.f32.xlu1 %v4635_v39  ;;  %898 = vmax.xlane.f32.xlu0 %v4627_v35 }
 0x29f   : > { %v871_v52 = vpop.xlane.xlu1 %870  ;;  %v839_v53 = vpop.xlane.xlu0 %838 }
 0x2a0   : > { %v4696_v54 = vmax.f32 %v4691_v50, %v871_v52  ;;  %v4699_v55 = vmax.f32 %v4693_v51, %v839_v53  ;;  %v4721_v53 = vld [vmem:[#allocation3 + $0x18] sm:$0xff] }
 0x2a2   : > { %6410 = vst [vmem:[#allocation71_spill] sm:$0xff] %v4696_v54  ;;  %v1046_v42 = vsub.f32 %v4583_v61, %v4696_v54  ;;  %1687 = vst [vmem:[#allocation3 + $0x80] sm:$0xff] %v4696_v54  ;;  %v1030_v44 = vsub.f32 %v4581_v60, %v4699_v55 }
 0x2a3   : > { %1671 = vst [vmem:[#allocation3] sm:$0xff] %v4699_v55  ;;  %v873_v46 = vpop.xlane.xlu1 %872  ;;  %v841_v47 = vpop.xlane.xlu0 %840 }
 0x2a4   : > { %v4716_v48 = vmax.f32 %v4701_v56, %v873_v46  ;;  %v1062_v49 = vmul.f32 1.442695, %v1030_v44  ;;  %v4719_v52 = vmax.f32 %v4713_v45, %v841_v47  ;;  %v1094_v57 = vmul.f32 1.442695, %v1046_v42 }
 0x2a6   : > { %v1047_v32 = vsub.f32 %v4591_v1, %v4716_v48  ;;  %1688 = vst [vmem:[#allocation3 + $0x88] sm:$0xff] %v4716_v48  ;;  %v1031_v44 = vsub.f32 %v4589_v0, %v4719_v52  ;;  %1672 = vst [vmem:[#allocation3 + $0x8] sm:$0xff] %v4719_v52  ;;  %3536 = vpow2.f32 %v1062_v49 }
 0x2a7   : > { %v845_v47 = vpop.xlane.xlu1 %844  ;;  %v843_v42 = vpop.xlane.xlu0 %842  ;;  %3538 = vpow2.f32 %v1094_v57 }
 0x2a8   : > { %v1096_v30 = vmul.f32 1.442695, %v1047_v32  ;;  %v4736_v43 = vmax.f32 %v4721_v53, %v845_v47  ;;  %v1064_v31 = vmul.f32 1.442695, %v1031_v44  ;;  %v4739_v28 = vmax.f32 %v4728_v33, %v843_v42  ;;  %v4748_v32 = vld [vmem:[#allocation3 + $0x90] sm:$0xff] }
 0x2a9   : > { %6412 = vst [vmem:[#allocation73_spill] sm:$0xff] %v4748_v32 }
 0x2aa   : > { %v1033_v26 = vsub.f32 %v4585_v62, %v4736_v43  ;;  %1674 = vst [vmem:[#allocation3 + $0x18] sm:$0xff] %v4736_v43  ;;  %3540 = vpow2.f32 %v1096_v30  ;;  %v1032_v44 = vsub.f32 %v4577_v58, %v4739_v28  ;;  %1673 = vst [vmem:[#allocation3 + $0x10] sm:$0xff] %v4739_v28  ;;  %v4761_v30 = vld [vmem:[#allocation3 + $0x28] sm:$0xff] }
 0x2ab   : > { %v877_v57 = vpop.xlane.xlu1 %876  ;;  %v875_v47 = vpop.xlane.xlu0 %874  ;;  %3542 = vpow2.f32 %v1064_v31 }
 0x2ac   : > { %v1068_v42 = vmul.f32 1.442695, %v1033_v26  ;;  %v4756_v46 = vmax.f32 %v4741_v29, %v877_v57  ;;  %v1066_v27 = vmul.f32 1.442695, %v1032_v44  ;;  %v4759_v24 = vmax.f32 %v4748_v32, %v875_v47 }
 0x2ae   : > { %6413 = vst [vmem:[#allocation74_spill] sm:$0xff] %v4756_v46  ;;  %6414 = vst [vmem:[#allocation75_spill] sm:$0xff] %v4759_v24  ;;  %v1049_v25 = vsub.f32 %v4587_v63, %v4756_v46  ;;  %3544 = vpow2.f32 %v1068_v42  ;;  %v1048_v31 = vsub.f32 %v4579_v59, %v4759_v24  ;;  %v4781_v42 = vld [vmem:[#allocation3 + $0xa8] sm:$0xff]  ;;  %v4788_v63 = vld [vmem:[#allocation3 + $0xa0] sm:$0xff] }
 0x2af   : > { %1690 = vst [vmem:[#allocation3 + $0x98] sm:$0xff] %v4756_v46  ;;  %1689 = vst [vmem:[#allocation3 + $0x90] sm:$0xff] %v4759_v24  ;;  %v849_v44 = vpop.xlane.xlu1 %848  ;;  %v847_v57 = vpop.xlane.xlu0 %846  ;;  %3546 = vpow2.f32 %v1066_v27  ;;  %v4985_v46 = vld [vmem:[#allocation3 + $0x78] sm:$0xff] }
 0x2b0   : > { %v1100_v47 = vmul.f32 1.442695, %v1049_v25  ;;  %v4776_v49 = vmax.f32 %v4761_v30, %v849_v44  ;;  %v1098_v23 = vmul.f32 1.442695, %v1048_v31  ;;  %v4779_v20 = vmax.f32 %v4768_v22, %v847_v57  ;;  %6415 = vst [vmem:[#allocation76_spill] sm:$0xff] %v4781_v42  ;;  %6416 = vst [vmem:[#allocation77_spill] sm:$0xff] %v4788_v63  ;;  %v3537_v25 = vpop.eup %3536 }
 0x2b1   : > { %v4795_v59 = vpop.eup %3538  ;;  %1190 = vadd.xlane.f32.xlu0 %v3537_v25 }
 0x2b2   : > { %v1035_v21 = vsub.f32 %v4605_v8, %v4776_v49  ;;  %1676 = vst [vmem:[#allocation3 + $0x28] sm:$0xff] %v4776_v49  ;;  %v1034_v31 = vsub.f32 %v4597_v4, %v4779_v20  ;;  %1675 = vst [vmem:[#allocation3 + $0x20] sm:$0xff] %v4779_v20  ;;  %3548 = vpow2.f32 %v1100_v47  ;;  %v4805_v4 = vld [vmem:[#allocation3 + $0x38] sm:$0xff] }
 0x2b3   : > { %v881_v44 = vpop.xlane.xlu1 %880  ;;  %v879_v57 = vpop.xlane.xlu0 %878  ;;  %3550 = vpow2.f32 %v1098_v23 }
 0x2b4   : > { %v1072_v26 = vmul.f32 1.442695, %v1035_v21  ;;  %v4798_v8 = vmax.f32 %v4781_v42, %v881_v44  ;;  %v4800_v62 = vpop.eup %3540  ;;  %v1070_v58 = vmul.f32 1.442695, %v1034_v31  ;;  %v4803_v27 = vmax.f32 %v4788_v63, %v879_v57  ;;  %v4812_v21 = vld [vmem:[#allocation3 + $0x30] sm:$0xff]  ;;  %v4827_v31 = vld [vmem:[#allocation3 + $0xb8] sm:$0xff] }
 0x2b5   : > { %v1326_v44 = vpack.c.bf16 %v4800_v62, %v4795_v59  ;;  %v3543_v23 = vpop.eup %3542  ;;  %6419 = vst [vmem:[#allocation80_spill] sm:$0xff] %v4827_v31 }
 0x2b6   : > { %6417 = vst [vmem:[#allocation78_spill] sm:$0xff] %v4798_v8  ;;  %6418 = vst [vmem:[#allocation79_spill] sm:$0xff] %v4803_v27  ;;  %v1051_v47 = vsub.f32 %v4607_v9, %v4798_v8  ;;  %3552 = vpow2.f32 %v1072_v26  ;;  %v1050_v57 = vsub.f32 %v4599_v5, %v4803_v27  ;;  %1192 = vadd.xlane.f32.xlu1 %v3543_v23 }
 0x2b7   : > { %1692 = vst [vmem:[#allocation3 + $0xa8] sm:$0xff] %v4798_v8  ;;  %1691 = vst [vmem:[#allocation3 + $0xa0] sm:$0xff] %v4803_v27  ;;  %v853_v1 = vpop.xlane.xlu1 %852  ;;  %v851_v0 = vpop.xlane.xlu0 %850  ;;  %3296 = vmatprep.mubr.bf16.mxu1 %v1326_v44  ;;  %3554 = vpow2.f32 %v1070_v58  ;;  %v4847_v58 = vld [vmem:[#allocation3 + $0x48] sm:$0xff] }
 0x2b8   : > { %v1104_v9 = vmul.f32 1.442695, %v1051_v47  ;;  %v4822_v61 = vmax.f32 %v4805_v4, %v853_v1  ;;  %v3545_v60 = vpop.eup %3544  ;;  %v1102_v18 = vmul.f32 1.442695, %v1050_v57  ;;  %v4825_v26 = vmax.f32 %v4812_v21, %v851_v0  ;;  %v4834_v1 = vld [vmem:[#allocation3 + $0xb0] sm:$0xff] }
 0x2b9   : > { %v1318_v47 = vpack.c.bf16 %v3543_v23, %v3537_v25  ;;  %6420 = vst [vmem:[#allocation81_spill] sm:$0xff] %v4834_v1  ;;  %v3547_v44 = vpop.eup %3546 }
 0x2ba   : > { %v1037_v19 = vsub.f32 %v4601_v6, %v4822_v61  ;;  %1678 = vst [vmem:[#allocation3 + $0x38] sm:$0xff] %v4822_v61  ;;  %v1036_v0 = vsub.f32 %v4593_v2, %v4825_v26  ;;  %1677 = vst [vmem:[#allocation3 + $0x30] sm:$0xff] %v4825_v26  ;;  %3556 = vpow2.f32 %v1104_v9  ;;  %1196 = vadd.xlane.f32.xlu1 %v3545_v60  ;;  %1194 = vadd.xlane.f32.xlu0 %v3547_v44 }
 0x2bb   : > { %v885_v57 = vpop.xlane.xlu1 %884  ;;  %v883_v27 = vpop.xlane.xlu0 %882  ;;  %3280 = vmatprep.mubr.bf16.mxu0 %v1318_v47  ;;  %3558 = vpow2.f32 %v1102_v18  ;;  %v1319_v9 = vpack.c.bf16 %v3545_v60, %v3547_v44  ;;  %v4856_v47 = vld [vmem:[#allocation3 + $0x40] sm:$0xff] }
 0x2bc   : > { %v1076_v5 = vmul.f32 1.442695, %v1037_v19  ;;  %v4842_v6 = vmax.f32 %v4827_v31, %v885_v57  ;;  %v1074_v25 = vmul.f32 1.442695, %v1036_v0  ;;  %v4845_v23 = vmax.f32 %v4834_v1, %v883_v27  ;;  %v4849_v2 = vpop.eup %3548 }
 0x2bd   : > { %v4858_v18 = vpop.eup %3550  ;;  %3281 = vmatmul.mubr.bf16.vlgmr.msra.gmra.mrb[0].mxu0 %v1319_v9  ;;  %v4880_v9 = vld [vmem:[#allocation3 + $0xc0] sm:$0xff] }
 0x2be   : > { %6421 = vst [vmem:[#allocation82_spill] sm:$0xff] %v4842_v6  ;;  %6422 = vst [vmem:[#allocation83_spill] sm:$0xff] %v4845_v23  ;;  %v1053_v19 = vsub.f32 %v4603_v7, %v4842_v6  ;;  %3560 = vpow2.f32 %v1076_v5  ;;  %v1052_v0 = vsub.f32 %v4595_v3, %v4845_v23 }
 0x2bf   : > { %1694 = vst [vmem:[#allocation3 + $0xb8] sm:$0xff] %v4842_v6  ;;  %1693 = vst [vmem:[#allocation3 + $0xb0] sm:$0xff] %v4845_v23  ;;  %v857_v57 = vpop.xlane.xlu1 %856  ;;  %v855_v63 = vpop.xlane.xlu0 %854  ;;  %3562 = vpow2.f32 %v1074_v25  ;;  %v4871_v6 = vld [vmem:[#allocation3 + $0xc8] sm:$0xff] }
 0x2c0   : > { %v1108_v31 = vmul.f32 1.442695, %v1053_v19  ;;  %v4866_v7 = vmax.f32 %v4847_v58, %v857_v57  ;;  %v3553_v60 = vpop.eup %3552  ;;  %v1106_v44 = vmul.f32 1.442695, %v1052_v0  ;;  %v4869_v5 = vmax.f32 %v4856_v47, %v855_v63  ;;  %6423 = vst [vmem:[#allocation84_spill] sm:$0xff] %v4871_v6  ;;  %6424 = vst [vmem:[#allocation85_spill] sm:$0xff] %v4880_v9 }
 0x2c1   : > { %v1327_v19 = vpack.c.bf16 %v4849_v2, %v4858_v18  ;;  %1200 = vadd.xlane.f32.xlu1 %v3553_v60  ;;  %v3555_v25 = vpop.eup %3554  ;;  %v4893_v63 = vld [vmem:[#allocation3 + $0x58] sm:$0xff] }
 0x2c2   : > { %v1039_v3 = vsub.f32 %v4621_v16, %v4866_v7  ;;  %1680 = vst [vmem:[#allocation3 + $0x48] sm:$0xff] %v4866_v7  ;;  %v1038_v0 = vsub.f32 %v4613_v12, %v4869_v5  ;;  %1679 = vst [vmem:[#allocation3 + $0x40] sm:$0xff] %v4869_v5  ;;  %3564 = vpow2.f32 %v1108_v31  ;;  %1198 = vadd.xlane.f32.xlu0 %v3555_v25 }
 0x2c3   : > { %v889_v57 = vpop.xlane.xlu1 %888  ;;  %v887_v27 = vpop.xlane.xlu0 %886  ;;  %3297 = vmatmul.mubr.bf16.vlgmr.msra.gmra.mrb[0].mxu1 %v1327_v19  ;;  %3566 = vpow2.f32 %v1106_v44  ;;  %v1320_v31 = vpack.c.bf16 %v3553_v60, %v3555_v25  ;;  %v4902_v19 = vld [vmem:[#allocation3 + $0x50] sm:$0xff] }
 0x2c4   : > { %v1080_v16 = vmul.f32 1.442695, %v1039_v3  ;;  %v4888_v23 = vmax.f32 %v4871_v6, %v889_v57  ;;  %v1078_v1 = vmul.f32 1.442695, %v1038_v0  ;;  %v4891_v8 = vmax.f32 %v4880_v9, %v887_v27  ;;  %v4895_v42 = vpop.eup %3556 }
 0x2c5   : > { %v4904_v44 = vpop.eup %3558  ;;  %3284 = vmatprep.mubr.bf16.mxu0 %v1320_v31  ;;  %v4926_v31 = vld [vmem:[#allocation3 + $0xd0] sm:$0xff] }
 0x2c6   : > { %6425 = vst [vmem:[#allocation86_spill] sm:$0xff] %v4888_v23  ;;  %6426 = vst [vmem:[#allocation87_spill] sm:$0xff] %v4891_v8  ;;  %v1055_v3 = vsub.f32 %v4623_v17, %v4888_v23  ;;  %3568 = vpow2.f32 %v1080_v16  ;;  %v1054_v0 = vsub.f32 %v4615_v13, %v4891_v8 }
 0x2c7   : > { %1696 = vst [vmem:[#allocation3 + $0xc8] sm:$0xff] %v4888_v23  ;;  %1695 = vst [vmem:[#allocation3 + $0xc0] sm:$0xff] %v4891_v8  ;;  %v861_v57 = vpop.xlane.xlu1 %860  ;;  %v859_v12 = vpop.xlane.xlu0 %858  ;;  %3570 = vpow2.f32 %v1078_v1  ;;  %v4917_v23 = vld [vmem:[#allocation3 + $0xd8] sm:$0xff] }
 0x2c8   : > { %v1112_v6 = vmul.f32 1.442695, %v1055_v3  ;;  %v4912_v17 = vmax.f32 %v4893_v63, %v861_v57  ;;  %v3561_v60 = vpop.eup %3560  ;;  %v1110_v25 = vmul.f32 1.442695, %v1054_v0  ;;  %v4915_v16 = vmax.f32 %v4902_v19, %v859_v12  ;;  %6427 = vst [vmem:[#allocation88_spill] sm:$0xff] %v4917_v23  ;;  %6428 = vst [vmem:[#allocation89_spill] sm:$0xff] %v4926_v31 }
 0x2c9   : > { %v1328_v3 = vpack.c.bf16 %v4895_v42, %v4904_v44  ;;  %1204 = vadd.xlane.f32.xlu1 %v3561_v60  ;;  %v3563_v1 = vpop.eup %3562  ;;  %v4939_v12 = vld [vmem:[#allocation3 + $0x68] sm:$0xff] }
 0x2ca   : > { %v1041_v13 = vsub.f32 %v4617_v14, %v4912_v17  ;;  %1682 = vst [vmem:[#allocation3 + $0x58] sm:$0xff] %v4912_v17  ;;  %v1040_v0 = vsub.f32 %v4609_v10, %v4915_v16  ;;  %1681 = vst [vmem:[#allocation3 + $0x50] sm:$0xff] %v4915_v16  ;;  %3572 = vpow2.f32 %v1112_v6  ;;  %1202 = vadd.xlane.f32.xlu0 %v3563_v1 }
 0x2cb   : > { %v893_v57 = vpop.xlane.xlu1 %892  ;;  %v891_v27 = vpop.xlane.xlu0 %890  ;;  %3300 = vmatprep.mubr.bf16.mxu1 %v1328_v3  ;;  %3574 = vpow2.f32 %v1110_v25  ;;  %v4948_v3 = vld [vmem:[#allocation3 + $0x60] sm:$0xff] }
 0x2cc   : > { %v1084_v14 = vmul.f32 1.442695, %v1041_v13  ;;  %v4934_v8 = vmax.f32 %v4917_v23, %v893_v57  ;;  %v1082_v9 = vmul.f32 1.442695, %v1040_v0  ;;  %v4937_v24 = vmax.f32 %v4926_v31, %v891_v27  ;;  %v4941_v32 = vpop.eup %3564 }
 0x2cd   : > { %v1321_v13 = vpack.c.bf16 %v3561_v60, %v3563_v1  ;;  %v4950_v25 = vpop.eup %3566 }
 0x2ce   : > { %6429 = vst [vmem:[#allocation90_spill] sm:$0xff] %v4934_v8  ;;  %6430 = vst [vmem:[#allocation91_spill] sm:$0xff] %v4937_v24  ;;  %v1057_v6 = vsub.f32 %v4619_v15, %v4934_v8  ;;  %3576 = vpow2.f32 %v1084_v14  ;;  %v1056_v0 = vsub.f32 %v4611_v11, %v4937_v24 }
 0x2cf   : > { %1698 = vst [vmem:[#allocation3 + $0xd8] sm:$0xff] %v4934_v8  ;;  %1697 = vst [vmem:[#allocation3 + $0xd0] sm:$0xff] %v4937_v24  ;;  %v865_v57 = vpop.xlane.xlu1 %864  ;;  %v863_v10 = vpop.xlane.xlu0 %862  ;;  %3285 = vmatmul.mubr.bf16.gmra.mrb[4].mxu0 %v1321_v13  ;;  %3578 = vpow2.f32 %v1082_v9  ;;  %v4963_v8 = vld [vmem:[#allocation3 + $0xe8] sm:$0xff]  ;;  %v4972_v13 = vld [vmem:[#allocation3 + $0xe0] sm:$0xff] }
 0x2d0   : > { %v1116_v23 = vmul.f32 1.442695, %v1057_v6  ;;  %v4958_v15 = vmax.f32 %v4939_v12, %v865_v57  ;;  %v3569_v60 = vpop.eup %3568  ;;  %v1114_v1 = vmul.f32 1.442695, %v1056_v0  ;;  %v4961_v14 = vmax.f32 %v4948_v3, %v863_v10  ;;  %6431 = vst [vmem:[#allocation92_spill] sm:$0xff] %v4963_v8  ;;  %6432 = vst [vmem:[#allocation93_spill] sm:$0xff] %v4972_v13 }
 0x2d1   : > { %v1329_v6 = vpack.c.bf16 %v4941_v32, %v4950_v25  ;;  %1208 = vadd.xlane.f32.xlu1 %v3569_v60  ;;  %v3571_v9 = vpop.eup %3570 }
 0x2d2   : > { %v1043_v11 = vsub.f32 %v4637_v40, %v4958_v15  ;;  %1684 = vst [vmem:[#allocation3 + $0x68] sm:$0xff] %v4958_v15  ;;  %3580 = vpow2.f32 %v1116_v23  ;;  %v1042_v0 = vsub.f32 %v4629_v36, %v4961_v14  ;;  %1683 = vst [vmem:[#allocation3 + $0x60] sm:$0xff] %v4961_v14  ;;  %1206 = vadd.xlane.f32.xlu0 %v3571_v9 }
 0x2d3   : > { %v897_v57 = vpop.xlane.xlu1 %896  ;;  %v895_v27 = vpop.xlane.xlu0 %894  ;;  %3301 = vmatmul.mubr.bf16.gmra.mrb[4].mxu1 %v1329_v6  ;;  %3582 = vpow2.f32 %v1114_v1  ;;  %v1322_v6 = vpack.c.bf16 %v3569_v60, %v3571_v9 }
 0x2d4   : > { %v1088_v40 = vmul.f32 1.442695, %v1043_v11  ;;  %v4980_v24 = vmax.f32 %v4963_v8, %v897_v57  ;;  %v1086_v31 = vmul.f32 1.442695, %v1042_v0  ;;  %v4983_v23 = vmax.f32 %v4972_v13, %v895_v27  ;;  %v4987_v10 = vpop.eup %3572  ;;  %v4994_v57 = vld [vmem:[#allocation3 + $0x70] sm:$0xff] }
 0x2d5   : > { %v4996_v1 = vpop.eup %3574  ;;  %3288 = vmatprep.mubr.bf16.mxu0 %v1322_v6 }
 0x2d6   : > { %6433 = vst [vmem:[#allocation94_spill] sm:$0xff] %v4980_v24  ;;  %6434 = vst [vmem:[#allocation95_spill] sm:$0xff] %v4983_v23  ;;  %v1059_v11 = vsub.f32 %v4639_v41, %v4980_v24  ;;  %3584 = vpow2.f32 %v1088_v40  ;;  %v1058_v0 = vsub.f32 %v4631_v37, %v4983_v23 }
 0x2d7   : > { %1700 = vst [vmem:[#allocation3 + $0xe8] sm:$0xff] %v4980_v24  ;;  %1699 = vst [vmem:[#allocation3 + $0xe0] sm:$0xff] %v4983_v23  ;;  %v869_v36 = vpop.xlane.xlu1 %868  ;;  %v867_v8 = vpop.xlane.xlu0 %866  ;;  %3586 = vpow2.f32 %v1086_v31  ;;  %v5009_v24 = vld [vmem:[#allocation3 + $0xf8] sm:$0xff] }
 0x2d8   : > { %v1120_v29 = vmul.f32 1.442695, %v1059_v11  ;;  %v5004_v41 = vmax.f32 %v4985_v46, %v869_v36  ;;  %v3577_v60 = vpop.eup %3576  ;;  %v1118_v9 = vmul.f32 1.442695, %v1058_v0  ;;  %v5007_v40 = vmax.f32 %v4994_v57, %v867_v8  ;;  %6435 = vst [vmem:[#allocation96_spill] sm:$0xff] %v5009_v24  ;;  %v5018_v11 = vld [vmem:[#allocation3 + $0xf0] sm:$0xff] }
 0x2d9   : > { %v1330_v36 = vpack.c.bf16 %v4987_v10, %v4996_v1  ;;  %1212 = vadd.xlane.f32.xlu1 %v3577_v60  ;;  %v3579_v31 = vpop.eup %3578 }
 0x2da   : > { %v1045_v37 = vsub.f32 %v4633_v38, %v5004_v41  ;;  %1686 = vst [vmem:[#allocation3 + $0x78] sm:$0xff] %v5004_v41  ;;  %3588 = vpow2.f32 %v1120_v29  ;;  %v1044_v6 = vsub.f32 %v4625_v34, %v5007_v40  ;;  %1685 = vst [vmem:[#allocation3 + $0x70] sm:$0xff] %v5007_v40  ;;  %1210 = vadd.xlane.f32.xlu0 %v3579_v31 }
 0x2db   : > { %v901_v0 = vpop.xlane.xlu1 %900  ;;  %v899_v27 = vpop.xlane.xlu0 %898  ;;  %3304 = vmatprep.mubr.bf16.mxu1 %v1330_v36  ;;  %3590 = vpow2.f32 %v1118_v9 }
 0x2dc   : > { %v1092_v38 = vmul.f32 1.442695, %v1045_v37  ;;  %v5026_v23 = vmax.f32 %v5009_v24, %v901_v0  ;;  %v3581_v13 = vpop.eup %3580  ;;  %v1090_v54 = vmul.f32 1.442695, %v1044_v6  ;;  %v5029_v29 = vmax.f32 %v5018_v11, %v899_v27 }
 0x2dd   : > { %v1323_v37 = vpack.c.bf16 %v3577_v60, %v3579_v31  ;;  %v3583_v36 = vpop.eup %3582 }
 0x2de   : > { %6436 = vst [vmem:[#allocation97_spill] sm:$0xff] %v5029_v29  ;;  %v1061_v34 = vsub.f32 %v4635_v39, %v5026_v23  ;;  %1702 = vst [vmem:[#allocation3 + $0xf8] sm:$0xff] %v5026_v23  ;;  %3592 = vpow2.f32 %v1092_v38  ;;  %v1060_v9 = vsub.f32 %v4627_v35, %v5029_v29  ;;  %v1331_v6 = vpack.c.bf16 %v3581_v13, %v3583_v36 }
 0x2df   : > { %1701 = vst [vmem:[#allocation3 + $0xf0] sm:$0xff] %v5029_v29  ;;  %3289 = vmatmul.mubr.bf16.gmra.mrb[8].mxu0 %v1323_v37  ;;  %3594 = vpow2.f32 %v1090_v54 }
 0x2e0   : > { %v1124_v27 = vmul.f32 1.442695, %v1061_v34  ;;  %v3585_v8 = vpop.eup %3584  ;;  %v1122_v24 = vmul.f32 1.442695, %v1060_v9  ;;  %3305 = vmatmul.mubr.bf16.gmra.mrb[8].mxu1 %v1331_v6 }
 0x2e1   : > { %1216 = vadd.xlane.f32.xlu1 %v3585_v8  ;;  %v3587_v39 = vpop.eup %3586 }
 0x2e2   : > { %3596 = vpow2.f32 %v1124_v27  ;;  %1214 = vadd.xlane.f32.xlu0 %v3587_v39  ;;  %v1324_v38 = vpack.c.bf16 %v3585_v8, %v3587_v39 }
 0x2e3   : > { %3598 = vpow2.f32 %v1122_v24  ;;  %v6437_v24 = vsub.f32 %v4693_v51, %v4699_v55  ;;  %v6441_v51 = vsub.f32 %v4761_v30, %v4776_v49  ;;  %v6443_v49 = vsub.f32 %v4805_v4, %v4822_v61 }
 0x2e4   : > { %v3589_v60 = vpop.eup %3588  ;;  %3292 = vmatprep.mubr.bf16.mxu0 %v1324_v38 }
 0x2e5   : > { %v3591_v31 = vpop.eup %3590  ;;  %v976_v55 = vmul.f32 1.442695, %v6441_v51  ;;  %v980_v30 = vmul.f32 1.442695, %v6443_v49  ;;  %v6447_v51 = vsub.f32 %v4893_v63, %v4912_v17  ;;  %v1135_v17 = vld [vmem:[#allocation4 + $0x48] sm:$0xff]  ;;  %v6449_v49 = vsub.f32 %v4939_v12, %v4958_v15  ;;  %v1137_v15 = vld [vmem:[#allocation4 + $0x58] sm:$0xff] }
 0x2e6   : > { %v1332_v0 = vpack.c.bf16 %v3589_v60, %v3591_v31 }
 0x2e8   : > { %v3593_v35 = vpop.eup %3592  ;;  %3308 = vmatprep.mubr.bf16.mxu1 %v1332_v0 }
 0x2e9   : > { %1220 = vadd.xlane.f32.xlu1 %v3593_v35  ;;  %v3595_v34 = vpop.eup %3594 }
 0x2ea   : > { %1218 = vadd.xlane.f32.xlu0 %v3595_v34  ;;  %v1325_v37 = vpack.c.bf16 %v3593_v35, %v3595_v34  ;;  %v6439_v35 = vsub.f32 %v4721_v53, %v4736_v43  ;;  %v1131_v34 = vld [vmem:[#allocation4 + $0x28] sm:$0xff] }
 0x2ec   : > { %v3597_v29 = vpop.eup %3596  ;;  %3293 = vmatmul.mubr.bf16.gmra.mrb[12].mxu0 %v1325_v37  ;;  %v972_v39 = vmul.f32 1.442695, %v6439_v35 }
 0x2ed   : > { %1224 = vadd.xlane.f32.xlu1 %v4800_v62  ;;  %v3599_v54 = vpop.eup %3598  ;;  %v6438_v62 = vsub.f32 %v4713_v45, %v4719_v52  ;;  %v6442_v45 = vsub.f32 %v4768_v22, %v4779_v20  ;;  %v1129_v22 = vld [vmem:[#allocation4 + $0x18] sm:$0xff] }
 0x2ee   : > { %1222 = vadd.xlane.f32.xlu0 %v4795_v59  ;;  %v1333_v9 = vpack.c.bf16 %v3597_v29, %v3599_v54  ;;  %v966_v59 = vmul.f32 1.442695, %v6437_v24  ;;  %v6446_v24 = vsub.f32 %v4856_v47, %v4869_v5  ;;  %v988_v47 = vmul.f32 1.442695, %v6447_v51  ;;  %v1132_v5 = vld [vmem:[#allocation4 + $0x30] sm:$0xff] }
 0x2ef   : > { %v974_v52 = vmul.f32 1.442695, %v6442_v45  ;;  %v6459_v51 = vld [vmem:[#allocation73_spill] sm:$0xff] }
 0x2f0   : > { %3309 = vmatmul.mubr.bf16.gmra.mrb[12].mxu1 %v1333_v9  ;;  %3600 = vpow2.f32 %v966_v59  ;;  %v982_v59 = vmul.f32 1.442695, %v6446_v24 }
 0x2f1   : > { %1228 = vadd.xlane.f32.xlu1 %v4849_v2  ;;  %v968_v2 = vmul.f32 1.442695, %v6438_v62 }
 0x2f2   : > { %1226 = vadd.xlane.f32.xlu0 %v4858_v18 }
 0x2f3   : > { %3602 = vpow2.f32 %v968_v2 }
 0x2f4   : > { %3604 = vpow2.f32 %v972_v39 }
 0x2f5   : > { %1232 = vadd.xlane.f32.xlu1 %v4895_v42 }
 0x2f6   : > { %1230 = vadd.xlane.f32.xlu0 %v4904_v44  ;;  %v1126_v44 = vld [vmem:[#allocation4] sm:$0xff] }
 0x2f9   : > { %1236 = vadd.xlane.f32.xlu1 %v4941_v32  ;;  %v6440_v32 = vsub.f32 %v4728_v33, %v4739_v28  ;;  %v1127_v33 = vld [vmem:[#allocation4 + $0x8] sm:$0xff] }
 0x2fa   : > { %1234 = vadd.xlane.f32.xlu0 %v4950_v25  ;;  %v5063_v18 = vpop.eup %3600 }
 0x2fb   : > { %v970_v42 = vmul.f32 1.442695, %v6440_v32  ;;  %v1158_v43 = vmul.f32 %v5063_v18, %v1126_v44  ;;  %v6448_v44 = vsub.f32 %v4902_v19, %v4915_v16  ;;  %v992_v19 = vmul.f32 1.442695, %v6449_v49  ;;  %v1134_v16 = vld [vmem:[#allocation4 + $0x40] sm:$0xff] }
 0x2fd   : > { %1240 = vadd.xlane.f32.xlu1 %v4987_v10  ;;  %3606 = vpow2.f32 %v970_v42  ;;  %v5072_v53 = vpop.eup %3602  ;;  %v986_v45 = vmul.f32 1.442695, %v6448_v44 }
 0x2fe   : > { %1238 = vadd.xlane.f32.xlu0 %v4996_v1  ;;  %3608 = vpow2.f32 %v976_v55  ;;  %v5075_v10 = vpop.eup %3604 }
 0x2ff   : > { %3610 = vpow2.f32 %v974_v52  ;;  %v1161_v27 = vmul.f32 %v5075_v10, %v1129_v22 }
 0x300   : > { %3612 = vpow2.f32 %v980_v30 }
 0x301   : > { %1244 = vadd.xlane.f32.xlu1 %v3581_v13  ;;  %v1159_v13 = vmul.f32 %v5072_v53, %v1127_v33 }
 0x302   : > { %1242 = vadd.xlane.f32.xlu0 %v3583_v36  ;;  %v6444_v36 = vsub.f32 %v4812_v21, %v4825_v26  ;;  %v6445_v21 = vsub.f32 %v4847_v58, %v4866_v7  ;;  %v1133_v7 = vld [vmem:[#allocation4 + $0x38] sm:$0xff] }
 0x304   : > { %v978_v0 = vmul.f32 1.442695, %v6444_v36  ;;  %v984_v26 = vmul.f32 1.442695, %v6445_v21 }
 0x305   : > { %1248 = vadd.xlane.f32.xlu1 %v3589_v60 }
 0x306   : > { %1246 = vadd.xlane.f32.xlu0 %v3591_v31  ;;  %3614 = vpow2.f32 %v978_v0 }
 0x307   : > { %v5080_v1 = vpop.eup %3606  ;;  %3616 = vpow2.f32 %v984_v26 }
 0x308   : > { %v5087_v4 = vpop.eup %3608  ;;  %3618 = vpow2.f32 %v982_v59  ;;  %v6454_v59 = vld [vmem:[#allocation71_spill] sm:$0xff] }
 0x309   : > { %1252 = vadd.xlane.f32.xlu1 %v3597_v29  ;;  %v1128_v29 = vld [vmem:[#allocation4 + $0x10] sm:$0xff]  ;;  %v5089_v37 = vpop.eup %3610  ;;  %v1163_v9 = vmul.f32 %v5087_v4, %v1131_v34  ;;  %3620 = vpow2.f32 %v988_v47  ;;  %v6460_v47 = vld [vmem:[#allocation75_spill] sm:$0xff] }
 0x30a   : > { %1250 = vadd.xlane.f32.xlu0 %v3599_v54  ;;  %v1160_v38 = vmul.f32 %v5080_v1, %v1128_v29  ;;  %v1130_v54 = vld [vmem:[#allocation4 + $0x20] sm:$0xff]  ;;  %v5099_v42 = vpop.eup %3612  ;;  %3622 = vpow2.f32 %v986_v45 }
 0x30b   : > { %v1162_v35 = vmul.f32 %v5089_v37, %v1130_v54  ;;  %v1165_v55 = vmul.f32 %v5099_v42, %v1133_v7  ;;  %3624 = vpow2.f32 %v992_v19  ;;  %v6453_v54 = vsub.f32 %v4701_v56, %v4716_v48  ;;  %v6465_v19 = vld [vmem:[#allocation77_spill] sm:$0xff] }
 0x310   : > { %v5101_v58 = vpop.eup %3614 }
 0x33e   : > { %v1191_v28 = vpop.xlane.xlu0 %1190 }
 0x33f   : > { %v1254_v25 = vadd.f32 %v1191_v28, %v1158_v43  ;;  %v1164_v28 = vmul.f32 %v5101_v58, %v1132_v5  ;;  %v6461_v5 = vsub.f32 %v6459_v51, %v6460_v47 }
 0x341   : > { %1286 = vst [vmem:[#allocation4] sm:$0xff] %v1254_v25 }
 0x343   : > { %v1193_v20 = vpop.xlane.xlu1 %1192 }
 0x344   : > { %v1255_v8 = vadd.f32 %v1193_v20, %v1159_v13  ;;  %v5111_v13 = vpop.eup %3616  ;;  %v6450_v20 = vsub.f32 %v4948_v3, %v4961_v14  ;;  %v1136_v14 = vld [vmem:[#allocation4 + $0x50] sm:$0xff] }
 0x345   : > { %v5113_v63 = vpop.eup %3618  ;;  %v1167_v30 = vmul.f32 %v5111_v13, %v1135_v17 }
 0x346   : > { %1287 = vst [vmem:[#allocation4 + $0x8] sm:$0xff] %v1255_v8  ;;  %v990_v22 = vmul.f32 1.442695, %v6450_v20  ;;  %v1166_v36 = vmul.f32 %v5113_v63, %v1134_v16  ;;  %v6466_v16 = vld [vmem:[#allocation79_spill] sm:$0xff] }
 0x347   : > { %v1197_v6 = vpop.xlane.xlu1 %1196  ;;  %v1195_v61 = vpop.xlane.xlu0 %1194 }
 0x348   : > { %v1257_v60 = vadd.f32 %v1197_v6, %v1161_v27  ;;  %v1256_v31 = vadd.f32 %v1195_v61, %v1160_v38  ;;  %v5123_v6 = vpop.eup %3620  ;;  %3626 = vpow2.f32 %v990_v22  ;;  %v6451_v38 = vsub.f32 %v4985_v46, %v5004_v41  ;;  %v1141_v22 = vld [vmem:[#allocation4 + $0x78] sm:$0xff] }
 0x349   : > { %v5125_v12 = vpop.eup %3622  ;;  %v6452_v61 = vsub.f32 %v4994_v57, %v5007_v40  ;;  %v1139_v57 = vld [vmem:[#allocation4 + $0x68] sm:$0xff] }
 0x34a   : > { %1289 = vst [vmem:[#allocation4 + $0x18] sm:$0xff] %v1257_v60  ;;  %1288 = vst [vmem:[#allocation4 + $0x10] sm:$0xff] %v1256_v31  ;;  %v996_v3 = vmul.f32 1.442695, %v6451_v38  ;;  %v1169_v60 = vmul.f32 %v5123_v6, %v1137_v15  ;;  %v1168_v26 = vmul.f32 %v5125_v12, %v1136_v14  ;;  %v5138_v46 = vpop.eup %3624  ;;  %v1140_v15 = vld [vmem:[#allocation4 + $0x70] sm:$0xff] }
 0x34b   : > { %v994_v31 = vmul.f32 1.442695, %v6452_v61  ;;  %v1171_v7 = vmul.f32 %v5138_v46, %v1139_v57  ;;  %v6471_v14 = vld [vmem:[#allocation81_spill] sm:$0xff]  ;;  %v1142_v57 = vld [vmem:[#allocation4 + $0x80] sm:$0xff] }
 0x34c   : > { %3628 = vpow2.f32 %v996_v3 }
 0x34d   : > { %3630 = vpow2.f32 %v994_v31 }
 0x34e   : > { %v1201_v62 = vpop.xlane.xlu1 %1200 }
 0x34f   : > { %v1259_v2 = vadd.f32 %v1201_v62, %v1163_v9  ;;  %v1199_v39 = vpop.xlane.xlu0 %1198  ;;  %v1000_v9 = vmul.f32 1.442695, %v6453_v54  ;;  %v6455_v62 = vsub.f32 %v4691_v50, %v6454_v59 }
 0x350   : > { %v1258_v32 = vadd.f32 %v1199_v39, %v1162_v35  ;;  %v6456_v35 = vld [vmem:[#allocation72_spill] sm:$0xff]  ;;  %v6457_v39 = vld [vmem:[#allocation74_spill] sm:$0xff] }
 0x351   : > { %1291 = vst [vmem:[#allocation4 + $0x28] sm:$0xff] %v1259_v2  ;;  %v998_v2 = vmul.f32 1.442695, %v6455_v62  ;;  %3632 = vpow2.f32 %v1000_v9  ;;  %v6458_v56 = vsub.f32 %v6456_v35, %v6457_v39 }
 0x352   : > { %1290 = vst [vmem:[#allocation4 + $0x20] sm:$0xff] %v1258_v32  ;;  %v5143_v40 = vpop.eup %3626  ;;  %v1138_v32 = vld [vmem:[#allocation4 + $0x60] sm:$0xff] }
 0x353   : > { %v1004_v48 = vmul.f32 1.442695, %v6458_v56  ;;  %3634 = vpow2.f32 %v998_v2  ;;  %v1170_v45 = vmul.f32 %v5143_v40, %v1138_v32  ;;  %v6478_v32 = vld [vmem:[#allocation87_spill] sm:$0xff] }
 0x355   : > { %3636 = vpow2.f32 %v1004_v48  ;;  %v6477_v48 = vld [vmem:[#allocation85_spill] sm:$0xff] }
 0x356   : > { %v1205_v52 = vpop.xlane.xlu1 %1204  ;;  %v5156_v49 = vpop.eup %3628 }
 0x357   : > { %v1261_v43 = vadd.f32 %v1205_v52, %v1165_v55  ;;  %v1203_v33 = vpop.xlane.xlu0 %1202  ;;  %v1002_v55 = vmul.f32 1.442695, %v6461_v5  ;;  %v6462_v52 = vld [vmem:[#allocation76_spill] sm:$0xff]  ;;  %v1173_v38 = vmul.f32 %v5156_v49, %v1141_v22  ;;  %v1145_v5 = vld [vmem:[#allocation4 + $0x98] sm:$0xff] }
 0x358   : > { %v1260_v25 = vadd.f32 %v1203_v33, %v1164_v28 }
 0x359   : > { %1293 = vst [vmem:[#allocation4 + $0x38] sm:$0xff] %v1261_v43  ;;  %v6463_v43 = vld [vmem:[#allocation78_spill] sm:$0xff]  ;;  %3638 = vpow2.f32 %v1002_v55 }
 0x35a   : > { %1292 = vst [vmem:[#allocation4 + $0x30] sm:$0xff] %v1260_v25  ;;  %v6464_v28 = vsub.f32 %v6462_v52, %v6463_v43  ;;  %v6481_v52 = vld [vmem:[#allocation90_spill] sm:$0xff] }
 0x35c   : > { %v1008_v33 = vmul.f32 1.442695, %v6464_v28 }
 0x35e   : > { %v1209_v8 = vpop.xlane.xlu1 %1208  ;;  %3640 = vpow2.f32 %v1008_v33 }
 0x35f   : > { %v1263_v29 = vadd.f32 %v1209_v8, %v1167_v30  ;;  %v1207_v0 = vpop.xlane.xlu0 %1206  ;;  %v6467_v30 = vsub.f32 %v6465_v19, %v6466_v16  ;;  %v5161_v8 = vpop.eup %3630 }
 0x360   : > { %v1262_v27 = vadd.f32 %v1207_v0, %v1166_v36  ;;  %v6469_v36 = vld [vmem:[#allocation82_spill] sm:$0xff]  ;;  %v5167_v3 = vpop.eup %3632  ;;  %v1172_v54 = vmul.f32 %v5161_v8, %v1140_v15 }
 0x361   : > { %1295 = vst [vmem:[#allocation4 + $0x48] sm:$0xff] %v1263_v29  ;;  %v1006_v20 = vmul.f32 1.442695, %v6467_v30  ;;  %v6468_v29 = vld [vmem:[#allocation80_spill] sm:$0xff]  ;;  %v5173_v9 = vpop.eup %3634  ;;  %v6483_v30 = vld [vmem:[#allocation89_spill] sm:$0xff] }
 0x362   : > { %1294 = vst [vmem:[#allocation4 + $0x40] sm:$0xff] %v1262_v27  ;;  %v6470_v0 = vsub.f32 %v6468_v29, %v6469_v36  ;;  %v5179_v56 = vpop.eup %3636 }
 0x363   : > { %3642 = vpow2.f32 %v1006_v20  ;;  %v1177_v19 = vmul.f32 %v5179_v56, %v1145_v5  ;;  %v6484_v20 = vld [vmem:[#allocation91_spill] sm:$0xff] }
 0x364   : > { %v1012_v27 = vmul.f32 1.442695, %v6470_v0  ;;  %v6485_v22 = vsub.f32 %v6483_v30, %v6484_v20  ;;  %v1147_v0 = vld [vmem:[#allocation4 + $0xa8] sm:$0xff] }
 0x366   : > { %v1213_v34 = vpop.xlane.xlu1 %1212  ;;  %3644 = vpow2.f32 %v1012_v27  ;;  %v1018_v29 = vmul.f32 1.442695, %v6485_v22  ;;  %v1150_v22 = vld [vmem:[#allocation4 + $0xc0] sm:$0xff] }
 0x367   : > { %v1265_v21 = vadd.f32 %v1213_v34, %v1169_v60  ;;  %v1211_v24 = vpop.xlane.xlu0 %1210  ;;  %v6472_v60 = vld [vmem:[#allocation83_spill] sm:$0xff] }
 0x368   : > { %v1264_v41 = vadd.f32 %v1211_v24, %v1168_v26  ;;  %v6473_v61 = vsub.f32 %v6471_v14, %v6472_v60  ;;  %v6474_v24 = vld [vmem:[#allocation84_spill] sm:$0xff]  ;;  %v6487_v60 = vld [vmem:[#allocation94_spill] sm:$0xff] }
 0x369   : > { %1297 = vst [vmem:[#allocation4 + $0x58] sm:$0xff] %v1265_v21  ;;  %v1143_v21 = vld [vmem:[#allocation4 + $0x88] sm:$0xff] }
 0x36a   : > { %1296 = vst [vmem:[#allocation4 + $0x50] sm:$0xff] %v1264_v41  ;;  %v1010_v31 = vmul.f32 1.442695, %v6473_v61  ;;  %v6475_v41 = vld [vmem:[#allocation86_spill] sm:$0xff]  ;;  %v1175_v39 = vmul.f32 %v5167_v3, %v1143_v21  ;;  %v6486_v14 = vld [vmem:[#allocation92_spill] sm:$0xff]  ;;  %v1146_v21 = vld [vmem:[#allocation4 + $0xa0] sm:$0xff] }
 0x36b   : > { %v6476_v59 = vsub.f32 %v6474_v24, %v6475_v41  ;;  %v6488_v61 = vsub.f32 %v6486_v14, %v6487_v60  ;;  %v6489_v41 = vld [vmem:[#allocation93_spill] sm:$0xff] }
 0x36c   : > { %3646 = vpow2.f32 %v1010_v31 }
 0x36d   : > { %v1016_v62 = vmul.f32 1.442695, %v6476_v59  ;;  %v1024_v31 = vmul.f32 1.442695, %v6488_v61  ;;  %v6490_v59 = vld [vmem:[#allocation95_spill] sm:$0xff] }
 0x36e   : > { %v1217_v50 = vpop.xlane.xlu1 %1216 }
 0x36f   : > { %v1267_v44 = vadd.f32 %v1217_v50, %v1171_v7  ;;  %v1215_v25 = vpop.xlane.xlu0 %1214  ;;  %v6479_v7 = vsub.f32 %v6477_v48, %v6478_v32  ;;  %v1174_v50 = vmul.f32 %v5173_v9, %v1142_v57  ;;  %3648 = vpow2.f32 %v1016_v62 }
 0x370   : > { %v1266_v17 = vadd.f32 %v1215_v25, %v1170_v45  ;;  %v6480_v45 = vld [vmem:[#allocation88_spill] sm:$0xff]  ;;  %v1144_v25 = vld [vmem:[#allocation4 + $0x90] sm:$0xff]  ;;  %v6491_v62 = vsub.f32 %v6489_v41, %v6490_v59 }
 0x371   : > { %1299 = vst [vmem:[#allocation4 + $0x68] sm:$0xff] %v1267_v44  ;;  %v1014_v51 = vmul.f32 1.442695, %v6479_v7  ;;  %v5185_v44 = vpop.eup %3638  ;;  %v6482_v43 = vsub.f32 %v6480_v45, %v6481_v52  ;;  %v6492_v7 = vld [vmem:[#allocation96_spill] sm:$0xff]  ;;  %v1545_v41 = vld [vmem:[#allocation5 + $0x10] sm:$0xff] }
 0x372   : > { %1298 = vst [vmem:[#allocation4 + $0x60] sm:$0xff] %v1266_v17  ;;  %v5191_v16 = vpop.eup %3640  ;;  %v1176_v15 = vmul.f32 %v5185_v44, %v1144_v25  ;;  %v1155_v59 = vld [vmem:[#allocation4 + $0xe8] sm:$0xff] }
 0x373   : > { %v1020_v28 = vmul.f32 1.442695, %v6482_v43  ;;  %3650 = vpow2.f32 %v1014_v51  ;;  %v6493_v51 = vsub.f32 %v6492_v7, %v5026_v23  ;;  %v6494_v43 = vld [vmem:[#allocation97_spill] sm:$0xff]  ;;  %v1154_v7 = vld [vmem:[#allocation4 + $0xe0] sm:$0xff] }
 0x375   : > { %3652 = vpow2.f32 %v1020_v28  ;;  %v6495_v28 = vsub.f32 %v5018_v11, %v6494_v43 }
 0x376   : > { %v1221_v34 = vpop.xlane.xlu1 %1220  ;;  %3654 = vpow2.f32 %v1018_v29 }
 0x377   : > { %v1269_v26 = vadd.f32 %v1221_v34, %v1173_v38  ;;  %v1219_v2 = vpop.xlane.xlu0 %1218  ;;  %v5197_v38 = vpop.eup %3642  ;;  %3656 = vpow2.f32 %v1024_v31  ;;  %v1152_v31 = vld [vmem:[#allocation4 + $0xd0] sm:$0xff] }
 0x378   : > { %v1268_v35 = vadd.f32 %v1219_v2, %v1172_v54  ;;  %v1179_v54 = vmul.f32 %v5191_v16, %v1147_v0  ;;  %v5203_v24 = vpop.eup %3644  ;;  %v1022_v2 = vmul.f32 1.442695, %v6491_v62  ;;  %v1178_v48 = vmul.f32 %v5197_v38, %v1146_v21 }
 0x379   : > { %1301 = vst [vmem:[#allocation4 + $0x78] sm:$0xff] %v1269_v26  ;;  %v5209_v32 = vpop.eup %3646 }
 0x37a   : > { %v1225_v47 = vpop.xlane.xlu1 %1224  ;;  %1300 = vst [vmem:[#allocation4 + $0x70] sm:$0xff] %v1268_v35  ;;  %v1149_v35 = vld [vmem:[#allocation4 + $0xb8] sm:$0xff]  ;;  %v5215_v52 = vpop.eup %3648  ;;  %3658 = vpow2.f32 %v1022_v2 }
 0x37b   : > { %v1271_v55 = vadd.f32 %v1225_v47, %v1175_v39  ;;  %v1223_v33 = vpop.xlane.xlu0 %1222  ;;  %v1028_v47 = vmul.f32 1.442695, %v6493_v51  ;;  %v1181_v45 = vmul.f32 %v5203_v24, %v1149_v35 }
 0x37c   : > { %v1270_v17 = vadd.f32 %v1223_v33, %v1174_v50  ;;  %v1026_v33 = vmul.f32 1.442695, %v6495_v28  ;;  %v1561_v28 = vld [vmem:[#allocation5 + $0x90] sm:$0xff] }
 0x37d   : > { %1303 = vst [vmem:[#allocation4 + $0x88] sm:$0xff] %v1271_v55  ;;  %v1148_v55 = vld [vmem:[#allocation4 + $0xb0] sm:$0xff]  ;;  %v5221_v30 = vpop.eup %3650  ;;  %3660 = vpow2.f32 %v1028_v47  ;;  %v1577_v47 = vmul.f32 %v5080_v1, %v1545_v41  ;;  %v1559_v1 = vld [vmem:[#allocation5 + $0x80] sm:$0xff] }
 0x37e   : > { %v1229_v36 = vpop.xlane.xlu1 %1228  ;;  %1302 = vst [vmem:[#allocation4 + $0x80] sm:$0xff] %v1270_v17  ;;  %v1151_v17 = vld [vmem:[#allocation4 + $0xc8] sm:$0xff]  ;;  %v1180_v23 = vmul.f32 %v5209_v32, %v1148_v55  ;;  %3662 = vpow2.f32 %v1026_v33  ;;  %v1182_v14 = vmul.f32 %v5221_v30, %v1150_v22 }
 0x37f   : > { %v1273_v27 = vadd.f32 %v1229_v36, %v1177_v19  ;;  %v1227_v34 = vpop.xlane.xlu0 %1226  ;;  %v1183_v36 = vmul.f32 %v5215_v52, %v1151_v17  ;;  %v5224_v0 = vpop.eup %3652 }
 0x380   : > { %v1272_v26 = vadd.f32 %v1227_v34, %v1176_v15  ;;  %v5227_v60 = vpop.eup %3654 }
 0x381   : > { %1305 = vst [vmem:[#allocation4 + $0x98] sm:$0xff] %v1273_v27  ;;  %v1153_v27 = vld [vmem:[#allocation4 + $0xd8] sm:$0xff]  ;;  %v1184_v2 = vmul.f32 %v5227_v60, %v1152_v31 }
 0x382   : > { %v1233_v57 = vpop.xlane.xlu1 %1232  ;;  %1304 = vst [vmem:[#allocation4 + $0x90] sm:$0xff] %v1272_v26  ;;  %v1185_v21 = vmul.f32 %v5224_v0, %v1153_v27  ;;  %v5230_v26 = vpop.eup %3656 }
 0x383   : > { %v1275_v39 = vadd.f32 %v1233_v57, %v1179_v54  ;;  %v1231_v5 = vpop.xlane.xlu0 %1230  ;;  %v1543_v57 = vld [vmem:[#allocation5] sm:$0xff]  ;;  %v1187_v55 = vmul.f32 %v5230_v26, %v1155_v59 }
 0x384   : > { %v1274_v50 = vadd.f32 %v1231_v5, %v1178_v48  ;;  %v5233_v35 = vpop.eup %3658  ;;  %v1546_v48 = vld [vmem:[#allocation5 + $0x18] sm:$0xff]  ;;  %v1544_v5 = vld [vmem:[#allocation5 + $0x8] sm:$0xff]  ;;  %v1575_v43 = vmul.f32 %v5063_v18, %v1543_v57 }
 0x385   : > { %1307 = vst [vmem:[#allocation4 + $0xa8] sm:$0xff] %v1275_v39  ;;  %v1186_v22 = vmul.f32 %v5233_v35, %v1154_v7  ;;  %v1576_v27 = vmul.f32 %v5072_v53, %v1544_v5  ;;  %v1562_v18 = vld [vmem:[#allocation5 + $0x98] sm:$0xff] }
 0x386   : > { %v1237_v25 = vpop.xlane.xlu1 %1236  ;;  %1306 = vst [vmem:[#allocation4 + $0xa0] sm:$0xff] %v1274_v50 }
 0x387   : > { %v1277_v19 = vadd.f32 %v1237_v25, %v1181_v45  ;;  %v1235_v20 = vpop.xlane.xlu0 %1234  ;;  %v5237_v50 = vpop.eup %3660  ;;  %v1157_v25 = vld [vmem:[#allocation4 + $0xf8] sm:$0xff] }
 0x388   : > { %v1276_v29 = vadd.f32 %v1235_v20, %v1180_v23  ;;  %v1578_v23 = vmul.f32 %v5075_v10, %v1546_v48 }
 0x389   : > { %1309 = vst [vmem:[#allocation4 + $0xb8] sm:$0xff] %v1277_v19 }
 0x38a   : > { %v1241_v11 = vpop.xlane.xlu1 %1240  ;;  %1308 = vst [vmem:[#allocation4 + $0xb0] sm:$0xff] %v1276_v29  ;;  %v5242_v29 = vpop.eup %3662 }
 0x38b   : > { %v1279_v15 = vadd.f32 %v1241_v11, %v1183_v36  ;;  %v1239_v61 = vpop.xlane.xlu0 %1238 }
 0x38c   : > { %v1278_v34 = vadd.f32 %v1239_v61, %v1182_v14  ;;  %v1156_v14 = vld [vmem:[#allocation4 + $0xf0] sm:$0xff] }
 0x38d   : > { %1311 = vst [vmem:[#allocation4 + $0xc8] sm:$0xff] %v1279_v15 }
 0x38e   : > { %v1245_v54 = vpop.xlane.xlu1 %1244  ;;  %1310 = vst [vmem:[#allocation4 + $0xc0] sm:$0xff] %v1278_v34  ;;  %v1593_v34 = vmul.f32 %v5185_v44, %v1561_v28  ;;  %v1188_v44 = vmul.f32 %v5242_v29, %v1156_v14  ;;  %v1547_v28 = vld [vmem:[#allocation5 + $0x20] sm:$0xff] }
 0x38f   : > { %v1281_v62 = vadd.f32 %v1245_v54, %v1185_v21  ;;  %v1243_v39 = vpop.xlane.xlu0 %1242  ;;  %v1560_v21 = vld [vmem:[#allocation5 + $0x88] sm:$0xff]  ;;  %v1189_v54 = vmul.f32 %v5237_v50, %v1157_v25 }
 0x390   : > { %v1280_v51 = vadd.f32 %v1243_v39, %v1184_v2  ;;  %v3282_v45 = vpop.f32.mrb[0].mxu0  ;;  %v1594_v39 = vmul.f32 %v5179_v56, %v1562_v18  ;;  %v1549_v56 = vld [vmem:[#allocation5 + $0x30] sm:$0xff]  ;;  %v1566_v18 = vld [vmem:[#allocation5 + $0xb8] sm:$0xff] }
 0x391   : > { %1313 = vst [vmem:[#allocation4 + $0xd8] sm:$0xff] %v1281_v62  ;;  %v1609_v17 = vadd.f32 %v3282_v45, %v1577_v47  ;;  %v1416_v19 = vpop.f32.mrb[1].mxu0  ;;  %v1591_v62 = vmul.f32 %v5173_v9, %v1559_v1  ;;  %v1592_v47 = vmul.f32 %v5167_v3, %v1560_v21  ;;  %v1581_v25 = vmul.f32 %v5101_v58, %v1549_v56 }
 0x392   : > { %v1249_v33 = vpop.xlane.xlu1 %1248  ;;  %1312 = vst [vmem:[#allocation4 + $0xd0] sm:$0xff] %v1280_v51  ;;  %v1607_v36 = vadd.f32 %v1575_v43, %v1416_v19  ;;  %v3283_v11 = vpop.f32.mrb[2].mxu0  ;;  %v1579_v3 = vmul.f32 %v5089_v37, %v1547_v28 }
 0x393   : > { %v1283_v20 = vadd.f32 %v1249_v33, %v1187_v55  ;;  %v1247_v15 = vpop.xlane.xlu0 %1246  ;;  %1641 = vst [vmem:[#allocation5 + $0x10] sm:$0xff] %v1609_v17  ;;  %v1610_v61 = vadd.f32 %v3283_v11, %v1578_v23  ;;  %v1419_v31 = vpop.f32.mrb[3].mxu0  ;;  %v1550_v33 = vld [vmem:[#allocation5 + $0x38] sm:$0xff]  ;;  %v1548_v17 = vld [vmem:[#allocation5 + $0x28] sm:$0xff]  ;;  %v1565_v23 = vld [vmem:[#allocation5 + $0xb0] sm:$0xff] }
 0x394   : > { %v1282_v10 = vadd.f32 %v1247_v15, %v1186_v22  ;;  %1639 = vst [vmem:[#allocation5] sm:$0xff] %v1607_v36  ;;  %v1608_v41 = vadd.f32 %v1576_v27, %v1419_v31  ;;  %v1582_v1 = vmul.f32 %v5099_v42, %v1550_v33  ;;  %v1563_v36 = vld [vmem:[#allocation5 + $0xa0] sm:$0xff]  ;;  %v1580_v15 = vmul.f32 %v5087_v4, %v1548_v17  ;;  %v1564_v31 = vld [vmem:[#allocation5 + $0xa8] sm:$0xff] }
 0x395   : > { %1315 = vst [vmem:[#allocation4 + $0xe8] sm:$0xff] %v1283_v20  ;;  %1642 = vst [vmem:[#allocation5 + $0x18] sm:$0xff] %v1610_v61  ;;  %v1597_v58 = vmul.f32 %v5209_v32, %v1565_v23 }
 0x396   : > { %v3298_v59 = vpop.f32.mrb[0].mxu1  ;;  %v1253_v2 = vpop.xlane.xlu1 %1252  ;;  %1314 = vst [vmem:[#allocation4 + $0xe0] sm:$0xff] %v1282_v10  ;;  %1640 = vst [vmem:[#allocation5 + $0x8] sm:$0xff] %v1608_v41  ;;  %v1595_v10 = vmul.f32 %v5197_v38, %v1563_v36  ;;  %v1554_v38 = vld [vmem:[#allocation5 + $0x58] sm:$0xff]  ;;  %v1555_v36 = vld [vmem:[#allocation5 + $0x60] sm:$0xff] }
 0x397   : > { %v1625_v53 = vadd.f32 %v3298_v59, %v1593_v34  ;;  %v1480_v57 = vpop.f32.mrb[1].mxu1  ;;  %v1285_v48 = vadd.f32 %v1253_v2, %v1189_v54  ;;  %v1251_v5 = vpop.xlane.xlu0 %1250  ;;  %v1598_v54 = vmul.f32 %v5203_v24, %v1566_v18  ;;  %v1596_v59 = vmul.f32 %v5191_v16, %v1564_v31  ;;  %v1567_v24 = vld [vmem:[#allocation5 + $0xc0] sm:$0xff] }
 0x398   : > { %v1623_v7 = vadd.f32 %v1591_v62, %v1480_v57  ;;  %v3299_v51 = vpop.f32.mrb[2].mxu1  ;;  %v1284_v9 = vadd.f32 %v1251_v5, %v1188_v44  ;;  %v1551_v57 = vld [vmem:[#allocation5 + $0x40] sm:$0xff]  ;;  %v1552_v44 = vld [vmem:[#allocation5 + $0x48] sm:$0xff]  ;;  %v1587_v18 = vmul.f32 %v5143_v40, %v1555_v36 }
 0x399   : > { %1657 = vst [vmem:[#allocation5 + $0x90] sm:$0xff] %v1625_v53  ;;  %v1626_v55 = vadd.f32 %v3299_v51, %v1594_v39  ;;  %v1483_v45 = vpop.f32.mrb[3].mxu1  ;;  %1317 = vst [vmem:[#allocation4 + $0xf8] sm:$0xff] %v1285_v48  ;;  %v1553_v53 = vld [vmem:[#allocation5 + $0x50] sm:$0xff]  ;;  %v1583_v51 = vmul.f32 %v5113_v63, %v1551_v57  ;;  %v1584_v28 = vmul.f32 %v5111_v13, %v1552_v44  ;;  %v1571_v31 = vld [vmem:[#allocation5 + $0xe0] sm:$0xff] }
 0x39a   : > { %1655 = vst [vmem:[#allocation5 + $0x80] sm:$0xff] %v1623_v7  ;;  %v1624_v43 = vadd.f32 %v1592_v47, %v1483_v45  ;;  %1316 = vst [vmem:[#allocation4 + $0xf0] sm:$0xff] %v1284_v9  ;;  %v1569_v39 = vld [vmem:[#allocation5 + $0xd0] sm:$0xff]  ;;  %v1585_v48 = vmul.f32 %v5125_v12, %v1553_v53  ;;  %v1570_v47 = vld [vmem:[#allocation5 + $0xd8] sm:$0xff]  ;;  %v1599_v12 = vmul.f32 %v5221_v30, %v1567_v24 }
 0x39b   : > { %1658 = vst [vmem:[#allocation5 + $0x98] sm:$0xff] %v1626_v55  ;;  %v1586_v55 = vmul.f32 %v5123_v6, %v1554_v38  ;;  %v1601_v45 = vmul.f32 %v5227_v60, %v1569_v39  ;;  %v1568_v9 = vld [vmem:[#allocation5 + $0xc8] sm:$0xff] }
 0x39c   : > { %1656 = vst [vmem:[#allocation5 + $0x88] sm:$0xff] %v1624_v43  ;;  %v1600_v60 = vmul.f32 %v5215_v52, %v1568_v9 }
 0x3a2   : > { %v3286_v19 = vpop.f32.mrb[4].mxu0 }
 0x3a3   : > { %v1613_v20 = vadd.f32 %v3286_v19, %v1581_v25  ;;  %v1432_v22 = vpop.f32.mrb[5].mxu0 }
 0x3a4   : > { %v1611_v11 = vadd.f32 %v1579_v3, %v1432_v22  ;;  %v3287_v27 = vpop.f32.mrb[6].mxu0  ;;  %v1602_v3 = vmul.f32 %v5224_v0, %v1570_v47 }
 0x3a5   : > { %1645 = vst [vmem:[#allocation5 + $0x30] sm:$0xff] %v1613_v20  ;;  %v1614_v14 = vadd.f32 %v3287_v27, %v1582_v1  ;;  %v1435_v61 = vpop.f32.mrb[7].mxu0  ;;  %v1557_v1 = vld [vmem:[#allocation5 + $0x70] sm:$0xff]  ;;  %v1556_v27 = vld [vmem:[#allocation5 + $0x68] sm:$0xff] }
 0x3a6   : > { %1643 = vst [vmem:[#allocation5 + $0x20] sm:$0xff] %v1611_v11  ;;  %v1612_v34 = vadd.f32 %v1580_v15, %v1435_v61  ;;  %v3302_v37 = vpop.f32.mrb[4].mxu1  ;;  %v1558_v11 = vld [vmem:[#allocation5 + $0x78] sm:$0xff]  ;;  %v1589_v0 = vmul.f32 %v5161_v8, %v1557_v1 }
 0x3a7   : > { %1646 = vst [vmem:[#allocation5 + $0x38] sm:$0xff] %v1614_v14  ;;  %v1629_v21 = vadd.f32 %v3302_v37, %v1597_v58  ;;  %v1496_v42 = vpop.f32.mrb[5].mxu1  ;;  %v1573_v14 = vld [vmem:[#allocation5 + $0xf0] sm:$0xff]  ;;  %v1590_v58 = vmul.f32 %v5156_v49, %v1558_v11 }
 0x3a8   : > { %1644 = vst [vmem:[#allocation5 + $0x28] sm:$0xff] %v1612_v34  ;;  %v1627_v41 = vadd.f32 %v1595_v10, %v1496_v42  ;;  %v3303_v4 = vpop.f32.mrb[6].mxu1  ;;  %v1588_v10 = vmul.f32 %v5138_v46, %v1556_v27  ;;  %v1605_v8 = vmul.f32 %v5242_v29, %v1573_v14 }
 0x3a9   : > { %1661 = vst [vmem:[#allocation5 + $0xb0] sm:$0xff] %v1629_v21  ;;  %v1630_v62 = vadd.f32 %v3303_v4, %v1598_v54  ;;  %v1499_v2 = vpop.f32.mrb[7].mxu1  ;;  %v1574_v21 = vld [vmem:[#allocation5 + $0xf8] sm:$0xff] }
 0x3aa   : > { %1659 = vst [vmem:[#allocation5 + $0xa0] sm:$0xff] %v1627_v41  ;;  %v1628_v32 = vadd.f32 %v1596_v59, %v1499_v2  ;;  %v1572_v41 = vld [vmem:[#allocation5 + $0xe8] sm:$0xff]  ;;  %v1603_v59 = vmul.f32 %v5233_v35, %v1571_v31  ;;  %v1606_v2 = vmul.f32 %v5237_v50, %v1574_v21 }
 0x3ab   : > { %1662 = vst [vmem:[#allocation5 + $0xb8] sm:$0xff] %v1630_v62  ;;  %v1604_v53 = vmul.f32 %v5230_v26, %v1572_v41 }
 0x3ac   : > { %1660 = vst [vmem:[#allocation5 + $0xa8] sm:$0xff] %v1628_v32 }
 0x3b2   : > { %v3290_v7 = vpop.f32.mrb[8].mxu0 }
 0x3b3   : > { %v1617_v16 = vadd.f32 %v3290_v7, %v1585_v48  ;;  %v1448_v5 = vpop.f32.mrb[9].mxu0  ;;  %v3306_v33 = vpop.f32.mrb[8].mxu1 }
 0x3b4   : > { %v1615_v43 = vadd.f32 %v1583_v51, %v1448_v5  ;;  %v3291_v56 = vpop.f32.mrb[10].mxu0  ;;  %v1633_v19 = vadd.f32 %v3306_v33, %v1601_v45  ;;  %v1512_v63 = vpop.f32.mrb[9].mxu1 }
 0x3b5   : > { %1649 = vst [vmem:[#allocation5 + $0x50] sm:$0xff] %v1617_v16  ;;  %v1618_v25 = vadd.f32 %v3291_v56, %v1586_v55  ;;  %v1451_v17 = vpop.f32.mrb[11].mxu0  ;;  %v1631_v6 = vadd.f32 %v1599_v12, %v1512_v63  ;;  %v3307_v20 = vpop.f32.mrb[10].mxu1 }
 0x3b6   : > { %1647 = vst [vmem:[#allocation5 + $0x40] sm:$0xff] %v1615_v43  ;;  %v1616_v23 = vadd.f32 %v1584_v28, %v1451_v17  ;;  %1665 = vst [vmem:[#allocation5 + $0xd0] sm:$0xff] %v1633_v19  ;;  %v1634_v22 = vadd.f32 %v3307_v20, %v1602_v3  ;;  %v1515_v13 = vpop.f32.mrb[11].mxu1 }
 0x3b7   : > { %1650 = vst [vmem:[#allocation5 + $0x58] sm:$0xff] %v1618_v25  ;;  %1663 = vst [vmem:[#allocation5 + $0xc0] sm:$0xff] %v1631_v6  ;;  %v1632_v30 = vadd.f32 %v1600_v60, %v1515_v13 }
 0x3b8   : > { %1648 = vst [vmem:[#allocation5 + $0x48] sm:$0xff] %v1616_v23  ;;  %1666 = vst [vmem:[#allocation5 + $0xd8] sm:$0xff] %v1634_v22 }
 0x3b9   : > { %1664 = vst [vmem:[#allocation5 + $0xc8] sm:$0xff] %v1632_v30 }
 0x3bf   : > { %v3294_v15 = vpop.f32.mrb[12].mxu0 }
 0x3c0   : > { %v1621_v52 = vadd.f32 %v3294_v15, %v1589_v0  ;;  %v1464_v61 = vpop.f32.mrb[13].mxu0 }
 0x3c1   : > { %v1619_v34 = vadd.f32 %v1587_v18, %v1464_v61  ;;  %v3295_v37 = vpop.f32.mrb[14].mxu0 }
 0x3c2   : > { %1653 = vst [vmem:[#allocation5 + $0x70] sm:$0xff] %v1621_v52  ;;  %v1622_v42 = vadd.f32 %v3295_v37, %v1590_v58  ;;  %v1467_v54 = vpop.f32.mrb[15].mxu0 }
 0x3c3   : > { %1651 = vst [vmem:[#allocation5 + $0x60] sm:$0xff] %v1619_v34  ;;  %v1620_v4 = vadd.f32 %v1588_v10, %v1467_v54  ;;  %v3310_v40 = vpop.f32.mrb[12].mxu1 }
 0x3c4   : > { %1654 = vst [vmem:[#allocation5 + $0x78] sm:$0xff] %v1622_v42  ;;  %v1637_v62 = vadd.f32 %v3310_v40, %v1605_v8  ;;  %v1528_v49 = vpop.f32.mrb[13].mxu1 }
 0x3c5   : > { %1652 = vst [vmem:[#allocation5 + $0x68] sm:$0xff] %v1620_v4  ;;  %v1635_v32 = vadd.f32 %v1603_v59, %v1528_v49  ;;  %v3311_v46 = vpop.f32.mrb[14].mxu1 }
 0x3c6   : > { %1669 = vst [vmem:[#allocation5 + $0xf0] sm:$0xff] %v1637_v62  ;;  %v1638_v57 = vadd.f32 %v3311_v46, %v1606_v2  ;;  %v1531_v38 = vpop.f32.mrb[15].mxu1 }
 0x3c7   : > { %1667 = vst [vmem:[#allocation5 + $0xe0] sm:$0xff] %v1635_v32  ;;  %v1636_v29 = vadd.f32 %v1604_v53, %v1531_v38 }
 0x3c8   : > { %1670 = vst [vmem:[#allocation5 + $0xf8] sm:$0xff] %v1638_v57 }
 0x3c9   : > { %1668 = vst [vmem:[#allocation5 + $0xe8] sm:$0xff] %v1636_v29 }
 0x3ca PF: > { %1705 = sbr.rel (!%p4573_p9) target bundleno = 1429 (0x595), region = 60 }
 0x3d1   : > { %v1706_v35 = vlaneseq  ;;  %v6496_v39 = vld [vmem:[#allocation24_spill] sm:$0xff]  ;;  %v6497_v48 = vld [vmem:[#allocation23_spill] sm:$0xff]  ;;  %v5284_v26 = vstv %s4570_s7  ;;  %v6498_v23 = vld [vmem:[#allocation41_spill] sm:$0xff] }
 0x3d2   : > { %v3128_v50 = vcombine.low %v6497_v48, %v6496_v39  ;;  %v6499_v13 = vld [vmem:[#allocation42_spill] sm:$0xff]  ;;  %v6500_v1 = vld [vmem:[#allocation45_spill] sm:$0xff]  ;;  %v6502_v61 = vld [vmem:[#allocation39_spill] sm:$0xff] }
 0x3d3   : > { %v5279_v44 = vshrl.u32 %v1706_v35, 7  ;;  %v5281_v24 = vand.u32 127, %v1706_v35  ;;  %v6501_v0 = vld [vmem:[#allocation46_spill] sm:$0xff]  ;;  %v6503_v42 = vld [vmem:[#allocation43_spill] sm:$0xff]  ;;  %v6504_v59 = vld [vmem:[#allocation40_spill] sm:$0xff] }
 0x3d4   : > { %3312 = vmatprep.subr.bf16.mxu0 %v3128_v50  ;;  %3392 = vmatprep.subr.bf16.mxu1 %v3128_v50  ;;  %v6505_v46 = vld [vmem:[#allocation44_spill] sm:$0xff]  ;;  %v6506_v35 = vld [vmem:[#allocation49_spill] sm:$0xff] }
 0x3d5   : > { %3313 = vmatpush3.bf16.msra.mxu0 %v3128_v50  ;;  %3400 = vmatpush3.bf16.msra.mxu1 %v3128_v50  ;;  %v1741_v7 = vsub.s32 %v5279_v44, %v5281_v24  ;;  %v1723_v51 = vadd.s32 128, %v5279_v44  ;;  %v1708_v47 = vadd.s32 8, %v5279_v44  ;;  %v1724_v16 = vadd.s32 136, %v5279_v44 }
 0x3d6   : > { %v1709_v5 = vadd.s32 16, %v5279_v44  ;;  %v1710_v55 = vadd.s32 24, %v5279_v44  ;;  %v1725_v45 = vadd.s32 144, %v5279_v44  ;;  %v1726_v9 = vadd.s32 152, %v5279_v44 }
 0x3d7   : > { %v1774_v43 = vadd.s32 %v5284_v26, %v1741_v7  ;;  %v1757_v56 = vsub.s32 %v1723_v51, %v5281_v24  ;;  %v1742_v28 = vsub.s32 %v1708_v47, %v5281_v24  ;;  %v1758_v33 = vsub.s32 %v1724_v16, %v5281_v24  ;;  %v6507_v51 = vld [vmem:[#allocation53_spill] sm:$0xff] }
 0x3d8   : > { %v1743_v12 = vsub.s32 %v1709_v5, %v5281_v24  ;;  %v1744_v25 = vsub.s32 %v1710_v55, %v5281_v24  ;;  %v1759_v17 = vsub.s32 %v1725_v45, %v5281_v24  ;;  %v1760_v60 = vsub.s32 %v1726_v9, %v5281_v24  ;;  %v6508_v45 = vld [vmem:[#allocation50_spill] sm:$0xff] }
 0x3d9   : > { %vm1806_vm0 = vcmp.lt.u32.totalorder %v1774_v43, 64  ;;  %v1790_v19 = vadd.s32 %v5284_v26, %v1757_v56  ;;  %v1775_v63 = vadd.s32 %v5284_v26, %v1742_v28  ;;  %v1791_v3 = vadd.s32 %v5284_v26, %v1758_v33  ;;  %v6509_v33 = vld [vmem:[#allocation54_spill] sm:$0xff] }
 0x3da   : > { %v5306_v6 = vsel %vm1806_vm0, %v6498_v23, -2.3819763e+38  ;;  %v1776_v20 = vadd.s32 %v5284_v26, %v1743_v12  ;;  %v1777_v22 = vadd.s32 %v5284_v26, %v1744_v25  ;;  %v1792_v11 = vadd.s32 %v5284_v26, %v1759_v17 }
 0x3db   : > { %1902 = vmax.xlane.f32.xlu0 %v5306_v6  ;;  %vm1822_vm1 = vcmp.lt.u32.totalorder %v1790_v19, 64  ;;  %vm1807_vm2 = vcmp.lt.u32.totalorder %v1775_v63, 64  ;;  %vm1823_vm3 = vcmp.lt.u32.totalorder %v1791_v3, 64  ;;  %v1793_v15 = vadd.s32 %v5284_v26, %v1760_v60  ;;  %v6510_v63 = vld [vmem:[#allocation47_spill] sm:$0xff] }
 0x3dc   : > { %v5313_v30 = vsel %vm1822_vm1, %v6499_v13, -2.3819763e+38  ;;  %v5316_v36 = vsel %vm1807_vm2, %v6500_v1, -2.3819763e+38  ;;  %vm1808_vm4 = vcmp.lt.u32.totalorder %v1776_v20, 64  ;;  %vm1809_vm5 = vcmp.lt.u32.totalorder %v1777_v22, 64 }
 0x3dd   : > { %1934 = vmax.xlane.f32.xlu1 %v5313_v30  ;;  %v5321_v27 = vsel %vm1823_vm3, %v6501_v0, -2.3819763e+38  ;;  %v1711_v18 = vadd.s32 32, %v5279_v44  ;;  %v1712_v14 = vadd.s32 40, %v5279_v44  ;;  %v1727_v52 = vadd.s32 160, %v5279_v44  ;;  %v6511_v22 = vld [vmem:[#allocation51_spill] sm:$0xff] }
 0x3de   : > { %v5329_v58 = vsel %vm1808_vm4, %v6502_v61, -2.3819763e+38  ;;  %vm1824_vm6 = vcmp.lt.u32.totalorder %v1792_v11, 64  ;;  %v1728_v31 = vadd.s32 168, %v5279_v44  ;;  %v1713_v21 = vadd.s32 48, %v5279_v44 }
 0x3df   : > { %1904 = vmax.xlane.f32.xlu0 %v5316_v36  ;;  %v1745_v34 = vsub.s32 %v1711_v18, %v5281_v24  ;;  %v1746_v37 = vsub.s32 %v1712_v14, %v5281_v24  ;;  %v1761_v10 = vsub.s32 %v1727_v52, %v5281_v24  ;;  %v5338_v54 = vsel %vm1809_vm5, %v6503_v42, -2.3819763e+38  ;;  %v6514_v42 = vld [vmem:[#allocation57_spill] sm:$0xff] }
 0x3e0   : > { %vm1825_vm7 = vcmp.lt.u32.totalorder %v1793_v15, 64  ;;  %v1762_v4 = vsub.s32 %v1728_v31, %v5281_v24  ;;  %v1714_v40 = vadd.s32 56, %v5279_v44  ;;  %v5346_v62 = vsel %vm1824_vm6, %v6504_v59, -2.3819763e+38  ;;  %v6512_v15 = vld [vmem:[#allocation48_spill] sm:$0xff]  ;;  %v6515_v59 = vld [vmem:[#allocation61_spill] sm:$0xff] }
 0x3e1   : > { %1936 = vmax.xlane.f32.xlu1 %v5321_v27  ;;  %v1778_v8 = vadd.s32 %v5284_v26, %v1745_v34  ;;  %v1779_v41 = vadd.s32 %v5284_v26, %v1746_v37  ;;  %v1794_v49 = vadd.s32 %v5284_v26, %v1761_v10  ;;  %v1747_v2 = vsub.s32 %v1713_v21, %v5281_v24  ;;  %v6513_v31 = vld [vmem:[#allocation52_spill] sm:$0xff] }
 0x3e2   : > { %v1729_v32 = vadd.s32 176, %v5279_v44  ;;  %v5353_v53 = vsel %vm1825_vm7, %v6505_v46, -2.3819763e+38  ;;  %v1795_v57 = vadd.s32 %v5284_v26, %v1762_v4  ;;  %v1748_v38 = vsub.s32 %v1714_v40, %v5281_v24 }
 0x3e3   : > { %1906 = vmax.xlane.f32.xlu0 %v5329_v58  ;;  %vm1810_vm8 = vcmp.lt.u32.totalorder %v1778_v8, 64  ;;  %vm1811_vm9 = vcmp.lt.u32.totalorder %v1779_v41, 64  ;;  %v1730_v29 = vadd.s32 184, %v5279_v44  ;;  %vm1826_vm10 = vcmp.lt.u32.totalorder %v1794_v49, 64 }
 0x3e4   : > { %v5360_v39 = vsel %vm1810_vm8, %v6506_v35, -2.3819763e+38  ;;  %v1780_v48 = vadd.s32 %v5284_v26, %v1747_v2  ;;  %v1763_v50 = vsub.s32 %v1729_v32, %v5281_v24  ;;  %v1715_v7 = vadd.s32 64, %v5279_v44  ;;  %v6517_v35 = vld [vmem:[#allocation26_spill] sm:$0xff] }
 0x3e5   : > { %1908 = vmax.xlane.f32.xlu1 %v5338_v54  ;;  %v5367_v47 = vsel %vm1811_vm9, %v6507_v51, -2.3819763e+38  ;;  %vm1827_vm11 = vcmp.lt.u32.totalorder %v1795_v57, 64  ;;  %v1781_v16 = vadd.s32 %v5284_v26, %v1748_v38  ;;  %v1764_v5 = vsub.s32 %v1730_v29, %v5281_v24  ;;  %v6516_v57 = vld [vmem:[#allocation58_spill] sm:$0xff] }
 0x3e6   : > { %v1716_v55 = vadd.s32 72, %v5279_v44  ;;  %v5374_v9 = vsel %vm1826_vm10, %v6508_v45, -2.3819763e+38  ;;  %vm1812_vm12 = vcmp.lt.u32.totalorder %v1780_v48, 64  ;;  %v1796_v43 = vadd.s32 %v5284_v26, %v1763_v50  ;;  %v6518_v48 = vld [vmem:[#allocation25_spill] sm:$0xff]  ;;  %v6521_v45 = vld [vmem:[#allocation62_spill] sm:$0xff] }
 0x3e7   : > { %1938 = vmax.xlane.f32.xlu0 %v5346_v62  ;;  %v1749_v56 = vsub.s32 %v1715_v7, %v5281_v24  ;;  %v1731_v28 = vadd.s32 192, %v5279_v44  ;;  %v5381_v12 = vsel %vm1827_vm11, %v6509_v33, -2.3819763e+38  ;;  %vm1813_vm13 = vcmp.lt.u32.totalorder %v1781_v16, 64  ;;  %v6519_v16 = vld [vmem:[#allocation28_spill] sm:$0xff] }
 0x3e8   : > { %v1797_v25 = vadd.s32 %v5284_v26, %v1764_v5  ;;  %v1750_v17 = vsub.s32 %v1716_v55, %v5281_v24  ;;  %v1732_v19 = vadd.s32 200, %v5279_v44  ;;  %v5388_v3 = vsel %vm1812_vm12, %v6510_v63, -2.3819763e+38  ;;  %v6520_v5 = vld [vmem:[#allocation27_spill] sm:$0xff]  ;;  %v6524_v63 = vld [vmem:[#allocation29_spill] sm:$0xff] }
 0x3e9   : > { %1940 = vmax.xlane.f32.xlu1 %v5353_v53  ;;  %vm1828_vm14 = vcmp.lt.u32.totalorder %v1796_v43, 64  ;;  %v1782_v23 = vadd.s32 %v5284_v26, %v1749_v56  ;;  %v1765_v20 = vsub.s32 %v1731_v28, %v5281_v24  ;;  %v1717_v60 = vadd.s32 80, %v5279_v44 }
 0x3ea   : > { %v5395_v13 = vsel %vm1813_vm13, %v6511_v22, -2.3819763e+38  ;;  %vm1829_vm15 = vcmp.lt.u32.totalorder %v1797_v25, 64  ;;  %v1783_v1 = vadd.s32 %v5284_v26, %v1750_v17  ;;  %v1766_v11 = vsub.s32 %v1732_v19, %v5281_v24  ;;  %v6522_v25 = vld [vmem:[#allocation55_spill] sm:$0xff]  ;;  %v6523_v19 = vld [vmem:[#allocation30_spill] sm:$0xff] }
 0x3eb   : > { %1910 = vmax.xlane.f32.xlu0 %v5360_v39  ;;  %v1718_v0 = vadd.s32 88, %v5279_v44  ;;  %v5402_v18 = vsel %vm1828_vm14, %v6512_v15, -2.3819763e+38  ;;  %v1733_v14 = vadd.s32 208, %v5279_v44  ;;  %vm1814_vm0 = vcmp.lt.u32.totalorder %v1782_v23, 64 }
 0x3ec   : > { %v1798_v52 = vadd.s32 %v5284_v26, %v1765_v20  ;;  %v1751_v61 = vsub.s32 %v1717_v60, %v5281_v24  ;;  %v5409_v34 = vsel %vm1829_vm15, %v6513_v31, -2.3819763e+38  ;;  %vm1815_vm1 = vcmp.lt.u32.totalorder %v1783_v1, 64  ;;  %v6525_v1 = vld [vmem:[#allocation59_spill] sm:$0xff]  ;;  %v6527_v31 = vld [vmem:[#allocation32_spill] sm:$0xff] }
 0x3ed   : > { %1912 = vmax.xlane.f32.xlu1 %v5367_v47  ;;  %v1799_v37 = vadd.s32 %v5284_v26, %v1766_v11  ;;  %v1752_v10 = vsub.s32 %v1718_v0, %v5281_v24  ;;  %v1734_v21 = vadd.s32 216, %v5279_v44  ;;  %v5416_v8 = vsel %vm1814_vm0, %v6514_v42, -2.3819763e+38 }
 0x3ee   : > { %v1767_v41 = vsub.s32 %v1733_v14, %v5281_v24  ;;  %vm1830_vm2 = vcmp.lt.u32.totalorder %v1798_v52, 64  ;;  %v1784_v4 = vadd.s32 %v5284_v26, %v1751_v61  ;;  %v1719_v40 = vadd.s32 96, %v5279_v44  ;;  %v6526_v52 = vld [vmem:[#allocation56_spill] sm:$0xff] }
 0x3ef   : > { %1942 = vmax.xlane.f32.xlu0 %v5374_v9  ;;  %v5423_v49 = vsel %vm1815_vm1, %v6515_v59, -2.3819763e+38  ;;  %vm1831_vm3 = vcmp.lt.u32.totalorder %v1799_v37, 64  ;;  %v1785_v2 = vadd.s32 %v5284_v26, %v1752_v10  ;;  %v1768_v32 = vsub.s32 %v1734_v21, %v5281_v24  ;;  %v6528_v37 = vld [vmem:[#allocation31_spill] sm:$0xff] }
 0x3f0   : > { %v1720_v46 = vadd.s32 104, %v5279_v44  ;;  %v5430_v38 = vsel %vm1830_vm2, %v6516_v57, -2.3819763e+38  ;;  %v1800_v29 = vadd.s32 %v5284_v26, %v1767_v41  ;;  %v3129_v50 = vcombine.low %v6518_v48, %v6517_v35  ;;  %v6532_v35 = vld [vmem:[#allocation33_spill] sm:$0xff] }
 0x3f1   : > { %1944 = vmax.xlane.f32.xlu1 %v5381_v12  ;;  %vm1816_vm4 = vcmp.lt.u32.totalorder %v1784_v4, 64  ;;  %v1753_v7 = vsub.s32 %v1719_v40, %v5281_v24  ;;  %v1735_v51 = vadd.s32 224, %v5279_v44  ;;  %v3130_v55 = vcombine.low %v6520_v5, %v6519_v16  ;;  %v6529_v4 = vld [vmem:[#allocation60_spill] sm:$0xff] }
 0x3f2   : > { %v5441_v43 = vsel %vm1831_vm3, %v6521_v45, -2.3819763e+38  ;;  %3314 = vmatprep.subr.bf16.mxu0 %v3129_v50  ;;  %3393 = vmatprep.subr.bf16.mxu1 %v3129_v50  ;;  %vm1817_vm5 = vcmp.lt.u32.totalorder %v1785_v2, 64  ;;  %v1801_v56 = vadd.s32 %v5284_v26, %v1768_v32  ;;  %v1754_v28 = vsub.s32 %v1720_v46, %v5281_v24  ;;  %v6530_v46 = vld [vmem:[#allocation65_spill] sm:$0xff] }
 0x3f3   : > { %1914 = vmax.xlane.f32.xlu0 %v5388_v3  ;;  %v1736_v33 = vadd.s32 232, %v5279_v44  ;;  %3315 = vmatpush3.bf16.msra.mxu0 %v3129_v50  ;;  %v5448_v17 = vsel %vm1816_vm4, %v6522_v25, -2.3819763e+38  ;;  %v3131_v23 = vcombine.low %v6524_v63, %v6523_v19  ;;  %vm1832_vm6 = vcmp.lt.u32.totalorder %v1800_v29, 64  ;;  %v6531_v29 = vld [vmem:[#allocation34_spill] sm:$0xff] }
 0x3f4   : > { %3316 = vmatprep.subr.bf16.mxu0 %v3130_v55  ;;  %3401 = vmatpush3.bf16.msra.mxu1 %v3129_v50  ;;  %v1786_v20 = vadd.s32 %v5284_v26, %v1753_v7  ;;  %v1769_v60 = vsub.s32 %v1735_v51, %v5281_v24  ;;  %v1721_v22 = vadd.s32 112, %v5279_v44  ;;  %v5457_v11 = vsel %vm1817_vm5, %v6525_v1, -2.3819763e+38  ;;  %v6533_v51 = vld [vmem:[#allocation69_spill] sm:$0xff]  ;;  %v6537_v19 = vld [vmem:[#allocation70_spill] sm:$0xff] }
 0x3f5   : > { %1916 = vmax.xlane.f32.xlu1 %v5395_v13  ;;  %3394 = vmatprep.subr.bf16.mxu1 %v3130_v55  ;;  %vm1833_vm7 = vcmp.lt.u32.totalorder %v1801_v56, 64  ;;  %v1787_v0 = vadd.s32 %v5284_v26, %v1754_v28  ;;  %v1770_v15 = vsub.s32 %v1736_v33, %v5281_v24  ;;  %v1722_v14 = vadd.s32 120, %v5279_v44  ;;  %v6535_v56 = vld [vmem:[#allocation36_spill] sm:$0xff]  ;;  %v6536_v28 = vld [vmem:[#allocation35_spill] sm:$0xff] }
 0x3f6   : > { %v5464_v61 = vsel %vm1832_vm6, %v6526_v52, -2.3819763e+38  ;;  %v3132_v10 = vcombine.low %v6528_v37, %v6527_v31  ;;  %vm1818_vm8 = vcmp.lt.u32.totalorder %v1786_v20, 64  ;;  %v1802_v21 = vadd.s32 %v5284_v26, %v1769_v60  ;;  %v6539_v60 = vld [vmem:[#allocation38_spill] sm:$0xff]  ;;  %v6543_v52 = vld [vmem:[#allocation68_spill] sm:$0xff]  ;;  %v5524_v37 = vld [vmem:[#allocation3] sm:$0xff] }
 0x3f7   : > { %1946 = vmax.xlane.f32.xlu0 %v5402_v18  ;;  %3317 = vmatpush3.bf16.msra.mxu0 %v3130_v55  ;;  %v1755_v42 = vsub.s32 %v1721_v22, %v5281_v24  ;;  %v1737_v41 = vadd.s32 240, %v5279_v44  ;;  %v5473_v40 = vsel %vm1833_vm7, %v6529_v4, -2.3819763e+38  ;;  %vm1819_vm9 = vcmp.lt.u32.totalorder %v1787_v0, 64  ;;  %v6540_v22 = vld [vmem:[#allocation37_spill] sm:$0xff]  ;;  %v6541_v0 = vld [vmem:[#allocation67_spill] sm:$0xff] }
 0x3f8   : > { %3318 = vmatprep.subr.bf16.mxu0 %v3131_v23  ;;  %3402 = vmatpush3.bf16.msra.mxu1 %v3130_v55  ;;  %v1803_v59 = vadd.s32 %v5284_v26, %v1770_v15  ;;  %v1756_v2 = vsub.s32 %v1722_v14, %v5281_v24  ;;  %v1738_v32 = vadd.s32 248, %v5279_v44  ;;  %v5480_v57 = vsel %vm1818_vm8, %v6530_v46, -2.3819763e+38  ;;  %v6534_v55 = vld [vmem:[#allocation66_spill] sm:$0xff] }
 0x3f9   : > { %1948 = vmax.xlane.f32.xlu1 %v5409_v34  ;;  %3395 = vmatprep.subr.bf16.mxu1 %v3131_v23  ;;  %v3133_v48 = vcombine.low %v6532_v35, %v6531_v29  ;;  %vm1834_vm10 = vcmp.lt.u32.totalorder %v1802_v21, 64  ;;  %v1788_v50 = vadd.s32 %v5284_v26, %v1755_v42  ;;  %v1771_v7 = vsub.s32 %v1737_v41, %v5281_v24  ;;  %v5526_v21 = vld [vmem:[#allocation3 + $0x80] sm:$0xff]  ;;  %v5541_v29 = vld [vmem:[#allocation3 + $0x88] sm:$0xff] }
 0x3fa   : > { %v5488_v16 = vsel %vm1819_vm9, %v6533_v51, -2.3819763e+38  ;;  %vm1835_vm11 = vcmp.lt.u32.totalorder %v1803_v59, 64  ;;  %v1789_v44 = vadd.s32 %v5284_v26, %v1756_v2  ;;  %v1772_v5 = vsub.s32 %v1738_v32, %v5281_v24  ;;  %v5539_v32 = vld [vmem:[#allocation3 + $0x8] sm:$0xff] }
 0x3fb   : > { %1918 = vmax.xlane.f32.xlu0 %v5416_v8  ;;  %3319 = vmatpush3.bf16.msra.mxu0 %v3131_v23  ;;  %v5494_v45 = vsel %vm1834_vm10, %v6534_v55, -2.3819763e+38  ;;  %v3134_v33 = vcombine.low %v6536_v28, %v6535_v56  ;;  %vm1820_vm12 = vcmp.lt.u32.totalorder %v1788_v50, 64  ;;  %v1804_v25 = vadd.s32 %v5284_v26, %v1771_v7  ;;  %v5549_v7 = vld [vmem:[#allocation3 + $0x10] sm:$0xff] }
 0x3fc   : > { %3320 = vmatprep.subr.bf16.mxu0 %v3132_v10  ;;  %3403 = vmatpush3.bf16.msra.mxu1 %v3131_v23  ;;  %v5501_v63 = vsel %vm1835_vm11, %v6537_v19, -2.3819763e+38  ;;  %vm1821_vm13 = vcmp.lt.u32.totalorder %v1789_v44, 64  ;;  %v1805_v24 = vadd.s32 %v5284_v26, %v1772_v5  ;;  %v6538_v23 = vld [vmem:[#allocation63_spill] sm:$0xff]  ;;  %v3135_v1 = vcombine.low %v6540_v22, %v6539_v60  ;;  %v6542_v26 = vld [vmem:[#allocation64_spill] sm:$0xff]  ;;  %v5667_v60 = vld [vmem:[#allocation3 + $0xb8] sm:$0xff] }
 0x3fd   : > { %1920 = vmax.xlane.f32.xlu1 %v5423_v49  ;;  %3396 = vmatprep.subr.bf16.mxu1 %v3132_v10  ;;  %v5506_v20 = vsel %vm1820_vm12, %v6538_v23, -2.3819763e+38  ;;  %vm1836_vm14 = vcmp.lt.u32.totalorder %v1804_v25, 64  ;;  %v5512_v15 = vsel %vm1821_vm13, %v6541_v0, -2.3819763e+38  ;;  %v5571_v23 = vld [vmem:[#allocation3 + $0x90] sm:$0xff] }
 0x3fe   : > { %vm1837_vm15 = vcmp.lt.u32.totalorder %v1805_v24, 64  ;;  %v5516_v14 = vsel %vm1836_vm14, %v6542_v26, -2.3819763e+38  ;;  %6545 = vst [vmem:[#allocation99_spill] sm:$0xff] %v5571_v23  ;;  %v5581_v26 = vld [vmem:[#allocation3 + $0x98] sm:$0xff]  ;;  %6554 = vst [vmem:[#allocation108_spill] sm:$0xff] %v5667_v60 }
 0x3ff   : > { %1950 = vmax.xlane.f32.xlu0 %v5430_v38  ;;  %3321 = vmatpush3.bf16.msra.mxu0 %v3132_v10  ;;  %v5520_v31 = vsel %vm1837_vm15, %v6543_v52, -2.3819763e+38  ;;  %6546 = vst [vmem:[#allocation100_spill] sm:$0xff] %v5581_v26 }
 0x400   : > { %3322 = vmatprep.subr.bf16.mxu0 %v3133_v48  ;;  %3404 = vmatpush3.bf16.msra.mxu1 %v3132_v10 }
 0x401   : > { %1952 = vmax.xlane.f32.xlu1 %v5441_v43  ;;  %3397 = vmatprep.subr.bf16.mxu1 %v3133_v48 }
 0x403   : > { %1922 = vmax.xlane.f32.xlu0 %v5448_v17  ;;  %3323 = vmatpush3.bf16.msra.mxu0 %v3133_v48 }
 0x404   : > { %3324 = vmatprep.subr.bf16.mxu0 %v3134_v33  ;;  %3405 = vmatpush3.bf16.msra.mxu1 %v3133_v48 }
 0x405   : > { %1924 = vmax.xlane.f32.xlu1 %v5457_v11  ;;  %3398 = vmatprep.subr.bf16.mxu1 %v3134_v33 }
 0x407   : > { %1954 = vmax.xlane.f32.xlu0 %v5464_v61  ;;  %3325 = vmatpush3.bf16.msra.mxu0 %v3134_v33 }
 0x408   : > { %3326 = vmatprep.subr.bf16.mxu0 %v3135_v1  ;;  %3406 = vmatpush3.bf16.msra.mxu1 %v3134_v33 }
 0x409   : > { %1956 = vmax.xlane.f32.xlu1 %v5473_v40  ;;  %3399 = vmatprep.subr.bf16.mxu1 %v3135_v1 }
 0x40b   : > { %1926 = vmax.xlane.f32.xlu0 %v5480_v57  ;;  %3327 = vmatpush3.bf16.msra.mxu0 %v3135_v1 }
 0x40c   : > { %3407 = vmatpush3.bf16.msra.mxu1 %v3135_v1 }
 0x40d   : > { %1928 = vmax.xlane.f32.xlu1 %v5488_v16 }
 0x40f   : > { %1958 = vmax.xlane.f32.xlu0 %v5494_v45 }
 0x411   : > { %1960 = vmax.xlane.f32.xlu1 %v5501_v63 }
 0x413   : > { %1930 = vmax.xlane.f32.xlu0 %v5506_v20 }
 0x415   : > { %1932 = vmax.xlane.f32.xlu1 %v5512_v15 }
 0x417   : > { %1962 = vmax.xlane.f32.xlu0 %v5516_v14 }
 0x419   : > { %1964 = vmax.xlane.f32.xlu1 %v5520_v31 }
 0x468   : > { %v1903_v10 = vpop.xlane.xlu0 %1902 }
 0x469   : > { %v5529_v42 = vmax.f32 %v5524_v37, %v1903_v10 }
 0x46a   : > { %v1935_v41 = vpop.xlane.xlu1 %1934 }
 0x46b   : > { %v2094_v59 = vsub.f32 %v5306_v6, %v5529_v42  ;;  %2735 = vst [vmem:[#allocation3] sm:$0xff] %v5529_v42  ;;  %v5537_v2 = vmax.f32 %v5526_v21, %v1935_v41 }
 0x46c   : > { %v1905_v46 = vpop.xlane.xlu0 %1904 }
 0x46d   : > { %v2126_v35 = vmul.f32 1.442695, %v2094_v59  ;;  %2751 = vst [vmem:[#allocation3 + $0x80] sm:$0xff] %v5537_v2  ;;  %v5547_v50 = vmax.f32 %v5539_v32, %v1905_v46  ;;  %v2110_v44 = vsub.f32 %v5313_v30, %v5537_v2  ;;  %v5569_v30 = vld [vmem:[#allocation3 + $0x18] sm:$0xff] }
 0x46e   : > { %v1937_v6 = vpop.xlane.xlu1 %1936 }
 0x46f   : > { %v5552_v51 = vmax.f32 %v5541_v29, %v1937_v6  ;;  %3664 = vpow2.f32 %v2126_v35  ;;  %v2095_v55 = vsub.f32 %v5316_v36, %v5547_v50  ;;  %2736 = vst [vmem:[#allocation3 + $0x8] sm:$0xff] %v5547_v50 }
 0x470   : > { %v1907_v56 = vpop.xlane.xlu0 %1906 }
 0x471   : > { %6544 = vst [vmem:[#allocation98_spill] sm:$0xff] %v5552_v51  ;;  %v2111_v33 = vsub.f32 %v5321_v27, %v5552_v51  ;;  %2752 = vst [vmem:[#allocation3 + $0x88] sm:$0xff] %v5552_v51  ;;  %v5567_v25 = vmax.f32 %v5549_v7, %v1907_v56  ;;  %v2128_v19 = vmul.f32 1.442695, %v2095_v55  ;;  %v2158_v27 = vmul.f32 1.442695, %v2110_v44 }
 0x472   : > { %v1909_v24 = vpop.xlane.xlu1 %1908  ;;  %v5599_v44 = vld [vmem:[#allocation3 + $0x20] sm:$0xff]  ;;  %v5601_v56 = vld [vmem:[#allocation3 + $0x28] sm:$0xff] }
 0x473   : > { %v2160_v36 = vmul.f32 1.442695, %v2111_v33  ;;  %v2096_v22 = vsub.f32 %v5329_v58, %v5567_v25  ;;  %2737 = vst [vmem:[#allocation3 + $0x10] sm:$0xff] %v5567_v25  ;;  %v5579_v1 = vmax.f32 %v5569_v30, %v1909_v24  ;;  %3666 = vpow2.f32 %v2128_v19 }
 0x474   : > { %v1939_v0 = vpop.xlane.xlu0 %1938 }
 0x475   : > { %v2130_v52 = vmul.f32 1.442695, %v2096_v22  ;;  %v5584_v10 = vmax.f32 %v5571_v23, %v1939_v0  ;;  %v2097_v58 = vsub.f32 %v5338_v54, %v5579_v1  ;;  %2738 = vst [vmem:[#allocation3 + $0x18] sm:$0xff] %v5579_v1  ;;  %3668 = vpow2.f32 %v2160_v36  ;;  %v5827_v23 = vld [vmem:[#allocation3 + $0x78] sm:$0xff] }
 0x476   : > { %v1941_v59 = vpop.xlane.xlu1 %1940  ;;  %3670 = vpow2.f32 %v2158_v27  ;;  %v5611_v27 = vld [vmem:[#allocation3 + $0xa0] sm:$0xff] }
 0x477   : > { %6547 = vst [vmem:[#allocation101_spill] sm:$0xff] %v5584_v10  ;;  %v2112_v35 = vsub.f32 %v5346_v62, %v5584_v10  ;;  %2753 = vst [vmem:[#allocation3 + $0x90] sm:$0xff] %v5584_v10  ;;  %v5597_v6 = vmax.f32 %v5581_v26, %v1941_v59  ;;  %v2132_v55 = vmul.f32 1.442695, %v2097_v58  ;;  %3672 = vpow2.f32 %v2130_v52 }
 0x478   : > { %v1911_v54 = vpop.xlane.xlu0 %1910  ;;  %6549 = vst [vmem:[#allocation103_spill] sm:$0xff] %v5611_v27 }
 0x479   : > { %6548 = vst [vmem:[#allocation102_spill] sm:$0xff] %v5597_v6  ;;  %v2162_v33 = vmul.f32 1.442695, %v2112_v35  ;;  %2754 = vst [vmem:[#allocation3 + $0x98] sm:$0xff] %v5597_v6  ;;  %v3665_v62 = vpop.eup %3664  ;;  %v2113_v24 = vsub.f32 %v5353_v53, %v5597_v6  ;;  %v5609_v36 = vmax.f32 %v5599_v44, %v1911_v54  ;;  %3674 = vpow2.f32 %v2132_v55  ;;  %v5769_v6 = vld [vmem:[#allocation3 + $0x60] sm:$0xff] }
 0x47a   : > { %v1913_v22 = vpop.xlane.xlu1 %1912  ;;  %2254 = vadd.xlane.f32.xlu0 %v3665_v62 }
 0x47b   : > { %v5614_v0 = vmax.f32 %v5601_v56, %v1913_v22  ;;  %v2164_v52 = vmul.f32 1.442695, %v2113_v24  ;;  %v2098_v59 = vsub.f32 %v5360_v39, %v5609_v36  ;;  %2739 = vst [vmem:[#allocation3 + $0x20] sm:$0xff] %v5609_v36  ;;  %3676 = vpow2.f32 %v2162_v33  ;;  %v5629_v24 = vld [vmem:[#allocation3 + $0xa8] sm:$0xff]  ;;  %v5631_v39 = vld [vmem:[#allocation3 + $0x30] sm:$0xff] }
 0x47c   : > { %v1943_v53 = vpop.xlane.xlu0 %1942  ;;  %6551 = vst [vmem:[#allocation105_spill] sm:$0xff] %v5629_v24 }
 0x47d   : > { %v2099_v55 = vsub.f32 %v5367_v47, %v5614_v0  ;;  %2740 = vst [vmem:[#allocation3 + $0x28] sm:$0xff] %v5614_v0  ;;  %v5627_v54 = vmax.f32 %v5611_v27, %v1943_v53  ;;  %v2134_v22 = vmul.f32 1.442695, %v2098_v59  ;;  %v3667_v46 = vpop.eup %3666  ;;  %3678 = vpow2.f32 %v2164_v52 }
 0x47e   : > { %v1945_v19 = vpop.xlane.xlu1 %1944  ;;  %2256 = vadd.xlane.f32.xlu1 %v3667_v46  ;;  %v2382_v48 = vpack.c.bf16 %v3667_v46, %v3665_v62  ;;  %v5655_v62 = vld [vmem:[#allocation3 + $0xb0] sm:$0xff] }
 0x47f   : > { %6550 = vst [vmem:[#allocation104_spill] sm:$0xff] %v5627_v54  ;;  %v2136_v33 = vmul.f32 1.442695, %v2099_v55  ;;  %2755 = vst [vmem:[#allocation3 + $0xa0] sm:$0xff] %v5627_v54  ;;  %v2114_v47 = vsub.f32 %v5374_v9, %v5627_v54  ;;  %v5639_v53 = vmax.f32 %v5629_v24, %v1945_v19  ;;  %v5641_v35 = vpop.eup %3668  ;;  %3680 = vpow2.f32 %v2134_v22  ;;  %v5646_v55 = vld [vmem:[#allocation3 + $0x38] sm:$0xff]  ;;  %v5723_v24 = vld [vmem:[#allocation3 + $0x50] sm:$0xff] }
 0x480   : > { %v1915_v59 = vpop.xlane.xlu0 %1914  ;;  %v5648_v28 = vpop.eup %3670  ;;  %3328 = vmatprep.mubr.bf16.mxu0 %v2382_v48  ;;  %6553 = vst [vmem:[#allocation107_spill] sm:$0xff] %v5655_v62 }
 0x481   : > { %6552 = vst [vmem:[#allocation106_spill] sm:$0xff] %v5639_v53  ;;  %v5644_v52 = vmax.f32 %v5631_v39, %v1915_v59  ;;  %v2166_v58 = vmul.f32 1.442695, %v2114_v47  ;;  %v2115_v19 = vsub.f32 %v5381_v12, %v5639_v53  ;;  %2756 = vst [vmem:[#allocation3 + $0xa8] sm:$0xff] %v5639_v53  ;;  %v3673_v22 = vpop.eup %3672  ;;  %3682 = vpow2.f32 %v2136_v33 }
 0x482   : > { %v1917_v46 = vpop.xlane.xlu1 %1916  ;;  %v2390_v9 = vpack.c.bf16 %v5641_v35, %v5648_v28  ;;  %2258 = vadd.xlane.f32.xlu0 %v3673_v22 }
 0x483   : > { %v2100_v47 = vsub.f32 %v5388_v3, %v5644_v52  ;;  %2741 = vst [vmem:[#allocation3 + $0x30] sm:$0xff] %v5644_v52  ;;  %v2168_v12 = vmul.f32 1.442695, %v2115_v19  ;;  %v5665_v41 = vmax.f32 %v5646_v55, %v1917_v46  ;;  %v3675_v33 = vpop.eup %3674  ;;  %3684 = vpow2.f32 %v2166_v58 }
 0x484   : > { %v1947_v48 = vpop.xlane.xlu0 %1946  ;;  %3344 = vmatprep.mubr.bf16.mxu1 %v2390_v9  ;;  %2260 = vadd.xlane.f32.xlu1 %v3675_v33  ;;  %v2383_v4 = vpack.c.bf16 %v3675_v33, %v3673_v22  ;;  %v5689_v22 = vld [vmem:[#allocation3 + $0x48] sm:$0xff] }
 0x485   : > { %v2138_v5 = vmul.f32 1.442695, %v2100_v47  ;;  %v5670_v59 = vmax.f32 %v5655_v62, %v1947_v48  ;;  %v2101_v19 = vsub.f32 %v5395_v13, %v5665_v41  ;;  %2742 = vst [vmem:[#allocation3 + $0x38] sm:$0xff] %v5665_v41  ;;  %v5677_v53 = vpop.eup %3676  ;;  %3686 = vpow2.f32 %v2168_v12  ;;  %v5687_v13 = vld [vmem:[#allocation3 + $0x40] sm:$0xff]  ;;  %v5721_v9 = vld [vmem:[#allocation3 + $0xc8] sm:$0xff] }
 0x486   : > { %v1949_v46 = vpop.xlane.xlu1 %1948  ;;  %3329 = vmatmul.mubr.bf16.vlgmr.msra.gmra.mrb[0].mxu0 %v2383_v4  ;;  %6559 = vst [vmem:[#allocation113_spill] sm:$0xff] %v5721_v9 }
 0x487   : > { %6555 = vst [vmem:[#allocation109_spill] sm:$0xff] %v5670_v59  ;;  %v2116_v58 = vsub.f32 %v5402_v18, %v5670_v59  ;;  %2757 = vst [vmem:[#allocation3 + $0xb0] sm:$0xff] %v5670_v59  ;;  %v5685_v47 = vmax.f32 %v5667_v60, %v1949_v46  ;;  %v2140_v48 = vmul.f32 1.442695, %v2101_v19  ;;  %v5691_v33 = vpop.eup %3678  ;;  %3688 = vpow2.f32 %v2138_v5  ;;  %v5703_v59 = vld [vmem:[#allocation3 + $0xc0] sm:$0xff] }
 0x488   : > { %v1919_v3 = vpop.xlane.xlu0 %1918  ;;  %v2391_v4 = vpack.c.bf16 %v5691_v33, %v5677_v53  ;;  %6557 = vst [vmem:[#allocation111_spill] sm:$0xff] %v5703_v59 }
 0x489   : > { %6556 = vst [vmem:[#allocation110_spill] sm:$0xff] %v5685_v47  ;;  %v2170_v12 = vmul.f32 1.442695, %v2116_v58  ;;  %2758 = vst [vmem:[#allocation3 + $0xb8] sm:$0xff] %v5685_v47  ;;  %v2117_v18 = vsub.f32 %v5409_v34, %v5685_v47  ;;  %v5699_v46 = vmax.f32 %v5687_v13, %v1919_v3  ;;  %v3681_v62 = vpop.eup %3680  ;;  %3690 = vpow2.f32 %v2140_v48 }
 0x48a   : > { %v1921_v19 = vpop.xlane.xlu1 %1920  ;;  %3345 = vmatmul.mubr.bf16.vlgmr.msra.gmra.mrb[0].mxu1 %v2391_v4  ;;  %2262 = vadd.xlane.f32.xlu0 %v3681_v62 }
 0x48b   : > { %v5706_v5 = vmax.f32 %v5689_v22, %v1921_v19  ;;  %v2172_v58 = vmul.f32 1.442695, %v2117_v18  ;;  %v2102_v34 = vsub.f32 %v5416_v8, %v5699_v46  ;;  %2743 = vst [vmem:[#allocation3 + $0x40] sm:$0xff] %v5699_v46  ;;  %v3683_v47 = vpop.eup %3682  ;;  %3692 = vpow2.f32 %v2170_v12 }
 0x48c   : > { %v1951_v3 = vpop.xlane.xlu0 %1950  ;;  %2264 = vadd.xlane.f32.xlu1 %v3683_v47  ;;  %v2384_v60 = vpack.c.bf16 %v3683_v47, %v3681_v62  ;;  %v5735_v62 = vld [vmem:[#allocation3 + $0x58] sm:$0xff] }
 0x48d   : > { %v2103_v19 = vsub.f32 %v5423_v49, %v5706_v5  ;;  %2744 = vst [vmem:[#allocation3 + $0x48] sm:$0xff] %v5706_v5  ;;  %v5719_v18 = vmax.f32 %v5703_v59, %v1951_v3  ;;  %v2142_v8 = vmul.f32 1.442695, %v2102_v34  ;;  %3694 = vpow2.f32 %v2172_v58  ;;  %v5728_v49 = vpop.eup %3684 }
 0x48e   : > { %v1953_v4 = vpop.xlane.xlu1 %1952  ;;  %3332 = vmatprep.mubr.bf16.mxu0 %v2384_v60 }
 0x48f   : > { %6558 = vst [vmem:[#allocation112_spill] sm:$0xff] %v5719_v18  ;;  %v2144_v12 = vmul.f32 1.442695, %v2103_v19  ;;  %2759 = vst [vmem:[#allocation3 + $0xc0] sm:$0xff] %v5719_v18  ;;  %v2118_v3 = vsub.f32 %v5430_v38, %v5719_v18  ;;  %v5733_v54 = vmax.f32 %v5721_v9, %v1953_v4  ;;  %v5737_v47 = vpop.eup %3686  ;;  %3696 = vpow2.f32 %v2142_v8 }
 0x490   : > { %v1923_v34 = vpop.xlane.xlu0 %1922 }
 0x491   : > { %6560 = vst [vmem:[#allocation114_spill] sm:$0xff] %v5733_v54  ;;  %v5740_v58 = vmax.f32 %v5723_v24, %v1923_v34  ;;  %v2174_v19 = vmul.f32 1.442695, %v2118_v3  ;;  %v2119_v38 = vsub.f32 %v5441_v43, %v5733_v54  ;;  %2760 = vst [vmem:[#allocation3 + $0xc8] sm:$0xff] %v5733_v54  ;;  %v3689_v60 = vpop.eup %3688  ;;  %3698 = vpow2.f32 %v2144_v12  ;;  %v5755_v34 = vld [vmem:[#allocation3 + $0xd0] sm:$0xff]  ;;  %v5759_v12 = vld [vmem:[#allocation3 + $0xd8] sm:$0xff] }
 0x492   : > { %v1925_v4 = vpop.xlane.xlu1 %1924  ;;  %6561 = vst [vmem:[#allocation115_spill] sm:$0xff] %v5755_v34  ;;  %v2392_v43 = vpack.c.bf16 %v5737_v47, %v5728_v49  ;;  %2266 = vadd.xlane.f32.xlu0 %v3689_v60  ;;  %6562 = vst [vmem:[#allocation116_spill] sm:$0xff] %v5759_v12 }
 0x493   : > { %v2104_v8 = vsub.f32 %v5448_v17, %v5740_v58  ;;  %2745 = vst [vmem:[#allocation3 + $0x50] sm:$0xff] %v5740_v58  ;;  %v5753_v3 = vmax.f32 %v5735_v62, %v1925_v4  ;;  %v2176_v48 = vmul.f32 1.442695, %v2119_v38  ;;  %v3691_v9 = vpop.eup %3690  ;;  %3700 = vpow2.f32 %v2174_v19  ;;  %v5795_v17 = vld [vmem:[#allocation3 + $0xe0] sm:$0xff] }
 0x494   : > { %v1955_v54 = vpop.xlane.xlu0 %1954  ;;  %3348 = vmatprep.mubr.bf16.mxu1 %v2392_v43  ;;  %2268 = vadd.xlane.f32.xlu1 %v3691_v9  ;;  %v2385_v27 = vpack.c.bf16 %v3691_v9, %v3689_v60  ;;  %v5791_v43 = vld [vmem:[#allocation3 + $0x68] sm:$0xff]  ;;  %6565 = vst [vmem:[#allocation119_spill] sm:$0xff] %v5795_v17 }
 0x495   : > { %v2146_v18 = vmul.f32 1.442695, %v2104_v8  ;;  %2746 = vst [vmem:[#allocation3 + $0x58] sm:$0xff] %v5753_v3  ;;  %v2105_v4 = vsub.f32 %v5457_v11, %v5753_v3  ;;  %v5767_v38 = vmax.f32 %v5755_v34, %v1955_v54  ;;  %v5771_v26 = vpop.eup %3692  ;;  %3702 = vpow2.f32 %v2176_v48 }
 0x496   : > { %v1957_v59 = vpop.xlane.xlu1 %1956  ;;  %3333 = vmatmul.mubr.bf16.gmra.mrb[4].mxu0 %v2385_v27 }
 0x497   : > { %6563 = vst [vmem:[#allocation117_spill] sm:$0xff] %v5767_v38  ;;  %v5774_v19 = vmax.f32 %v5759_v12, %v1957_v59  ;;  %v2148_v8 = vmul.f32 1.442695, %v2105_v4  ;;  %v2120_v11 = vsub.f32 %v5464_v61, %v5767_v38  ;;  %2761 = vst [vmem:[#allocation3 + $0xd0] sm:$0xff] %v5767_v38  ;;  %v5781_v9 = vpop.eup %3694  ;;  %3704 = vpow2.f32 %v2146_v18  ;;  %v5805_v12 = vld [vmem:[#allocation3 + $0xe8] sm:$0xff] }
 0x498   : > { %v1927_v54 = vpop.xlane.xlu0 %1926  ;;  %v2393_v27 = vpack.c.bf16 %v5781_v9, %v5771_v26  ;;  %6566 = vst [vmem:[#allocation120_spill] sm:$0xff] %v5805_v12 }
 0x499   : > { %6564 = vst [vmem:[#allocation118_spill] sm:$0xff] %v5774_v19  ;;  %v2121_v59 = vsub.f32 %v5473_v40, %v5774_v19  ;;  %2762 = vst [vmem:[#allocation3 + $0xd8] sm:$0xff] %v5774_v19  ;;  %v5789_v60 = vmax.f32 %v5769_v6, %v1927_v54  ;;  %v2178_v61 = vmul.f32 1.442695, %v2120_v11  ;;  %v3697_v18 = vpop.eup %3696  ;;  %3706 = vpow2.f32 %v2148_v8  ;;  %v5825_v40 = vld [vmem:[#allocation3 + $0x70] sm:$0xff] }
 0x49a   : > { %v1929_v4 = vpop.xlane.xlu1 %1928  ;;  %3349 = vmatmul.mubr.bf16.gmra.mrb[4].mxu1 %v2393_v27  ;;  %2270 = vadd.xlane.f32.xlu0 %v3697_v18 }
 0x49b   : > { %v2180_v48 = vmul.f32 1.442695, %v2121_v59  ;;  %2747 = vst [vmem:[#allocation3 + $0x60] sm:$0xff] %v5789_v60  ;;  %v2106_v54 = vsub.f32 %v5480_v57, %v5789_v60  ;;  %v5803_v19 = vmax.f32 %v5791_v43, %v1929_v4  ;;  %v3699_v38 = vpop.eup %3698  ;;  %3708 = vpow2.f32 %v2178_v61 }
 0x49c   : > { %v1959_v11 = vpop.xlane.xlu0 %1958  ;;  %2272 = vadd.xlane.f32.xlu1 %v3699_v38  ;;  %v2386_v34 = vpack.c.bf16 %v3699_v38, %v3697_v18 }
 0x49d   : > { %v5808_v8 = vmax.f32 %v5795_v17, %v1959_v11  ;;  %v2150_v59 = vmul.f32 1.442695, %v2106_v54  ;;  %v2107_v57 = vsub.f32 %v5488_v16, %v5803_v19  ;;  %2748 = vst [vmem:[#allocation3 + $0x68] sm:$0xff] %v5803_v19  ;;  %v5815_v27 = vpop.eup %3700  ;;  %3710 = vpow2.f32 %v2180_v48 }
 0x49e   : > { %v1961_v4 = vpop.xlane.xlu1 %1960  ;;  %3336 = vmatprep.mubr.bf16.mxu0 %v2386_v34 }
 0x49f   : > { %6567 = vst [vmem:[#allocation121_spill] sm:$0xff] %v5808_v8  ;;  %v2122_v11 = vsub.f32 %v5494_v45, %v5808_v8  ;;  %2763 = vst [vmem:[#allocation3 + $0xe0] sm:$0xff] %v5808_v8  ;;  %v5823_v54 = vmax.f32 %v5805_v12, %v1961_v4  ;;  %v2152_v16 = vmul.f32 1.442695, %v2107_v57  ;;  %v5829_v51 = vpop.eup %3702  ;;  %3712 = vpow2.f32 %v2150_v59  ;;  %v5841_v57 = vld [vmem:[#allocation3 + $0xf0] sm:$0xff] }
 0x4a0   : > { %v1931_v10 = vpop.xlane.xlu0 %1930  ;;  %v2394_v18 = vpack.c.bf16 %v5829_v51, %v5815_v27 }
 0x4a1   : > { %6568 = vst [vmem:[#allocation122_spill] sm:$0xff] %v5823_v54  ;;  %v2182_v48 = vmul.f32 1.442695, %v2122_v11  ;;  %2764 = vst [vmem:[#allocation3 + $0xe8] sm:$0xff] %v5823_v54  ;;  %v2123_v45 = vsub.f32 %v5501_v63, %v5823_v54  ;;  %v5837_v4 = vmax.f32 %v5825_v40, %v1931_v10  ;;  %v3705_v59 = vpop.eup %3704  ;;  %3714 = vpow2.f32 %v2152_v16  ;;  %v5851_v10 = vld [vmem:[#allocation3 + $0xf8] sm:$0xff] }
 0x4a2   : > { %v1933_v38 = vpop.xlane.xlu1 %1932  ;;  %3352 = vmatprep.mubr.bf16.mxu1 %v2394_v18  ;;  %2274 = vadd.xlane.f32.xlu0 %v3705_v59  ;;  %6569 = vst [vmem:[#allocation123_spill] sm:$0xff] %v5851_v10 }
 0x4a3   : > { %v5844_v11 = vmax.f32 %v5827_v23, %v1933_v38  ;;  %v2184_v61 = vmul.f32 1.442695, %v2123_v45  ;;  %v2108_v63 = vsub.f32 %v5506_v20, %v5837_v4  ;;  %2749 = vst [vmem:[#allocation3 + $0x70] sm:$0xff] %v5837_v4  ;;  %v3707_v54 = vpop.eup %3706  ;;  %3716 = vpow2.f32 %v2182_v48 }
 0x4a4   : > { %v1963_v34 = vpop.xlane.xlu0 %1962  ;;  %2276 = vadd.xlane.f32.xlu1 %v3707_v54  ;;  %v2387_v12 = vpack.c.bf16 %v3707_v54, %v3705_v59 }
 0x4a5   : > { %v2109_v45 = vsub.f32 %v5512_v15, %v5844_v11  ;;  %2750 = vst [vmem:[#allocation3 + $0x78] sm:$0xff] %v5844_v11  ;;  %v5859_v38 = vmax.f32 %v5841_v57, %v1963_v34  ;;  %v2154_v20 = vmul.f32 1.442695, %v2108_v63  ;;  %v3709_v8 = vpop.eup %3708  ;;  %3718 = vpow2.f32 %v2184_v61 }
 0x4a6   : > { %v1965_v18 = vpop.xlane.xlu1 %1964  ;;  %3337 = vmatmul.mubr.bf16.gmra.mrb[8].mxu0 %v2387_v12 }
 0x4a7   : > { %v2156_v17 = vmul.f32 1.442695, %v2109_v45  ;;  %v5862_v48 = vmax.f32 %v5851_v10, %v1965_v18  ;;  %2765 = vst [vmem:[#allocation3 + $0xf0] sm:$0xff] %v5859_v38  ;;  %v2124_v34 = vsub.f32 %v5516_v14, %v5859_v38  ;;  %v3711_v16 = vpop.eup %3710  ;;  %3720 = vpow2.f32 %v2154_v20 }
 0x4a8   : > { %v2395_v59 = vpack.c.bf16 %v3711_v16, %v3709_v8 }
 0x4a9   : > { %6570 = vst [vmem:[#allocation124_spill] sm:$0xff] %v5862_v48  ;;  %v2125_v61 = vsub.f32 %v5520_v31, %v5862_v48  ;;  %2766 = vst [vmem:[#allocation3 + $0xf8] sm:$0xff] %v5862_v48  ;;  %v3713_v63 = vpop.eup %3712  ;;  %3722 = vpow2.f32 %v2156_v17  ;;  %v2186_v45 = vmul.f32 1.442695, %v2124_v34 }
 0x4aa   : > { %3353 = vmatmul.mubr.bf16.gmra.mrb[8].mxu1 %v2395_v59  ;;  %2278 = vadd.xlane.f32.xlu0 %v3713_v63 }
 0x4ab   : > { %v2188_v12 = vmul.f32 1.442695, %v2125_v61  ;;  %v3715_v18 = vpop.eup %3714 }
 0x4ac   : > { %2280 = vadd.xlane.f32.xlu1 %v3715_v18  ;;  %v2388_v14 = vpack.c.bf16 %v3715_v18, %v3713_v63  ;;  %v6578_v63 = vsub.f32 %v5646_v55, %v5665_v41  ;;  %v2195_v55 = vld [vmem:[#allocation4 + $0x28] sm:$0xff] }
 0x4ad   : > { %3724 = vpow2.f32 %v2188_v12  ;;  %v3717_v20 = vpop.eup %3716 }
 0x4ae   : > { %3726 = vpow2.f32 %v2186_v45  ;;  %3340 = vmatprep.mubr.bf16.mxu0 %v2388_v14  ;;  %v2044_v12 = vmul.f32 1.442695, %v6578_v63 }
 0x4af   : > { %v3719_v54 = vpop.eup %3718 }
 0x4b0   : > { %v2396_v15 = vpack.c.bf16 %v3719_v54, %v3717_v20 }
 0x4b1   : > { %v3721_v10 = vpop.eup %3720 }
 0x4b2   : > { %3356 = vmatprep.mubr.bf16.mxu1 %v2396_v15  ;;  %2282 = vadd.xlane.f32.xlu0 %v3721_v10 }
 0x4b3   : > { %v3723_v31 = vpop.eup %3722 }
 0x4b4   : > { %2284 = vadd.xlane.f32.xlu1 %v3723_v31  ;;  %v2389_v48 = vpack.c.bf16 %v3723_v31, %v3721_v10 }
 0x4b6   : > { %2286 = vadd.xlane.f32.xlu0 %v5648_v28  ;;  %3341 = vmatmul.mubr.bf16.gmra.mrb[12].mxu0 %v2389_v48  ;;  %v6571_v28 = vsub.f32 %v5524_v37, %v5529_v42  ;;  %v6575_v37 = vsub.f32 %v5599_v44, %v5609_v36  ;;  %v2192_v36 = vld [vmem:[#allocation4 + $0x10] sm:$0xff] }
 0x4b7   : > { %v3725_v17 = vpop.eup %3724 }
 0x4b8   : > { %v3727_v34 = vpop.eup %3726  ;;  %2288 = vadd.xlane.f32.xlu1 %v5641_v35  ;;  %v2030_v35 = vmul.f32 1.442695, %v6571_v28  ;;  %v2038_v42 = vmul.f32 1.442695, %v6575_v37  ;;  %v6580_v28 = vsub.f32 %v5689_v22, %v5706_v5  ;;  %v2197_v5 = vld [vmem:[#allocation4 + $0x38] sm:$0xff] }
 0x4b9   : > { %v2397_v61 = vpack.c.bf16 %v3725_v17, %v3727_v34 }
 0x4ba   : > { %2290 = vadd.xlane.f32.xlu0 %v5677_v53  ;;  %3728 = vpow2.f32 %v2030_v35  ;;  %v2048_v35 = vmul.f32 1.442695, %v6580_v28 }
 0x4bb   : > { %3357 = vmatmul.mubr.bf16.gmra.mrb[12].mxu1 %v2397_v61 }
 0x4bc   : > { %2292 = vadd.xlane.f32.xlu1 %v5691_v33  ;;  %v6573_v33 = vsub.f32 %v5549_v7, %v5567_v25  ;;  %v6576_v7 = vsub.f32 %v5601_v56, %v5614_v0  ;;  %v2193_v56 = vld [vmem:[#allocation4 + $0x18] sm:$0xff] }
 0x4be   : > { %2294 = vadd.xlane.f32.xlu0 %v5728_v49  ;;  %v6574_v49 = vsub.f32 %v5569_v30, %v5579_v1  ;;  %v2040_v25 = vmul.f32 1.442695, %v6576_v7  ;;  %v2191_v1 = vld [vmem:[#allocation4 + $0x8] sm:$0xff] }
 0x4c0   : > { %2296 = vadd.xlane.f32.xlu1 %v5737_v47  ;;  %v2036_v47 = vmul.f32 1.442695, %v6574_v49 }
 0x4c2   : > { %2298 = vadd.xlane.f32.xlu0 %v5771_v26  ;;  %v6572_v26 = vsub.f32 %v5539_v32, %v5547_v50 }
 0x4c4   : > { %2300 = vadd.xlane.f32.xlu1 %v5781_v9  ;;  %v2032_v53 = vmul.f32 1.442695, %v6572_v26  ;;  %v5896_v9 = vpop.eup %3728 }
 0x4c6   : > { %2302 = vadd.xlane.f32.xlu0 %v5815_v27  ;;  %3730 = vpow2.f32 %v2032_v53 }
 0x4c8   : > { %2304 = vadd.xlane.f32.xlu1 %v5829_v51  ;;  %v2034_v51 = vmul.f32 1.442695, %v6573_v33 }
 0x4ca   : > { %2306 = vadd.xlane.f32.xlu0 %v3709_v8  ;;  %3732 = vpow2.f32 %v2034_v51  ;;  %v2190_v8 = vld [vmem:[#allocation4] sm:$0xff] }
 0x4cb   : > { %3734 = vpow2.f32 %v2036_v47  ;;  %v2222_v32 = vmul.f32 %v5896_v9, %v2190_v8  ;;  %v6581_v8 = vsub.f32 %v5723_v24, %v5740_v58  ;;  %v2198_v24 = vld [vmem:[#allocation4 + $0x40] sm:$0xff] }
 0x4cc   : > { %2308 = vadd.xlane.f32.xlu1 %v3711_v16  ;;  %3736 = vpow2.f32 %v2038_v42  ;;  %v6582_v42 = vsub.f32 %v5735_v62, %v5753_v3  ;;  %v2199_v3 = vld [vmem:[#allocation4 + $0x48] sm:$0xff] }
 0x4cd   : > { %3738 = vpow2.f32 %v2040_v25  ;;  %v2050_v22 = vmul.f32 1.442695, %v6581_v8  ;;  %v6593_v8 = vld [vmem:[#allocation100_spill] sm:$0xff] }
 0x4ce   : > { %2310 = vadd.xlane.f32.xlu0 %v3717_v20 }
 0x4d0   : > { %2312 = vadd.xlane.f32.xlu1 %v3719_v54  ;;  %v5902_v27 = vpop.eup %3730  ;;  %v6577_v54 = vsub.f32 %v5631_v39, %v5644_v52  ;;  %v2194_v39 = vld [vmem:[#allocation4 + $0x20] sm:$0xff] }
 0x4d1   : > { %v2223_v10 = vmul.f32 %v5902_v27, %v2191_v1 }
 0x4d2   : > { %2314 = vadd.xlane.f32.xlu0 %v3727_v34  ;;  %v2042_v59 = vmul.f32 1.442695, %v6577_v54  ;;  %v6579_v34 = vsub.f32 %v5687_v13, %v5699_v46  ;;  %v2196_v13 = vld [vmem:[#allocation4 + $0x30] sm:$0xff] }
 0x4d4   : > { %2316 = vadd.xlane.f32.xlu1 %v3725_v17  ;;  %v5908_v16 = vpop.eup %3732  ;;  %3740 = vpow2.f32 %v2042_v59  ;;  %v2046_v41 = vmul.f32 1.442695, %v6579_v34 }
 0x4d5   : > { %v5910_v15 = vpop.eup %3734  ;;  %v2224_v0 = vmul.f32 %v5908_v16, %v2192_v36  ;;  %3742 = vpow2.f32 %v2044_v12 }
 0x4d6   : > { %v2225_v14 = vmul.f32 %v5910_v15, %v2193_v56  ;;  %v5920_v17 = vpop.eup %3736  ;;  %3744 = vpow2.f32 %v2046_v41 }
 0x4d7   : > { %v5922_v52 = vpop.eup %3738  ;;  %v2226_v61 = vmul.f32 %v5920_v17, %v2194_v39  ;;  %3746 = vpow2.f32 %v2048_v35  ;;  %v6588_v35 = vld [vmem:[#allocation98_spill] sm:$0xff] }
 0x4d8   : > { %v2227_v33 = vmul.f32 %v5922_v52, %v2195_v55  ;;  %3748 = vpow2.f32 %v2050_v22  ;;  %v6587_v55 = vsub.f32 %v5526_v21, %v5537_v2  ;;  %v6594_v22 = vld [vmem:[#allocation102_spill] sm:$0xff] }
 0x4de   : > { %v5932_v47 = vpop.eup %3740 }
 0x4df   : > { %v5934_v46 = vpop.eup %3742  ;;  %v2228_v37 = vmul.f32 %v5932_v47, %v2196_v13 }
 0x4e0   : > { %v2229_v25 = vmul.f32 %v5934_v46, %v2197_v5  ;;  %v6595_v5 = vsub.f32 %v6593_v8, %v6594_v22 }
 0x507   : > { %v2255_v50 = vpop.xlane.xlu0 %2254 }
 0x508   : > { %v2318_v30 = vadd.f32 %v2255_v50, %v2222_v32  ;;  %v2052_v32 = vmul.f32 1.442695, %v6582_v42 }
 0x50a   : > { %2350 = vst [vmem:[#allocation4] sm:$0xff] %v2318_v30  ;;  %3750 = vpow2.f32 %v2052_v32 }
 0x50b   : > { %v2257_v44 = vpop.xlane.xlu1 %2256 }
 0x50c   : > { %v2319_v48 = vadd.f32 %v2257_v44, %v2223_v10  ;;  %v5944_v10 = vpop.eup %3744  ;;  %v6583_v44 = vsub.f32 %v5769_v6, %v5789_v60  ;;  %v2200_v6 = vld [vmem:[#allocation4 + $0x50] sm:$0xff] }
 0x50d   : > { %v5946_v58 = vpop.eup %3746  ;;  %v2230_v36 = vmul.f32 %v5944_v10, %v2198_v24 }
 0x50e   : > { %2351 = vst [vmem:[#allocation4 + $0x8] sm:$0xff] %v2319_v48  ;;  %v2054_v62 = vmul.f32 1.442695, %v6583_v44  ;;  %v6584_v48 = vsub.f32 %v5791_v43, %v5803_v19  ;;  %v2201_v43 = vld [vmem:[#allocation4 + $0x58] sm:$0xff] }
 0x50f   : > { %v2259_v45 = vpop.xlane.xlu0 %2258 }
 0x510   : > { %v2320_v18 = vadd.f32 %v2259_v45, %v2224_v0  ;;  %v2056_v54 = vmul.f32 1.442695, %v6584_v48  ;;  %v2231_v0 = vmul.f32 %v5946_v58, %v2199_v3  ;;  %3752 = vpow2.f32 %v2054_v62  ;;  %v5956_v45 = vpop.eup %3748  ;;  %v6599_v62 = vld [vmem:[#allocation105_spill] sm:$0xff]  ;;  %v6600_v3 = vld [vmem:[#allocation106_spill] sm:$0xff] }
 0x511   : > { %v2261_v20 = vpop.xlane.xlu1 %2260 }
 0x512   : > { %2352 = vst [vmem:[#allocation4 + $0x10] sm:$0xff] %v2320_v18  ;;  %v2321_v31 = vadd.f32 %v2261_v20, %v2225_v14  ;;  %3754 = vpow2.f32 %v2056_v54  ;;  %v6585_v18 = vsub.f32 %v5825_v40, %v5837_v4  ;;  %v2232_v14 = vmul.f32 %v5956_v45, %v2200_v6  ;;  %v2204_v54 = vld [vmem:[#allocation4 + $0x70] sm:$0xff]  ;;  %v2205_v6 = vld [vmem:[#allocation4 + $0x78] sm:$0xff] }
 0x513   : > { %v6586_v20 = vsub.f32 %v5827_v23, %v5844_v11  ;;  %v2202_v23 = vld [vmem:[#allocation4 + $0x60] sm:$0xff] }
 0x514   : > { %2353 = vst [vmem:[#allocation4 + $0x18] sm:$0xff] %v2321_v31  ;;  %v5958_v60 = vpop.eup %3750  ;;  %v2058_v19 = vmul.f32 1.442695, %v6585_v18 }
 0x515   : > { %v2060_v31 = vmul.f32 1.442695, %v6586_v20  ;;  %v2233_v41 = vmul.f32 %v5958_v60, %v2201_v43  ;;  %v6605_v43 = vld [vmem:[#allocation108_spill] sm:$0xff] }
 0x516   : > { %3756 = vpow2.f32 %v2058_v19 }
 0x517   : > { %v2263_v26 = vpop.xlane.xlu0 %2262  ;;  %3758 = vpow2.f32 %v2060_v31 }
 0x518   : > { %v2322_v53 = vadd.f32 %v2263_v26, %v2226_v61  ;;  %v2062_v61 = vmul.f32 1.442695, %v6587_v55  ;;  %v6589_v26 = vsub.f32 %v5541_v29, %v6588_v35 }
 0x519   : > { %v2265_v51 = vpop.xlane.xlu1 %2264 }
 0x51a   : > { %2354 = vst [vmem:[#allocation4 + $0x20] sm:$0xff] %v2322_v53  ;;  %v2323_v49 = vadd.f32 %v2265_v51, %v2227_v33  ;;  %v5971_v4 = vpop.eup %3752  ;;  %v2064_v53 = vmul.f32 1.442695, %v6589_v26  ;;  %3760 = vpow2.f32 %v2062_v61  ;;  %v6590_v33 = vld [vmem:[#allocation99_spill] sm:$0xff]  ;;  %v6591_v51 = vld [vmem:[#allocation101_spill] sm:$0xff] }
 0x51b   : > { %v6592_v21 = vsub.f32 %v6590_v33, %v6591_v51  ;;  %v2234_v13 = vmul.f32 %v5971_v4, %v2202_v23  ;;  %v2207_v23 = vld [vmem:[#allocation4 + $0x88] sm:$0xff] }
 0x51c   : > { %2355 = vst [vmem:[#allocation4 + $0x28] sm:$0xff] %v2323_v49  ;;  %v5976_v11 = vpop.eup %3754  ;;  %v2203_v49 = vld [vmem:[#allocation4 + $0x68] sm:$0xff]  ;;  %3762 = vpow2.f32 %v2064_v53 }
 0x51d   : > { %v2066_v2 = vmul.f32 1.442695, %v6592_v21  ;;  %v2235_v32 = vmul.f32 %v5976_v11, %v2203_v49  ;;  %v6612_v49 = vld [vmem:[#allocation114_spill] sm:$0xff] }
 0x51f   : > { %v2267_v50 = vpop.xlane.xlu0 %2266  ;;  %3764 = vpow2.f32 %v2066_v2  ;;  %v6611_v2 = vld [vmem:[#allocation113_spill] sm:$0xff] }
 0x520   : > { %v2324_v7 = vadd.f32 %v2267_v50, %v2228_v37  ;;  %v2068_v37 = vmul.f32 1.442695, %v6595_v5  ;;  %v6596_v50 = vld [vmem:[#allocation103_spill] sm:$0xff]  ;;  %v5989_v44 = vpop.eup %3756  ;;  %v2208_v5 = vld [vmem:[#allocation4 + $0x90] sm:$0xff] }
 0x521   : > { %v2269_v30 = vpop.xlane.xlu1 %2268  ;;  %v2236_v18 = vmul.f32 %v5989_v44, %v2204_v54 }
 0x522   : > { %2356 = vst [vmem:[#allocation4 + $0x30] sm:$0xff] %v2324_v7  ;;  %v2325_v1 = vadd.f32 %v2269_v30, %v2229_v25  ;;  %v6597_v7 = vld [vmem:[#allocation104_spill] sm:$0xff]  ;;  %3766 = vpow2.f32 %v2068_v37 }
 0x523   : > { %v6598_v25 = vsub.f32 %v6596_v50, %v6597_v7  ;;  %v6615_v50 = vld [vmem:[#allocation117_spill] sm:$0xff] }
 0x524   : > { %2357 = vst [vmem:[#allocation4 + $0x38] sm:$0xff] %v2325_v1 }
 0x525   : > { %v2070_v30 = vmul.f32 1.442695, %v6598_v25 }
 0x527   : > { %v2271_v59 = vpop.xlane.xlu0 %2270  ;;  %3768 = vpow2.f32 %v2070_v30 }
 0x528   : > { %v2326_v56 = vadd.f32 %v2271_v59, %v2230_v36  ;;  %v6601_v36 = vsub.f32 %v6599_v62, %v6600_v3  ;;  %v5994_v59 = vpop.eup %3758 }
 0x529   : > { %v2273_v63 = vpop.xlane.xlu1 %2272  ;;  %v6000_v19 = vpop.eup %3760  ;;  %v2237_v55 = vmul.f32 %v5994_v59, %v2205_v6 }
 0x52a   : > { %2358 = vst [vmem:[#allocation4 + $0x40] sm:$0xff] %v2326_v56  ;;  %v2327_v12 = vadd.f32 %v2273_v63, %v2231_v0  ;;  %v2072_v48 = vmul.f32 1.442695, %v6601_v36  ;;  %v6602_v56 = vld [vmem:[#allocation107_spill] sm:$0xff]  ;;  %v6603_v0 = vld [vmem:[#allocation109_spill] sm:$0xff]  ;;  %v6006_v61 = vpop.eup %3762  ;;  %v6617_v36 = vld [vmem:[#allocation116_spill] sm:$0xff] }
 0x52b   : > { %v6604_v63 = vsub.f32 %v6602_v56, %v6603_v0  ;;  %v6012_v21 = vpop.eup %3764 }
 0x52c   : > { %2359 = vst [vmem:[#allocation4 + $0x48] sm:$0xff] %v2327_v12  ;;  %3770 = vpow2.f32 %v2072_v48  ;;  %v2240_v62 = vmul.f32 %v6012_v21, %v2208_v5  ;;  %v6618_v48 = vld [vmem:[#allocation118_spill] sm:$0xff]  ;;  %v2213_v5 = vld [vmem:[#allocation4 + $0xb8] sm:$0xff] }
 0x52d   : > { %v2074_v12 = vmul.f32 1.442695, %v6604_v63  ;;  %v6619_v54 = vsub.f32 %v6617_v36, %v6618_v48  ;;  %v2210_v63 = vld [vmem:[#allocation4 + $0xa0] sm:$0xff]  ;;  %v2215_v48 = vld [vmem:[#allocation4 + $0xc8] sm:$0xff] }
 0x52f   : > { %v2275_v39 = vpop.xlane.xlu0 %2274  ;;  %3772 = vpow2.f32 %v2074_v12  ;;  %v2084_v56 = vmul.f32 1.442695, %v6619_v54 }
 0x530   : > { %v2328_v34 = vadd.f32 %v2275_v39, %v2232_v14  ;;  %v6606_v14 = vld [vmem:[#allocation110_spill] sm:$0xff] }
 0x531   : > { %v2277_v28 = vpop.xlane.xlu1 %2276  ;;  %v6607_v20 = vsub.f32 %v6605_v43, %v6606_v14  ;;  %v6620_v43 = vld [vmem:[#allocation119_spill] sm:$0xff]  ;;  %v6621_v14 = vld [vmem:[#allocation121_spill] sm:$0xff] }
 0x532   : > { %2360 = vst [vmem:[#allocation4 + $0x50] sm:$0xff] %v2328_v34  ;;  %v2329_v40 = vadd.f32 %v2277_v28, %v2233_v41  ;;  %v2206_v34 = vld [vmem:[#allocation4 + $0x80] sm:$0xff]  ;;  %v6608_v28 = vld [vmem:[#allocation111_spill] sm:$0xff] }
 0x533   : > { %v2076_v31 = vmul.f32 1.442695, %v6607_v20  ;;  %v2238_v51 = vmul.f32 %v6000_v19, %v2206_v34  ;;  %v6622_v20 = vsub.f32 %v6620_v43, %v6621_v14  ;;  %v2211_v34 = vld [vmem:[#allocation4 + $0xa8] sm:$0xff] }
 0x534   : > { %2361 = vst [vmem:[#allocation4 + $0x58] sm:$0xff] %v2329_v40  ;;  %v6609_v40 = vld [vmem:[#allocation112_spill] sm:$0xff] }
 0x535   : > { %v6610_v35 = vsub.f32 %v6608_v28, %v6609_v40  ;;  %3774 = vpow2.f32 %v2076_v31  ;;  %v2086_v31 = vmul.f32 1.442695, %v6622_v20  ;;  %v6623_v40 = vld [vmem:[#allocation120_spill] sm:$0xff] }
 0x537   : > { %v2279_v29 = vpop.xlane.xlu0 %2278  ;;  %v2078_v26 = vmul.f32 1.442695, %v6610_v35  ;;  %v6624_v35 = vld [vmem:[#allocation122_spill] sm:$0xff] }
 0x538   : > { %v2330_v42 = vadd.f32 %v2279_v29, %v2234_v13  ;;  %v6613_v13 = vsub.f32 %v6611_v2, %v6612_v49  ;;  %v2239_v29 = vmul.f32 %v6006_v61, %v2207_v23 }
 0x539   : > { %v2281_v1 = vpop.xlane.xlu1 %2280  ;;  %3776 = vpow2.f32 %v2078_v26  ;;  %v6625_v26 = vsub.f32 %v6623_v40, %v6624_v35 }
 0x53a   : > { %2362 = vst [vmem:[#allocation4 + $0x60] sm:$0xff] %v2330_v42  ;;  %v2331_v24 = vadd.f32 %v2281_v1, %v2235_v32  ;;  %v2080_v8 = vmul.f32 1.442695, %v6613_v13  ;;  %v6018_v42 = vpop.eup %3766  ;;  %v6614_v32 = vld [vmem:[#allocation115_spill] sm:$0xff]  ;;  %v2209_v1 = vld [vmem:[#allocation4 + $0x98] sm:$0xff]  ;;  %v6626_v13 = vsub.f32 %v5841_v57, %v5859_v38 }
 0x53b   : > { %v6616_v7 = vsub.f32 %v6614_v32, %v6615_v50  ;;  %v6024_v3 = vpop.eup %3768  ;;  %v2241_v6 = vmul.f32 %v6018_v42, %v2209_v1  ;;  %v6627_v50 = vld [vmem:[#allocation123_spill] sm:$0xff] }
 0x53c   : > { %2363 = vst [vmem:[#allocation4 + $0x68] sm:$0xff] %v2331_v24  ;;  %3778 = vpow2.f32 %v2080_v8  ;;  %v2090_v8 = vmul.f32 1.442695, %v6626_v13 }
 0x53d   : > { %v2082_v25 = vmul.f32 1.442695, %v6616_v7  ;;  %v6628_v7 = vld [vmem:[#allocation124_spill] sm:$0xff] }
 0x53f   : > { %v2283_v39 = vpop.xlane.xlu0 %2282  ;;  %3780 = vpow2.f32 %v2082_v25  ;;  %v6629_v25 = vsub.f32 %v6627_v50, %v6628_v7 }
 0x540   : > { %v2332_v41 = vadd.f32 %v2283_v39, %v2236_v18  ;;  %v6030_v18 = vpop.eup %3770  ;;  %3782 = vpow2.f32 %v2084_v56 }
 0x541   : > { %v2285_v53 = vpop.xlane.xlu1 %2284  ;;  %v6036_v28 = vpop.eup %3772  ;;  %v2243_v2 = vmul.f32 %v6030_v18, %v2211_v34  ;;  %3784 = vpow2.f32 %v2086_v31  ;;  %v2217_v31 = vld [vmem:[#allocation4 + $0xd8] sm:$0xff] }
 0x542   : > { %2364 = vst [vmem:[#allocation4 + $0x70] sm:$0xff] %v2332_v41  ;;  %v2333_v33 = vadd.f32 %v2285_v53, %v2237_v55  ;;  %v2242_v55 = vmul.f32 %v6024_v3, %v2210_v63  ;;  %v2088_v53 = vmul.f32 1.442695, %v6625_v26  ;;  %v6042_v49 = vpop.eup %3774  ;;  %v2610_v26 = vld [vmem:[#allocation5 + $0x18] sm:$0xff] }
 0x543   : > { %v2287_v22 = vpop.xlane.xlu0 %2286  ;;  %v6048_v32 = vpop.eup %3776  ;;  %v2245_v57 = vmul.f32 %v6042_v49, %v2213_v5 }
 0x544   : > { %2365 = vst [vmem:[#allocation4 + $0x78] sm:$0xff] %v2333_v33  ;;  %v2334_v37 = vadd.f32 %v2287_v22, %v2238_v51  ;;  %v2212_v33 = vld [vmem:[#allocation4 + $0xb0] sm:$0xff]  ;;  %3786 = vpow2.f32 %v2088_v53  ;;  %v2218_v53 = vld [vmem:[#allocation4 + $0xe0] sm:$0xff] }
 0x545   : > { %v2289_v30 = vpop.xlane.xlu1 %2288  ;;  %3788 = vpow2.f32 %v2090_v8 }
 0x546   : > { %2366 = vst [vmem:[#allocation4 + $0x80] sm:$0xff] %v2334_v37  ;;  %v2335_v24 = vadd.f32 %v2289_v30, %v2239_v29  ;;  %v2244_v29 = vmul.f32 %v6036_v28, %v2212_v33  ;;  %v2092_v30 = vmul.f32 1.442695, %v6629_v25  ;;  %v6054_v38 = vpop.eup %3778 }
 0x547   : > { %v2291_v0 = vpop.xlane.xlu0 %2290  ;;  %v2247_v43 = vmul.f32 %v6054_v38, %v2215_v48 }
 0x548   : > { %2367 = vst [vmem:[#allocation4 + $0x88] sm:$0xff] %v2335_v24  ;;  %v2336_v12 = vadd.f32 %v2291_v0, %v2240_v62  ;;  %v2214_v24 = vld [vmem:[#allocation4 + $0xc0] sm:$0xff]  ;;  %3790 = vpow2.f32 %v2092_v30  ;;  %v2642_v30 = vmul.f32 %v5910_v15, %v2610_v26 }
 0x549   : > { %v2293_v39 = vpop.xlane.xlu1 %2292  ;;  %v2246_v56 = vmul.f32 %v6048_v32, %v2214_v24  ;;  %v6057_v0 = vpop.eup %3780  ;;  %v2623_v24 = vld [vmem:[#allocation5 + $0x80] sm:$0xff] }
 0x54a   : > { %2368 = vst [vmem:[#allocation4 + $0x90] sm:$0xff] %v2336_v12  ;;  %v2337_v41 = vadd.f32 %v2293_v39, %v2241_v6  ;;  %v2216_v12 = vld [vmem:[#allocation4 + $0xd0] sm:$0xff]  ;;  %v6060_v14 = vpop.eup %3782 }
 0x54b   : > { %v2295_v23 = vpop.xlane.xlu0 %2294  ;;  %v2609_v39 = vld [vmem:[#allocation5 + $0x10] sm:$0xff]  ;;  %v6063_v40 = vpop.eup %3784  ;;  %v2249_v33 = vmul.f32 %v6060_v14, %v2217_v31 }
 0x54c   : > { %2369 = vst [vmem:[#allocation4 + $0x98] sm:$0xff] %v2337_v41  ;;  %v2338_v51 = vadd.f32 %v2295_v23, %v2242_v55  ;;  %v2248_v41 = vmul.f32 %v6057_v0, %v2216_v12  ;;  %v2607_v55 = vld [vmem:[#allocation5] sm:$0xff] }
 0x54d   : > { %v2297_v22 = vpop.xlane.xlu1 %2296  ;;  %v2639_v5 = vmul.f32 %v5896_v9, %v2607_v55  ;;  %v2220_v9 = vld [vmem:[#allocation4 + $0xf0] sm:$0xff] }
 0x54e   : > { %2370 = vst [vmem:[#allocation4 + $0xa0] sm:$0xff] %v2338_v51  ;;  %v2339_v37 = vadd.f32 %v2297_v22, %v2243_v2  ;;  %v2641_v51 = vmul.f32 %v5908_v16, %v2609_v39  ;;  %v2608_v2 = vld [vmem:[#allocation5 + $0x8] sm:$0xff]  ;;  %v6067_v13 = vpop.eup %3786 }
 0x54f   : > { %v2299_v1 = vpop.xlane.xlu0 %2298  ;;  %v2640_v48 = vmul.f32 %v5902_v27, %v2608_v2  ;;  %v2655_v27 = vmul.f32 %v6000_v19, %v2623_v24 }
 0x550   : > { %2371 = vst [vmem:[#allocation4 + $0xa8] sm:$0xff] %v2339_v37  ;;  %v2340_v62 = vadd.f32 %v2299_v1, %v2244_v29  ;;  %v2219_v37 = vld [vmem:[#allocation4 + $0xe8] sm:$0xff]  ;;  %v2625_v29 = vld [vmem:[#allocation5 + $0x90] sm:$0xff]  ;;  %v2250_v1 = vmul.f32 %v6063_v40, %v2218_v53 }
 0x551   : > { %v2301_v36 = vpop.xlane.xlu1 %2300  ;;  %v2657_v15 = vmul.f32 %v6012_v21, %v2625_v29 }
 0x552   : > { %2372 = vst [vmem:[#allocation4 + $0xb0] sm:$0xff] %v2340_v62  ;;  %v2341_v54 = vadd.f32 %v2301_v36, %v2245_v57  ;;  %v6072_v62 = vpop.eup %3788 }
 0x553   : > { %v2303_v63 = vpop.xlane.xlu0 %2302 }
 0x554   : > { %2373 = vst [vmem:[#allocation4 + $0xb8] sm:$0xff] %v2341_v54  ;;  %v2342_v6 = vadd.f32 %v2303_v63, %v2246_v56  ;;  %v2626_v54 = vld [vmem:[#allocation5 + $0x98] sm:$0xff] }
 0x555   : > { %v2305_v20 = vpop.xlane.xlu1 %2304  ;;  %v2658_v53 = vmul.f32 %v6018_v42, %v2626_v54  ;;  %v2627_v54 = vld [vmem:[#allocation5 + $0xa0] sm:$0xff] }
 0x556   : > { %2374 = vst [vmem:[#allocation4 + $0xc0] sm:$0xff] %v2342_v6  ;;  %v2343_v34 = vadd.f32 %v2305_v20, %v2247_v43  ;;  %v2251_v6 = vmul.f32 %v6067_v13, %v2219_v37  ;;  %v2624_v43 = vld [vmem:[#allocation5 + $0x88] sm:$0xff]  ;;  %v6077_v20 = vpop.eup %3790 }
 0x557   : > { %v2307_v35 = vpop.xlane.xlu0 %2306  ;;  %v2656_v2 = vmul.f32 %v6006_v61, %v2624_v43  ;;  %v2628_v43 = vld [vmem:[#allocation5 + $0xa8] sm:$0xff] }
 0x558   : > { %2375 = vst [vmem:[#allocation4 + $0xc8] sm:$0xff] %v2343_v34  ;;  %v2344_v23 = vadd.f32 %v2307_v35, %v2248_v41  ;;  %v2221_v41 = vld [vmem:[#allocation4 + $0xf8] sm:$0xff] }
 0x559   : > { %v2309_v8 = vpop.xlane.xlu1 %2308  ;;  %v3330_v22 = vpop.f32.mrb[0].mxu0 }
 0x55a   : > { %2376 = vst [vmem:[#allocation4 + $0xd0] sm:$0xff] %v2344_v23  ;;  %v2345_v50 = vadd.f32 %v2309_v8, %v2249_v33  ;;  %v2673_v7 = vadd.f32 %v3330_v22, %v2641_v51  ;;  %v2480_v25 = vpop.f32.mrb[1].mxu0  ;;  %v2252_v23 = vmul.f32 %v6072_v62, %v2220_v9 }
 0x55b   : > { %v2671_v16 = vadd.f32 %v2639_v5, %v2480_v25  ;;  %v3331_v57 = vpop.f32.mrb[2].mxu0  ;;  %v2311_v36 = vpop.xlane.xlu0 %2310  ;;  %v2253_v5 = vmul.f32 %v6077_v20, %v2221_v41  ;;  %v2614_v25 = vld [vmem:[#allocation5 + $0x38] sm:$0xff] }
 0x55c   : > { %2377 = vst [vmem:[#allocation4 + $0xd8] sm:$0xff] %v2345_v50  ;;  %2705 = vst [vmem:[#allocation5 + $0x10] sm:$0xff] %v2673_v7  ;;  %v2674_v56 = vadd.f32 %v3331_v57, %v2642_v30  ;;  %v2346_v63 = vadd.f32 %v2311_v36, %v2250_v1  ;;  %v2483_v12 = vpop.f32.mrb[3].mxu0  ;;  %v2613_v50 = vld [vmem:[#allocation5 + $0x30] sm:$0xff]  ;;  %v2611_v7 = vld [vmem:[#allocation5 + $0x20] sm:$0xff] }
 0x55d   : > { %2703 = vst [vmem:[#allocation5] sm:$0xff] %v2671_v16  ;;  %v2672_v31 = vadd.f32 %v2640_v48, %v2483_v12  ;;  %v2313_v39 = vpop.xlane.xlu1 %2312  ;;  %v3346_v34 = vpop.f32.mrb[0].mxu1  ;;  %v2645_v61 = vmul.f32 %v5932_v47, %v2613_v50  ;;  %v2612_v30 = vld [vmem:[#allocation5 + $0x28] sm:$0xff]  ;;  %v2643_v24 = vmul.f32 %v5920_v17, %v2611_v7  ;;  %v2629_v16 = vld [vmem:[#allocation5 + $0xb0] sm:$0xff]  ;;  %v2646_v48 = vmul.f32 %v5934_v46, %v2614_v25  ;;  %v2630_v12 = vld [vmem:[#allocation5 + $0xb8] sm:$0xff] }
 0x55e   : > { %2706 = vst [vmem:[#allocation5 + $0x18] sm:$0xff] %v2674_v56  ;;  %2378 = vst [vmem:[#allocation4 + $0xe0] sm:$0xff] %v2346_v63  ;;  %v2347_v55 = vadd.f32 %v2313_v39, %v2251_v6  ;;  %v2689_v35 = vadd.f32 %v3346_v34, %v2657_v15  ;;  %v2544_v26 = vpop.f32.mrb[1].mxu1  ;;  %v2644_v63 = vmul.f32 %v5922_v52, %v2612_v30  ;;  %v2632_v25 = vld [vmem:[#allocation5 + $0xc8] sm:$0xff] }
 0x55f   : > { %2704 = vst [vmem:[#allocation5 + $0x8] sm:$0xff] %v2672_v31  ;;  %v2687_v21 = vadd.f32 %v2655_v27, %v2544_v26  ;;  %v3347_v33 = vpop.f32.mrb[2].mxu1  ;;  %v2315_v51 = vpop.xlane.xlu0 %2314  ;;  %v2661_v47 = vmul.f32 %v6036_v28, %v2629_v16  ;;  %v2659_v39 = vmul.f32 %v6024_v3, %v2627_v54  ;;  %v2662_v27 = vmul.f32 %v6042_v49, %v2630_v12  ;;  %v2618_v3 = vld [vmem:[#allocation5 + $0x58] sm:$0xff]  ;;  %v2621_v54 = vld [vmem:[#allocation5 + $0x70] sm:$0xff] }
 0x560   : > { %2379 = vst [vmem:[#allocation4 + $0xe8] sm:$0xff] %v2347_v55  ;;  %2721 = vst [vmem:[#allocation5 + $0x90] sm:$0xff] %v2689_v35  ;;  %v2690_v8 = vadd.f32 %v3347_v33, %v2658_v53  ;;  %v2348_v19 = vadd.f32 %v2315_v51, %v2252_v23  ;;  %v2547_v22 = vpop.f32.mrb[3].mxu1  ;;  %v2660_v55 = vmul.f32 %v6030_v18, %v2628_v43  ;;  %v2617_v53 = vld [vmem:[#allocation5 + $0x50] sm:$0xff]  ;;  %v2615_v23 = vld [vmem:[#allocation5 + $0x40] sm:$0xff] }
 0x561   : > { %2719 = vst [vmem:[#allocation5 + $0x80] sm:$0xff] %v2687_v21  ;;  %v2688_v37 = vadd.f32 %v2656_v2, %v2547_v22  ;;  %v2317_v29 = vpop.xlane.xlu1 %2316  ;;  %v2649_v21 = vmul.f32 %v5956_v45, %v2617_v53  ;;  %v2616_v33 = vld [vmem:[#allocation5 + $0x48] sm:$0xff]  ;;  %v2647_v49 = vmul.f32 %v5944_v10, %v2615_v23  ;;  %v2633_v2 = vld [vmem:[#allocation5 + $0xd0] sm:$0xff]  ;;  %v2650_v18 = vmul.f32 %v5958_v60, %v2618_v3  ;;  %v2631_v22 = vld [vmem:[#allocation5 + $0xc0] sm:$0xff] }
 0x562   : > { %2722 = vst [vmem:[#allocation5 + $0x98] sm:$0xff] %v2690_v8  ;;  %2380 = vst [vmem:[#allocation4 + $0xf0] sm:$0xff] %v2348_v19  ;;  %v2349_v42 = vadd.f32 %v2317_v29, %v2253_v5  ;;  %v2648_v29 = vmul.f32 %v5946_v58, %v2616_v33  ;;  %v2665_v45 = vmul.f32 %v6057_v0, %v2633_v2  ;;  %v2635_v43 = vld [vmem:[#allocation5 + $0xe0] sm:$0xff] }
 0x563   : > { %2720 = vst [vmem:[#allocation5 + $0x88] sm:$0xff] %v2688_v37  ;;  %v2663_v30 = vmul.f32 %v6048_v32, %v2631_v22  ;;  %v2622_v32 = vld [vmem:[#allocation5 + $0x78] sm:$0xff] }
 0x564   : > { %2381 = vst [vmem:[#allocation4 + $0xf8] sm:$0xff] %v2349_v42  ;;  %v2634_v42 = vld [vmem:[#allocation5 + $0xd8] sm:$0xff] }
 0x569   : > { %v3334_v1 = vpop.f32.mrb[4].mxu0 }
 0x56a   : > { %v2677_v57 = vadd.f32 %v3334_v1, %v2645_v61  ;;  %v2496_v36 = vpop.f32.mrb[5].mxu0 }
 0x56b   : > { %v2675_v9 = vadd.f32 %v2643_v24, %v2496_v36  ;;  %v3335_v56 = vpop.f32.mrb[6].mxu0  ;;  %v2666_v24 = vmul.f32 %v6060_v14, %v2634_v42 }
 0x56c   : > { %2709 = vst [vmem:[#allocation5 + $0x30] sm:$0xff] %v2677_v57  ;;  %v2678_v6 = vadd.f32 %v3335_v56, %v2646_v48  ;;  %v2499_v15 = vpop.f32.mrb[7].mxu0  ;;  %v2664_v57 = vmul.f32 %v6054_v38, %v2632_v25  ;;  %v2653_v56 = vmul.f32 %v5989_v44, %v2621_v54  ;;  %v2654_v38 = vmul.f32 %v5994_v59, %v2622_v32 }
 0x56d   : > { %2707 = vst [vmem:[#allocation5 + $0x20] sm:$0xff] %v2675_v9  ;;  %v2676_v31 = vadd.f32 %v2644_v63, %v2499_v15  ;;  %v3350_v17 = vpop.f32.mrb[4].mxu1  ;;  %v2619_v9 = vld [vmem:[#allocation5 + $0x60] sm:$0xff]  ;;  %v2620_v63 = vld [vmem:[#allocation5 + $0x68] sm:$0xff] }
 0x56e   : > { %2710 = vst [vmem:[#allocation5 + $0x38] sm:$0xff] %v2678_v6  ;;  %v2693_v34 = vadd.f32 %v3350_v17, %v2661_v47  ;;  %v2560_v46 = vpop.f32.mrb[5].mxu1  ;;  %v2651_v14 = vmul.f32 %v5971_v4, %v2619_v9  ;;  %v2637_v6 = vld [vmem:[#allocation5 + $0xf0] sm:$0xff] }
 0x56f   : > { %2708 = vst [vmem:[#allocation5 + $0x28] sm:$0xff] %v2676_v31  ;;  %v2691_v41 = vadd.f32 %v2659_v39, %v2560_v46  ;;  %v3351_v52 = vpop.f32.mrb[6].mxu1  ;;  %v2652_v39 = vmul.f32 %v5976_v11, %v2620_v63  ;;  %v2669_v44 = vmul.f32 %v6072_v62, %v2637_v6 }
 0x570   : > { %2725 = vst [vmem:[#allocation5 + $0xb0] sm:$0xff] %v2693_v34  ;;  %v2694_v35 = vadd.f32 %v3351_v52, %v2662_v27  ;;  %v2563_v26 = vpop.f32.mrb[7].mxu1  ;;  %v2638_v34 = vld [vmem:[#allocation5 + $0xf8] sm:$0xff] }
 0x571   : > { %2723 = vst [vmem:[#allocation5 + $0xa0] sm:$0xff] %v2691_v41  ;;  %v2692_v28 = vadd.f32 %v2660_v55, %v2563_v26  ;;  %v2636_v41 = vld [vmem:[#allocation5 + $0xe8] sm:$0xff]  ;;  %v2667_v55 = vmul.f32 %v6063_v40, %v2635_v43  ;;  %v2670_v26 = vmul.f32 %v6077_v20, %v2638_v34 }
 0x572   : > { %2726 = vst [vmem:[#allocation5 + $0xb8] sm:$0xff] %v2694_v35  ;;  %v2668_v53 = vmul.f32 %v6067_v13, %v2636_v41 }
 0x573   : > { %2724 = vst [vmem:[#allocation5 + $0xa8] sm:$0xff] %v2692_v28 }
 0x579   : > { %v3338_v51 = vpop.f32.mrb[8].mxu0 }
 0x57a   : > { %v2681_v8 = vadd.f32 %v3338_v51, %v2649_v21  ;;  %v2512_v19 = vpop.f32.mrb[9].mxu0 }
 0x57b   : > { %v2679_v5 = vadd.f32 %v2647_v49, %v2512_v19  ;;  %v3339_v37 = vpop.f32.mrb[10].mxu0 }
 0x57c   : > { %2713 = vst [vmem:[#allocation5 + $0x50] sm:$0xff] %v2681_v8  ;;  %v2682_v50 = vadd.f32 %v3339_v37, %v2650_v18  ;;  %v2515_v7 = vpop.f32.mrb[11].mxu0 }
 0x57d   : > { %2711 = vst [vmem:[#allocation5 + $0x40] sm:$0xff] %v2679_v5  ;;  %v2680_v61 = vadd.f32 %v2648_v29, %v2515_v7  ;;  %v3354_v10 = vpop.f32.mrb[8].mxu1 }
 0x57e   : > { %2714 = vst [vmem:[#allocation5 + $0x58] sm:$0xff] %v2682_v50  ;;  %v2697_v1 = vadd.f32 %v3354_v10, %v2665_v45  ;;  %v2576_v60 = vpop.f32.mrb[9].mxu1 }
 0x57f   : > { %2712 = vst [vmem:[#allocation5 + $0x48] sm:$0xff] %v2680_v61  ;;  %v2695_v16 = vadd.f32 %v2663_v30, %v2576_v60  ;;  %v3355_v58 = vpop.f32.mrb[10].mxu1 }
 0x580   : > { %2729 = vst [vmem:[#allocation5 + $0xd0] sm:$0xff] %v2697_v1  ;;  %v2698_v36 = vadd.f32 %v3355_v58, %v2666_v24  ;;  %v2579_v48 = vpop.f32.mrb[11].mxu1 }
 0x581   : > { %2727 = vst [vmem:[#allocation5 + $0xc0] sm:$0xff] %v2695_v16  ;;  %v2696_v0 = vadd.f32 %v2664_v57, %v2579_v48 }
 0x582   : > { %2730 = vst [vmem:[#allocation5 + $0xd8] sm:$0xff] %v2698_v36 }
 0x583   : > { %2728 = vst [vmem:[#allocation5 + $0xc8] sm:$0xff] %v2696_v0 }
 0x589   : > { %v3342_v12 = vpop.f32.mrb[12].mxu0 }
 0x58a   : > { %v2685_v15 = vadd.f32 %v3342_v12, %v2653_v56  ;;  %v2528_v47 = vpop.f32.mrb[13].mxu0 }
 0x58b   : > { %v2683_v31 = vadd.f32 %v2651_v14, %v2528_v47  ;;  %v3343_v17 = vpop.f32.mrb[14].mxu0 }
 0x58c   : > { %2717 = vst [vmem:[#allocation5 + $0x70] sm:$0xff] %v2685_v15  ;;  %v2686_v46 = vadd.f32 %v3343_v17, %v2654_v38  ;;  %v2531_v27 = vpop.f32.mrb[15].mxu0 }
 0x58d   : > { %2715 = vst [vmem:[#allocation5 + $0x60] sm:$0xff] %v2683_v31  ;;  %v2684_v52 = vadd.f32 %v2652_v39, %v2531_v27 }
 0x58e   : > { %v3358_v4 = vpop.f32.mrb[12].mxu1  ;;  %2718 = vst [vmem:[#allocation5 + $0x78] sm:$0xff] %v2686_v46 }
 0x58f   : > { %v2701_v35 = vadd.f32 %v3358_v4, %v2669_v44  ;;  %v2592_v59 = vpop.f32.mrb[13].mxu1  ;;  %2716 = vst [vmem:[#allocation5 + $0x68] sm:$0xff] %v2684_v52 }
 0x590   : > { %v2699_v28 = vadd.f32 %v2667_v55, %v2592_v59  ;;  %v3359_v11 = vpop.f32.mrb[14].mxu1 }
 0x591   : > { %2733 = vst [vmem:[#allocation5 + $0xf0] sm:$0xff] %v2701_v35  ;;  %v2702_v23 = vadd.f32 %v3359_v11, %v2670_v26  ;;  %v2595_v3 = vpop.f32.mrb[15].mxu1 }
 0x592   : > { %2731 = vst [vmem:[#allocation5 + $0xe0] sm:$0xff] %v2699_v28  ;;  %v2700_v62 = vadd.f32 %v2668_v53, %v2595_v3 }
 0x593   : > { %2734 = vst [vmem:[#allocation5 + $0xf8] sm:$0xff] %v2702_v23 }
 0x594   : > { %2732 = vst [vmem:[#allocation5 + $0xe8] sm:$0xff] %v2700_v62 }
 0x595 PF: > { %p3136_p2 = scmp.ne.s32.totalorder %s4056_s18, 1 }
 0x596   : > { %v2771_v40 = vld [vmem:[#allocation4] sm:$0xff] (!%p3136_p2)  ;;  %v2772_v21 = vld [vmem:[#allocation4 + $0x8] sm:$0xff] (!%p3136_p2)  ;;  %v2773_v20 = vld [vmem:[#allocation4 + $0x10] sm:$0xff] (!%p3136_p2) }
 0x597   : > { %2770 = sbr.rel (%p3136_p2) target bundleno = 1476 (0x5c4), region = 64  ;;  %3792 = vrcp.f32 (!%p3136_p2), %v2771_v40  ;;  %v2774_v33 = vld [vmem:[#allocation4 + $0x18] sm:$0xff] (!%p3136_p2)  ;;  %v2775_v51 = vld [vmem:[#allocation4 + $0x20] sm:$0xff] (!%p3136_p2)  ;;  %v2776_v13 = vld [vmem:[#allocation4 + $0x28] sm:$0xff] (!%p3136_p2) }
 0x598   : > { %3794 = vrcp.f32 (!%p3136_p2), %v2772_v21  ;;  %v2777_v49 = vld [vmem:[#allocation4 + $0x30] sm:$0xff] (!%p3136_p2)  ;;  %v2778_v2 = vld [vmem:[#allocation4 + $0x38] sm:$0xff] (!%p3136_p2)  ;;  %v2779_v8 = vld [vmem:[#allocation4 + $0x40] sm:$0xff] (!%p3136_p2) }
 0x599   : > { %3796 = vrcp.f32 (!%p3136_p2), %v2773_v20  ;;  %v2780_v19 = vld [vmem:[#allocation4 + $0x48] sm:$0xff] (!%p3136_p2)  ;;  %v2781_v18 = vld [vmem:[#allocation4 + $0x50] sm:$0xff] (!%p3136_p2)  ;;  %v2835_v22 = vld [vmem:[#allocation5] sm:$0xff] (!%p3136_p2) }
 0x59a   : > { %3798 = vrcp.f32 (!%p3136_p2), %v2774_v33  ;;  %v2782_v5 = vld [vmem:[#allocation4 + $0x58] sm:$0xff] (!%p3136_p2)  ;;  %v2836_v37 = vld [vmem:[#allocation5 + $0x8] sm:$0xff] (!%p3136_p2)  ;;  %v2783_v29 = vld [vmem:[#allocation4 + $0x60] sm:$0xff] (!%p3136_p2) }
 0x59b   : > { %3800 = vrcp.f32 (!%p3136_p2), %v2775_v51  ;;  %v2837_v50 = vld [vmem:[#allocation5 + $0x10] sm:$0xff] (!%p3136_p2)  ;;  %v2784_v7 = vld [vmem:[#allocation4 + $0x68] sm:$0xff] (!%p3136_p2)  ;;  %v2838_v61 = vld [vmem:[#allocation5 + $0x18] sm:$0xff] (!%p3136_p2) }
 0x59c   : > { %3802 = vrcp.f32 (!%p3136_p2), %v2776_v13  ;;  %v2785_v10 = vld [vmem:[#allocation4 + $0x70] sm:$0xff] (!%p3136_p2)  ;;  %v2839_v60 = vld [vmem:[#allocation5 + $0x20] sm:$0xff] (!%p3136_p2)  ;;  %v2786_v24 = vld [vmem:[#allocation4 + $0x78] sm:$0xff] (!%p3136_p2) }
 0x59d   : > { %3804 = vrcp.f32 (!%p3136_p2), %v2777_v49  ;;  %v2840_v57 = vld [vmem:[#allocation5 + $0x28] sm:$0xff] (!%p3136_p2)  ;;  %v2787_v36 = vld [vmem:[#allocation4 + $0x80] sm:$0xff] (!%p3136_p2)  ;;  %v2841_v54 = vld [vmem:[#allocation5 + $0x30] sm:$0xff] (!%p3136_p2) }
 0x59e   : > { %3806 = vrcp.f32 %v2778_v2  ;;  %v2788_v9 = vld [vmem:[#allocation4 + $0x88] sm:$0xff]  ;;  %v2842_v63 = vld [vmem:[#allocation5 + $0x38] sm:$0xff]  ;;  %v2789_v12 = vld [vmem:[#allocation4 + $0x90] sm:$0xff] }
 0x59f   : > { %3808 = vrcp.f32 %v2779_v8  ;;  %v2843_v15 = vld [vmem:[#allocation5 + $0x40] sm:$0xff]  ;;  %v2790_v47 = vld [vmem:[#allocation4 + $0x98] sm:$0xff]  ;;  %v2844_v31 = vld [vmem:[#allocation5 + $0x48] sm:$0xff] }
 0x5a0   : > { %3810 = vrcp.f32 %v2780_v19  ;;  %v2791_v17 = vld [vmem:[#allocation4 + $0xa0] sm:$0xff]  ;;  %v2845_v46 = vld [vmem:[#allocation5 + $0x50] sm:$0xff]  ;;  %v2792_v27 = vld [vmem:[#allocation4 + $0xa8] sm:$0xff] }
 0x5a1   : > { %v3793_v42 = vpop.eup %3792  ;;  %3812 = vrcp.f32 %v2781_v18  ;;  %v2846_v52 = vld [vmem:[#allocation5 + $0x58] sm:$0xff]  ;;  %v2793_v4 = vld [vmem:[#allocation4 + $0xb0] sm:$0xff]  ;;  %v2847_v59 = vld [vmem:[#allocation5 + $0x60] sm:$0xff] }
 0x5a2   : > { %v3795_v45 = vpop.eup %3794  ;;  %v2867_v25 = vmul.f32 %v3793_v42, %v2835_v22  ;;  %3814 = vrcp.f32 %v2782_v5  ;;  %v2794_v26 = vld [vmem:[#allocation4 + $0xb8] sm:$0xff]  ;;  %v2848_v53 = vld [vmem:[#allocation5 + $0x68] sm:$0xff]  ;;  %v2795_v23 = vld [vmem:[#allocation4 + $0xc0] sm:$0xff] }
 0x5a3   : > { %v3797_v30 = vpop.eup %3796  ;;  %v2868_v1 = vmul.f32 %v3795_v45, %v2836_v37  ;;  %3816 = vrcp.f32 %v2783_v29  ;;  %v2849_v40 = vld [vmem:[#allocation5 + $0x70] sm:$0xff]  ;;  %v2796_v21 = vld [vmem:[#allocation4 + $0xc8] sm:$0xff]  ;;  %v2850_v51 = vld [vmem:[#allocation5 + $0x78] sm:$0xff] }
 0x5a4   : > { %v3799_v16 = vpop.eup %3798  ;;  %2899 = vst [vmem:[%s4398_s17] sm:$0xff] %v2867_v25  ;;  %v2869_v58 = vmul.f32 %v3797_v30, %v2837_v50  ;;  %3818 = vrcp.f32 %v2784_v7  ;;  %v2797_v13 = vld [vmem:[#allocation4 + $0xd0] sm:$0xff]  ;;  %v2851_v8 = vld [vmem:[#allocation5 + $0x80] sm:$0xff]  ;;  %v2798_v19 = vld [vmem:[#allocation4 + $0xd8] sm:$0xff] }
 0x5a5   : > { %v3801_v48 = vpop.eup %3800  ;;  %2900 = vst [vmem:[%s4398_s17 + $0x8] sm:$0xff] %v2868_v1  ;;  %v2870_v0 = vmul.f32 %v3799_v16, %v2838_v61  ;;  %3820 = vrcp.f32 %v2785_v10  ;;  %v2852_v5 = vld [vmem:[#allocation5 + $0x88] sm:$0xff]  ;;  %v2799_v37 = vld [vmem:[#allocation4 + $0xe0] sm:$0xff]  ;;  %v2853_v50 = vld [vmem:[#allocation5 + $0x90] sm:$0xff] }
 0x5a6   : > { %v3803_v32 = vpop.eup %3802  ;;  %2901 = vst [vmem:[%s4398_s17 + $0x10] sm:$0xff] %v2869_v58  ;;  %v2871_v56 = vmul.f32 %v3801_v48, %v2839_v60  ;;  %3822 = vrcp.f32 %v2786_v24  ;;  %v2800_v7 = vld [vmem:[#allocation4 + $0xe8] sm:$0xff]  ;;  %v2854_v61 = vld [vmem:[#allocation5 + $0x98] sm:$0xff]  ;;  %v2801_v10 = vld [vmem:[#allocation4 + $0xf0] sm:$0xff] }
 0x5a7   : > { %v3805_v14 = vpop.eup %3804  ;;  %2902 = vst [vmem:[%s4398_s17 + $0x18] sm:$0xff] %v2870_v0  ;;  %v2872_v6 = vmul.f32 %v3803_v32, %v2840_v57  ;;  %3824 = vrcp.f32 %v2787_v36  ;;  %v2855_v60 = vld [vmem:[#allocation5 + $0xa0] sm:$0xff]  ;;  %v2802_v24 = vld [vmem:[#allocation4 + $0xf8] sm:$0xff]  ;;  %v2856_v57 = vld [vmem:[#allocation5 + $0xa8] sm:$0xff] }
 0x5a8   : > { %v3807_v38 = vpop.eup %3806  ;;  %2903 = vst [vmem:[%s4398_s17 + $0x20] sm:$0xff] %v2871_v56  ;;  %v2873_v43 = vmul.f32 %v3805_v14, %v2841_v54  ;;  %3826 = vrcp.f32 %v2788_v9  ;;  %v2857_v0 = vld [vmem:[#allocation5 + $0xb0] sm:$0xff]  ;;  %v2858_v32 = vld [vmem:[#allocation5 + $0xb8] sm:$0xff] }
 0x5a9   : > { %v3809_v39 = vpop.eup %3808  ;;  %2904 = vst [vmem:[%s4398_s17 + $0x28] sm:$0xff] %v2872_v6  ;;  %v2874_v34 = vmul.f32 %v3807_v38, %v2842_v63  ;;  %3828 = vrcp.f32 %v2789_v12  ;;  %v2859_v12 = vld [vmem:[#allocation5 + $0xc0] sm:$0xff] }
 0x5aa   : > { %v3811_v44 = vpop.eup %3810  ;;  %2905 = vst [vmem:[%s4398_s17 + $0x30] sm:$0xff] %v2873_v43  ;;  %v2875_v41 = vmul.f32 %v3809_v39, %v2843_v15  ;;  %3830 = vrcp.f32 %v2790_v47  ;;  %v2860_v15 = vld [vmem:[#allocation5 + $0xc8] sm:$0xff]  ;;  %v2861_v43 = vld [vmem:[#allocation5 + $0xd0] sm:$0xff]  ;;  %v2862_v39 = vld [vmem:[#allocation5 + $0xd8] sm:$0xff] }
 0x5ab   : > { %v3813_v55 = vpop.eup %3812  ;;  %2906 = vst [vmem:[%s4398_s17 + $0x38] sm:$0xff] %v2874_v34  ;;  %v2876_v35 = vmul.f32 %v3811_v44, %v2844_v31  ;;  %3832 = vrcp.f32 %v2791_v17 }
 0x5ac   : > { %v3815_v28 = vpop.eup %3814  ;;  %2907 = vst [vmem:[%s4398_s17 + $0x40] sm:$0xff] %v2875_v41  ;;  %v2877_v11 = vmul.f32 %v3813_v55, %v2845_v46  ;;  %3834 = vrcp.f32 %v2792_v27  ;;  %v2863_v27 = vld [vmem:[#allocation5 + $0xe0] sm:$0xff] }
 0x5ad   : > { %v3817_v3 = vpop.eup %3816  ;;  %2908 = vst [vmem:[%s4398_s17 + $0x48] sm:$0xff] %v2876_v35  ;;  %v2878_v62 = vmul.f32 %v3815_v28, %v2846_v52  ;;  %3836 = vrcp.f32 %v2793_v4  ;;  %v2864_v52 = vld [vmem:[#allocation5 + $0xe8] sm:$0xff]  ;;  %v2865_v35 = vld [vmem:[#allocation5 + $0xf0] sm:$0xff]  ;;  %v2866_v28 = vld [vmem:[#allocation5 + $0xf8] sm:$0xff] }
 0x5ae   : > { %v3819_v20 = vpop.eup %3818  ;;  %2909 = vst [vmem:[%s4398_s17 + $0x50] sm:$0xff] %v2877_v11  ;;  %v2879_v33 = vmul.f32 %v3817_v3, %v2847_v59  ;;  %3838 = vrcp.f32 %v2794_v26 }
 0x5af   : > { %v3821_v49 = vpop.eup %3820  ;;  %2910 = vst [vmem:[%s4398_s17 + $0x58] sm:$0xff] %v2878_v62  ;;  %v2880_v2 = vmul.f32 %v3819_v20, %v2848_v53  ;;  %3840 = vrcp.f32 %v2795_v23 }
 0x5b0   : > { %v3823_v18 = vpop.eup %3822  ;;  %2911 = vst [vmem:[%s4398_s17 + $0x60] sm:$0xff] %v2879_v33  ;;  %v2881_v22 = vmul.f32 %v3821_v49, %v2849_v40  ;;  %3842 = vrcp.f32 %v2796_v21 }
 0x5b1   : > { %v3825_v29 = vpop.eup %3824  ;;  %2912 = vst [vmem:[%s4398_s17 + $0x68] sm:$0xff] %v2880_v2  ;;  %v2882_v42 = vmul.f32 %v3823_v18, %v2850_v51  ;;  %3844 = vrcp.f32 %v2797_v13 }
 0x5b2   : > { %v3827_v45 = vpop.eup %3826  ;;  %2913 = vst [vmem:[%s4398_s17 + $0x70] sm:$0xff] %v2881_v22  ;;  %v2883_v25 = vmul.f32 %v3825_v29, %v2851_v8  ;;  %3846 = vrcp.f32 %v2798_v19 }
 0x5b3   : > { %v3829_v30 = vpop.eup %3828  ;;  %2914 = vst [vmem:[%s4398_s17 + $0x78] sm:$0xff] %v2882_v42  ;;  %v2884_v1 = vmul.f32 %v3827_v45, %v2852_v5  ;;  %3848 = vrcp.f32 %v2799_v37 }
 0x5b4   : > { %v3831_v16 = vpop.eup %3830  ;;  %2915 = vst [vmem:[%s4398_s17 + $0x80] sm:$0xff] %v2883_v25  ;;  %v2885_v58 = vmul.f32 %v3829_v30, %v2853_v50  ;;  %3850 = vrcp.f32 %v2800_v7 }
 0x5b5   : > { %v3833_v36 = vpop.eup %3832  ;;  %2916 = vst [vmem:[%s4398_s17 + $0x88] sm:$0xff] %v2884_v1  ;;  %v2886_v48 = vmul.f32 %v3831_v16, %v2854_v61  ;;  %3852 = vrcp.f32 %v2801_v10 }
 0x5b6   : > { %v3835_v54 = vpop.eup %3834  ;;  %2917 = vst [vmem:[%s4398_s17 + $0x90] sm:$0xff] %v2885_v58  ;;  %v2887_v9 = vmul.f32 %v3833_v36, %v2855_v60  ;;  %3854 = vrcp.f32 %v2802_v24 }
 0x5b7   : > { %v3837_v56 = vpop.eup %3836  ;;  %2918 = vst [vmem:[%s4398_s17 + $0x98] sm:$0xff] %v2886_v48  ;;  %v2888_v63 = vmul.f32 %v3835_v54, %v2856_v57 }
 0x5b8   : > { %v3839_v14 = vpop.eup %3838  ;;  %2919 = vst [vmem:[%s4398_s17 + $0xa0] sm:$0xff] %v2887_v9  ;;  %v2889_v6 = vmul.f32 %v3837_v56, %v2857_v0 }
 0x5b9   : > { %v3841_v47 = vpop.eup %3840  ;;  %2920 = vst [vmem:[%s4398_s17 + $0xa8] sm:$0xff] %v2888_v63  ;;  %v2890_v38 = vmul.f32 %v3839_v14, %v2858_v32 }
 0x5ba   : > { %v3843_v31 = vpop.eup %3842  ;;  %2921 = vst [vmem:[%s4398_s17 + $0xb0] sm:$0xff] %v2889_v6  ;;  %v2891_v17 = vmul.f32 %v3841_v47, %v2859_v12 }
 0x5bb   : > { %v3845_v34 = vpop.eup %3844  ;;  %2922 = vst [vmem:[%s4398_s17 + $0xb8] sm:$0xff] %v2890_v38  ;;  %v2892_v46 = vmul.f32 %v3843_v31, %v2860_v15 }
 0x5bc   : > { %v3847_v44 = vpop.eup %3846  ;;  %2923 = vst [vmem:[%s4398_s17 + $0xc0] sm:$0xff] %v2891_v17  ;;  %v2893_v41 = vmul.f32 %v3845_v34, %v2861_v43 }
 0x5bd   : > { %v3849_v4 = vpop.eup %3848  ;;  %2924 = vst [vmem:[%s4398_s17 + $0xc8] sm:$0xff] %v2892_v46  ;;  %v2894_v55 = vmul.f32 %v3847_v44, %v2862_v39 }
 0x5be   : > { %v3851_v59 = vpop.eup %3850  ;;  %2925 = vst [vmem:[%s4398_s17 + $0xd0] sm:$0xff] %v2893_v41  ;;  %v2895_v26 = vmul.f32 %v3849_v4, %v2863_v27 }
 0x5bf   : > { %v3853_v11 = vpop.eup %3852  ;;  %2926 = vst [vmem:[%s4398_s17 + $0xd8] sm:$0xff] %v2894_v55  ;;  %v2896_v53 = vmul.f32 %v3851_v59, %v2864_v52 }
 0x5c0   : > { %v3855_v23 = vpop.eup %3854  ;;  %2927 = vst [vmem:[%s4398_s17 + $0xe0] sm:$0xff] %v2895_v26  ;;  %v2897_v3 = vmul.f32 %v3853_v11, %v2865_v35 }
 0x5c1   : > { %2928 = vst [vmem:[%s4398_s17 + $0xe8] sm:$0xff] %v2896_v53  ;;  %v2898_v62 = vmul.f32 %v3855_v23, %v2866_v28 }
 0x5c2   : > { %2929 = vst [vmem:[%s4398_s17 + $0xf0] sm:$0xff] %v2897_v3 }
 0x5c3   : > { %2930 = vst [vmem:[%s4398_s17 + $0xf8] sm:$0xff] %v2898_v62 }
 0x5c4 PF: > { %s3143_s18 = sshll.u32 %s4060_s19, 12  ;;  %s2947_s4 = sshll.u32 %s4398_s17, 4  ;;  %s6148_s4 = int_to_ptr.vmem [resolvable:$true] %s2947_s4 }
 0x5c5   : > { %s6145_s0 = scalar_lea.hbm %s6214_s3, %s3143_s18  ;;  %s2932_s30 = scalar_lea.sflag [#allocation8], %s4378_s25 }
 0x5c6   : > { %s3946_s20 = scalar_lea.vmem %s6148_s4, 4096  ;;  %p6630_p1 = scmp.ne.s32.totalorder %s6349_s26, 0 }
 0x5c7   : > { %p3947_p12 = scmp.ne.s32.totalorder %s6148_s4, %s3946_s20  ;;  %s4083_s12 = smov [#allocation12]  }
 0x5c8   : > { %s3950_s5 = sshll.u32 %s4083_s12, 4  ;;  %s3951_s5 = int_to_ptr.vmem [resolvable:$false] %s3950_s5 }
 0x5c9   : > { %p3948_p7 = pnand %p3947_p12, %p6630_p1  ;;  %s3952_s19 = scalar_lea.vmem %s3951_s5, 8192 }
 0x5ca   : > { %p3953_p6 = scmp.lt.s32.totalorder %s6148_s4, %s3951_s5  ;;  %p3954_p3 = scmp.lt.s32.totalorder %s3952_s19, %s3946_s20 }
 0x5cb   : > { %p3949_p0 = pneg %p3948_p7 }
 0x5cc   : > { %p3955_p11 = por %p3954_p3, %p3953_p6 }
 0x5ce   : > { %p3956_p13 = pnand %p3955_p11, %p3949_p0 }
 0x5d0   : > { %3959 = shalt.err (!%p3956_p13)
}
 0x5d1   : > { %s3960_s1 = scalar_lea.hbm %s6145_s0, 4096  ;;  %s3964_s24 = scalar_lea.hbm %s6214_s3, 32768 }
 0x5d2   : > { %p3961_p10 = scmp.ne.s32.totalorder %s6145_s0, %s3960_s1  ;;  %p3965_p5 = scmp.lt.u32.totalorder %s6145_s0, %s6214_s3 }
 0x5d3   : > { %p3966_p9 = scmp.lt.u32.totalorder %s3964_s24, %s3960_s1  ;;  %p3968_p12 = scmp.lt.u32.totalorder %s3960_s1, %s6145_s0 }
 0x5d4   : > { %p3962_p4 = pnand %p3961_p10, %p6630_p1 }
 0x5d5   : > { %p3967_p2 = por %p3966_p9, %p3965_p5 }
 0x5d6   : > { %p3963_p8 = pneg %p3962_p4 }
 0x5d7   : > { %p3969_p7 = por %p3968_p12, %p3967_p2 }
 0x5d9   : > { %p3970_p0 = pnand %p3969_p7, %p3963_p8 }
 0x5db   : > { %3973 = shalt.err (!%p3970_p0)
}
 0x5dc   : > { %s4084_s17 = smov 128   ;;  %s4085_s23 = smov 8  }
 0x5dd   : > { %3414 = dma.vmem_to_hbm [thread:$0]  (%p6630_p1), %s6148_s4, 4096, %s6145_s0, %s2932_s30, %s4084_s17, %s4084_s17, %s4085_s23  }
 0x5de PF: > { %p3431_p6 = scmp.ge.s32.totalorder %s4072_s22, 2  ;;  %s2962_s7 = sand.u32 1, %s4044_s15  }
 0x5df   : > { %p6631_p3 = scmp.ne.s32.totalorder %s6350_s29, 0  ;;  %s2963_s10 = scalar_lea.sflag [#allocation8], %s2962_s7 }
 0x5e1   : > { %p3427_p11 = pnand %p3431_p6, %p6631_p3 }
 0x5e3   : > { %4027 = dma.done.wait (!%p3427_p11), %s2963_s10, 4096  }
 0x5e4   : > { %4029 = vsyncadd (!%p3427_p11), %s2963_s10, 4294963200  ;;  %s22_s22 = sadd.s32 1, %s4072_s22   ;;  %s6632_s21 = sld [smem:[#allocation21_spill]] }
 0x5e5   : > { %p19_p13 = scmp.ge.s32.totalorder %s22_s22, 18   ;;  %s6633_s26 = sld [smem:[#allocation16_spill]] }
 0x5e6   : > { %s6634_s17 = sld [smem:[#allocation22_spill]]  ;;  %s6635_s18 = sld [smem:[#allocation17_spill]] }
 0x5e7   : > { %s6636_s19 = sld [smem:[#allocation18_spill]]  ;;  %s6637_s20 = sld [smem:[#allocation19_spill]] }
 0x5e8   : > { %s6638_s25 = sld [smem:[#allocation20_spill]]  ;;  %s6639_s12 = smov %s4036_s13 }
 0x5e9   : > { %s6640_s13 = smov %s4040_s14  ;;  %s6642_s15 = smov %s4048_s16 }
 0x5ea   : > { %s6641_s14 = smov %s6632_s21  ;;  %21 = sbr.rel (!%p19_p13) target bundleno = 14 (0xe), region = 121 }
 0x5eb   : > { %s6643_s16 = smov %s6633_s26 }
 0x5ee   : > { %s6644_s21 = smov %s6638_s25 }
 0x5f1   :  { %2968 = vsyncpa [#allocation7], 1 }
 0x5f2   :  { %2970 = vsyncpa [#allocation7 + $0x1], 1 }
 0x5f3   :  { %2971 = vsyncpa [#allocation10], 1 }
 0x5f4   :  { %2973 = vsyncpa [#allocation10 + $0x1], 1 }
 0x5f5   :  { %2974 = vsyncpa [#allocation8], 1 }
 0x5f6   :  { %2976 = vsyncpa [#allocation8 + $0x1], 1 }

</bundles_post_ra>
